<compile_context>
chip_gen: v7x
topology: tpu7x:2x2x1
jax: 0.10.0
libtpu: 0.0.40
codegen_flags: <defaults>
</compile_context>

<pallas_src>
import functools

import jax
import jax.numpy as jnp
from jax import lax
from jax.experimental import pallas as pl
from jax.experimental.pallas import tpu as pltpu


MARGIN = 0.3


def _fused_triplet_kernel(x_ref, lab_row_ref, lab_col_ref, lf_ref, out_ref,
                          *, n, m, c, margin):
    f32 = jnp.float32
    big = f32(1e30)

    # -------- global branch: normalize, pairwise distance, hard mining --------
    x = x_ref[...].astype(f32)                                    # (N, D)
    xn = x / (jnp.sqrt(jnp.sum(x * x, axis=-1, keepdims=True)) + 1e-12)

    prod = lax.dot_general(xn, xn, (((1,), (1,)), ((), ())),
                           preferred_element_type=f32)            # (N, N) Gram
    # ||xn||^2 == 1 after normalization, so sq_i + sq_j == 2 (drops the
    # (N,1)->(1,N) squared-norm transpose relayout).
    d = jnp.sqrt(jnp.maximum(2.0 - 2.0 * prod, 1e-12))            # (N, N)

    is_pos = lab_col_ref[...] == lab_row_ref[...]                 # (N, N), symmetric
    d_pos = jnp.where(is_pos, d, -big)
    d_neg = jnp.where(is_pos, big, d)

    # d / is_pos are symmetric: mining over axis 0 (candidate on sublanes)
    # equals row-wise mining and keeps the anchor on the lane axis.
    dist_ap = jnp.max(d_pos, axis=0, keepdims=True)               # (1, N)
    dist_an = jnp.min(d_neg, axis=0, keepdims=True)               # (1, N)

    # First-occurrence indices (f32 iota exact for N << 2^24).
    k_iota = lax.broadcasted_iota(jnp.int32, (n, n), 0).astype(f32)
    sentinel = f32(n)
    p_ind = jnp.min(jnp.where(is_pos & (d_pos == dist_ap), k_iota, sentinel),
                    axis=0, keepdims=True)                        # (1, N)
    # NOTE: anchors with no in-batch negative give an all-zero one-hot below;
    # the PyTorch reference also misbehaves (differently) on such batches.
    n_ind = jnp.min(jnp.where(jnp.logical_not(is_pos) & (d_neg == dist_an),
                              k_iota, sentinel),
                    axis=0, keepdims=True)                        # (1, N)
    sel_p = (k_iota == p_ind).astype(f32)                         # (N, N) one-hot cols
    sel_n = (k_iota == n_ind).astype(f32)

    # -------- local branch: batched local distances + shortest-path DP --------
    # lf2d[(part i)*C + channel, k] = local_features[k, channel, i]
    lf2d = lf_ref[...].astype(f32)                                # (M*C, N)
    y_p = lax.dot_general(lf2d, sel_p, (((1,), (0,)), ((), ())),
                          preferred_element_type=f32)             # (M*C, N)
    y_n = lax.dot_general(lf2d, sel_n, (((1,), (0,)), ((), ())),
                          preferred_element_type=f32)             # (M*C, N)

    # One-time row-block interleave: target rows ordered (part j, branch b) so
    # every DP cell later reads a contiguous (2, N) slab (pos row, neg row).
    pieces = []
    for j in range(m):
        pieces.append(y_p[j * c:(j + 1) * c, :])                  # tile-aligned (C, N)
        pieces.append(y_n[j * c:(j + 1) * c, :])
    y_int3 = jnp.concatenate(pieces, axis=0).reshape(2 * m, c, n)  # (2M, C, N)

    # Batched local Euclidean distances: per anchor part, ONE (2M, C, N)
    # diff/square and ONE grouped sublane reduction over C.
    d2_rows = []
    for i in range(m):
        xi = lf2d[i * c:(i + 1) * c, :]                           # (C, N)
        diff = y_int3 - xi[None, :, :]                            # (2M, C, N)
        d2_rows.append(jnp.sum(diff * diff, axis=1))              # (2M, N)
    d2_all = jnp.concatenate(d2_rows, axis=0)                     # (2*M*M, N)

    # One sqrt + one tanh over the whole slab; tanh(d/2) == (e^d-1)/(e^d+1).
    g_all = jnp.tanh(0.5 * jnp.sqrt(jnp.maximum(d2_all, 1e-12)))  # (2*M*M, N)

    # Shortest-path DP over the (M x M) grid; each cell processes BOTH branches
    # as one lane-dense (2, N) block.  Live set ~= one DP row + g_all.
    dp = {}
    for i in range(m):
        for j in range(m):
            r0 = (i * m + j) * 2                                  # even -> within-tile slice
            gij = g_all[r0:r0 + 2, :]                             # (2, N): (pos, neg)
            if i == 0 and j == 0:
                cur = gij
            elif i == 0:
                cur = dp[(0, j - 1)] + gij
            elif j == 0:
                cur = dp[(i - 1, 0)] + gij
            else:
                cur = jnp.minimum(dp[(i - 1, j)], dp[(i, j - 1)]) + gij
            dp[(i, j)] = cur
    local_pn = dp[(m - 1, m - 1)]                                 # (2, N): ap row, an row

    # MarginRankingLoss(margin)(x1=an, x2=ap, y=1) == mean(relu(ap - an + margin));
    # emit the per-anchor hinge rows as one lane-dense (2, N) output.
    hinge_g = jnp.maximum(dist_ap - dist_an + margin, 0.0)                    # (1, N)
    hinge_l = jnp.maximum(local_pn[0:1, :] - local_pn[1:2, :] + margin, 0.0)  # (1, N)
    out_ref[...] = jnp.concatenate([hinge_g, hinge_l], axis=0)                # (2, N)


def triplet_loss_aligned_reid(inputs, targets, local_features, margin=MARGIN):
    """Returns (global_loss, local_loss) exactly like the PyTorch module (mutual=False)."""
    N, D = inputs.shape
    _, C, M = local_features.shape
    # Production-size expectations: N a multiple of 128 (256 on v6e/v7x) and C a
    # multiple of 8 keep every part slice (8,128)-tile aligned; at demo sizes the
    # full-array blocks are always legal.

    lab_row = targets.astype(jnp.int32).reshape(1, N)
    lab_col = targets.astype(jnp.int32).reshape(N, 1)
    # local_features.permute(0, 2, 1) -> (N, M, C), re-laid out as (M*C, N) so the
    # batch sits on the lane axis; done at the NATIVE dtype (no wrapper upcast).
    lf2d = jnp.transpose(local_features, (2, 1, 0)).reshape(M * C, N)

    kernel = functools.partial(_fused_triplet_kernel,
                               n=N, m=M, c=C, margin=float(margin))

    vmem = pl.BlockSpec(memory_space=pltpu.MemorySpace.VMEM)
    hinges = pl.pallas_call(
        kernel,
        out_shape=jax.ShapeDtypeStruct((2, N), jnp.float32),
        in_specs=[vmem, vmem, vmem, vmem],
        out_specs=vmem,
    )(inputs, lab_row, lab_col, lf2d)

    # Tiny epilogue reduce of the per-anchor hinge rows (kept outside the kernel
    # so the anchor axis can later be tiled across cores with partial sums).
    global_loss = jnp.mean(hinges[0])
    local_loss = jnp.mean(hinges[1])
    return global_loss, local_loss


def _reference_forward(inputs, targets, local_features, margin):
    """Pure-JAX transcription of the PyTorch module (validation only)."""
    x = inputs.astype(jnp.float32)
    x = x / (jnp.sqrt(jnp.sum(x * x, axis=-1, keepdims=True)) + 1e-12)
    sq = jnp.sum(x * x, axis=1, keepdims=True)
    dist = sq + sq.T - 2.0 * (x @ x.T)
    dist = jnp.sqrt(jnp.maximum(dist, 1e-12))

    is_pos = targets[:, None] == targets[None, :]
    dist_ap = jnp.max(jnp.where(is_pos, dist, -jnp.inf), axis=1)
    dist_an = jnp.min(jnp.where(is_pos, jnp.inf, dist), axis=1)
    p_inds = jnp.argmax(jnp.where(is_pos, dist, -jnp.inf), axis=1)
    n_inds = jnp.argmin(jnp.where(is_pos, jnp.inf, dist), axis=1)

    lf = jnp.transpose(local_features.astype(jnp.float32), (0, 2, 1))  # (N, M, C)

    def batch_local_dist(a, b):
        d2 = jnp.sum((a[:, :, None, :] - b[:, None, :, :]) ** 2, axis=-1)
        d = jnp.sqrt(jnp.maximum(d2, 1e-12))
        g = (jnp.exp(d) - 1.0) / (jnp.exp(d) + 1.0)
        mm = a.shape[1]
        dp = [[None] * mm for _ in range(mm)]
        for i in range(mm):
            for j in range(mm):
                if i == 0 and j == 0:
                    dp[i][j] = g[:, i, j]
                elif i == 0:
                    dp[i][j] = dp[i][j - 1] + g[:, i, j]
                elif j == 0:
                    dp[i][j] = dp[i - 1][j] + g[:, i, j]
                else:
                    dp[i][j] = jnp.minimum(dp[i - 1][j], dp[i][j - 1]) + g[:, i, j]
        return dp[-1][-1]

    local_ap = batch_local_dist(lf, lf[p_inds])
    local_an = batch_local_dist(lf, lf[n_inds])
    gl = jnp.mean(jnp.maximum(dist_ap - dist_an + margin, 0.0))
    ll = jnp.mean(jnp.maximum(local_ap - local_an + margin, 0.0))
    return gl, ll


if __name__ == "__main__":
    key = jax.random.PRNGKey(0)
    N, D, C, M = 8, 32, 16, 8   # 4 identities x 2 samples each
    k1, k2 = jax.random.split(key)
    inputs = jax.random.normal(k1, (N, D), dtype=jnp.float32)
    local_features = jax.random.normal(k2, (N, C, M), dtype=jnp.float32)
    targets = jnp.array([0, 0, 1, 1, 2, 2, 3, 3], dtype=jnp.int32)

    global_loss, local_loss = triplet_loss_aligned_reid(
        inputs, targets, local_features, MARGIN)
    jax.block_until_ready((global_loss, local_loss))

    ref_gl, ref_ll = _reference_forward(inputs, targets, local_features, MARGIN)
    if (abs(float(global_loss) - float(ref_gl)) > 1e-3
            or abs(float(local_loss) - float(ref_ll)) > 1e-3):
        raise RuntimeError(
            "mismatch vs pure-JAX reference: kernel=(%.6f, %.6f) ref=(%.6f, %.6f)"
            % (float(global_loss), float(local_loss), float(ref_gl), float(ref_ll)))
    print("KERNEL_OK")
</pallas_src>

<mosaic_0001>
module attributes {stable_mosaic.version = 11 : i64} {
  func.func @_fused_triplet_kernel(%arg0: memref<8x32xf32, #tpu.memory_space<vmem>>, %arg1: memref<1x8xi32, #tpu.memory_space<vmem>>, %arg2: memref<8x1xi32, #tpu.memory_space<vmem>>, %arg3: memref<128x8xf32, #tpu.memory_space<vmem>>, %arg4: memref<2x8xf32, #tpu.memory_space<vmem>>) attributes {dimension_semantics = [], scalar_prefetch = 0 : i64, scratch_operands = 0 : i64, tpu.core_type = #tpu.core_type<tc>} {
    %c0 = arith.constant 0 : index
    %c0_0 = arith.constant 0 : index
    %0 = vector.load %arg0[%c0, %c0_0] : memref<8x32xf32, #tpu.memory_space<vmem>>, vector<8x32xf32>
    %1 = arith.mulf %0, %0 : vector<8x32xf32>
    %cst = arith.constant dense<0.000000e+00> : vector<8xf32>
    %2 = vector.multi_reduction <add>, %1, %cst [1] : vector<8x32xf32> to vector<8xf32>
    %3 = vector.shape_cast %2 : vector<8xf32> to vector<8x1xf32>
    %4 = math.sqrt %3 : vector<8x1xf32>
    %cst_1 = arith.constant 9.99999996E-13 : f32
    %5 = vector.broadcast %cst_1 : f32 to vector<8x1xf32>
    %6 = arith.addf %4, %5 : vector<8x1xf32>
    %7 = vector.broadcast %6 : vector<8x1xf32> to vector<8x32xf32>
    %8 = arith.divf %0, %7 : vector<8x32xf32>
    %cst_2 = arith.constant dense<0.000000e+00> : vector<8x8xf32>
    %9 = tpu.matmul %8, %8, %cst_2 {dimension_numbers = #tpu.dot_dimension_numbers<[1], [1], [0], [0], [0, 0, 1, 0], [], []>} : vector<8x32xf32>, vector<8x32xf32>, vector<8x8xf32> -> vector<8x8xf32>
    %cst_3 = arith.constant 2.000000e+00 : f32
    %10 = vector.broadcast %cst_3 : f32 to vector<8x8xf32>
    %11 = arith.mulf %10, %9 : vector<8x8xf32>
    %cst_4 = arith.constant 2.000000e+00 : f32
    %12 = vector.broadcast %cst_4 : f32 to vector<8x8xf32>
    %13 = arith.subf %12, %11 : vector<8x8xf32>
    %cst_5 = arith.constant 9.99999996E-13 : f32
    %14 = vector.broadcast %cst_5 : f32 to vector<8x8xf32>
    %15 = arith.maximumf %13, %14 : vector<8x8xf32>
    %16 = math.sqrt %15 : vector<8x8xf32>
    %c0_6 = arith.constant 0 : index
    %c0_7 = arith.constant 0 : index
    %17 = vector.load %arg2[%c0_6, %c0_7] : memref<8x1xi32, #tpu.memory_space<vmem>>, vector<8x1xi32>
    %c0_8 = arith.constant 0 : index
    %c0_9 = arith.constant 0 : index
    %18 = vector.load %arg1[%c0_8, %c0_9] : memref<1x8xi32, #tpu.memory_space<vmem>>, vector<1x8xi32>
    %19 = vector.broadcast %17 : vector<8x1xi32> to vector<8x8xi32>
    %20 = vector.broadcast %18 : vector<1x8xi32> to vector<8x8xi32>
    %21 = arith.cmpi eq, %19, %20 : vector<8x8xi32>
    %cst_10 = arith.constant 0.000000e+00 : f32
    %cst_11 = arith.constant 1.000000e+30 : f32
    %22 = arith.subf %cst_10, %cst_11 : f32
    %23 = vector.broadcast %22 : f32 to vector<8x8xf32>
    %24 = arith.select %21, %16, %23 : vector<8x8xi1>, vector<8x8xf32>
    %cst_12 = arith.constant 1.000000e+30 : f32
    %25 = vector.broadcast %cst_12 : f32 to vector<8x8xf32>
    %26 = arith.select %21, %25, %16 : vector<8x8xi1>, vector<8x8xf32>
    %cst_13 = arith.constant dense<0xFF800000> : vector<8xf32>
    %27 = vector.multi_reduction <maximumf>, %24, %cst_13 [0] : vector<8x8xf32> to vector<8xf32>
    %28 = vector.shape_cast %27 : vector<8xf32> to vector<1x8xf32>
    %cst_14 = arith.constant dense<0x7F800000> : vector<8xf32>
    %29 = vector.multi_reduction <minimumf>, %26, %cst_14 [0] : vector<8x8xf32> to vector<8xf32>
    %30 = vector.shape_cast %29 : vector<8xf32> to vector<1x8xf32>
    %31 = tpu.iota {dimensions = array<i32: 0>} : vector<8x8xi32>
    %32 = arith.sitofp %31 : vector<8x8xi32> to vector<8x8xf32>
    %33 = vector.broadcast %28 : vector<1x8xf32> to vector<8x8xf32>
    %34 = arith.cmpf oeq, %24, %33 : vector<8x8xf32>
    %35 = arith.andi %21, %34 : vector<8x8xi1>
    %cst_15 = arith.constant 8.000000e+00 : f32
    %36 = vector.broadcast %cst_15 : f32 to vector<8x8xf32>
    %37 = arith.select %35, %32, %36 : vector<8x8xi1>, vector<8x8xf32>
    %cst_16 = arith.constant dense<0x7F800000> : vector<8xf32>
    %38 = vector.multi_reduction <minimumf>, %37, %cst_16 [0] : vector<8x8xf32> to vector<8xf32>
    %39 = vector.shape_cast %38 : vector<8xf32> to vector<1x8xf32>
    %cst_17 = arith.constant dense<true> : vector<8x8xi1>
    %40 = arith.xori %21, %cst_17 : vector<8x8xi1>
    %41 = vector.broadcast %30 : vector<1x8xf32> to vector<8x8xf32>
    %42 = arith.cmpf oeq, %26, %41 : vector<8x8xf32>
    %43 = arith.andi %40, %42 : vector<8x8xi1>
    %cst_18 = arith.constant 8.000000e+00 : f32
    %44 = vector.broadcast %cst_18 : f32 to vector<8x8xf32>
    %45 = arith.select %43, %32, %44 : vector<8x8xi1>, vector<8x8xf32>
    %cst_19 = arith.constant dense<0x7F800000> : vector<8xf32>
    %46 = vector.multi_reduction <minimumf>, %45, %cst_19 [0] : vector<8x8xf32> to vector<8xf32>
    %47 = vector.shape_cast %46 : vector<8xf32> to vector<1x8xf32>
    %48 = vector.broadcast %39 : vector<1x8xf32> to vector<8x8xf32>
    %49 = arith.cmpf oeq, %32, %48 : vector<8x8xf32>
    %50 = arith.extui %49 : vector<8x8xi1> to vector<8x8xi32>
    %51 = arith.sitofp %50 : vector<8x8xi32> to vector<8x8xf32>
    %52 = vector.broadcast %47 : vector<1x8xf32> to vector<8x8xf32>
    %53 = arith.cmpf oeq, %32, %52 : vector<8x8xf32>
    %54 = arith.extui %53 : vector<8x8xi1> to vector<8x8xi32>
    %55 = arith.sitofp %54 : vector<8x8xi32> to vector<8x8xf32>
    %c0_20 = arith.constant 0 : index
    %c0_21 = arith.constant 0 : index
    %56 = vector.load %arg3[%c0_20, %c0_21] : memref<128x8xf32, #tpu.memory_space<vmem>>, vector<128x8xf32>
    %cst_22 = arith.constant dense<0.000000e+00> : vector<128x8xf32>
    %57 = tpu.matmul %56, %51, %cst_22 {dimension_numbers = #tpu.dot_dimension_numbers<[1], [0], [0], [1], [0, 0, 1, 1], [], []>} : vector<128x8xf32>, vector<8x8xf32>, vector<128x8xf32> -> vector<128x8xf32>
    %cst_23 = arith.constant dense<0.000000e+00> : vector<128x8xf32>
    %58 = tpu.matmul %56, %55, %cst_23 {dimension_numbers = #tpu.dot_dimension_numbers<[1], [0], [0], [1], [0, 0, 1, 1], [], []>} : vector<128x8xf32>, vector<8x8xf32>, vector<128x8xf32> -> vector<128x8xf32>
    %59 = vector.extract_strided_slice %57 {offsets = [0, 0], sizes = [16, 8], strides = [1, 1]} : vector<128x8xf32> to vector<16x8xf32>
    %60 = vector.extract_strided_slice %58 {offsets = [0, 0], sizes = [16, 8], strides = [1, 1]} : vector<128x8xf32> to vector<16x8xf32>
    %61 = vector.extract_strided_slice %57 {offsets = [16, 0], sizes = [16, 8], strides = [1, 1]} : vector<128x8xf32> to vector<16x8xf32>
    %62 = vector.extract_strided_slice %58 {offsets = [16, 0], sizes = [16, 8], strides = [1, 1]} : vector<128x8xf32> to vector<16x8xf32>
    %63 = vector.extract_strided_slice %57 {offsets = [32, 0], sizes = [16, 8], strides = [1, 1]} : vector<128x8xf32> to vector<16x8xf32>
    %64 = vector.extract_strided_slice %58 {offsets = [32, 0], sizes = [16, 8], strides = [1, 1]} : vector<128x8xf32> to vector<16x8xf32>
    %65 = vector.extract_strided_slice %57 {offsets = [48, 0], sizes = [16, 8], strides = [1, 1]} : vector<128x8xf32> to vector<16x8xf32>
    %66 = vector.extract_strided_slice %58 {offsets = [48, 0], sizes = [16, 8], strides = [1, 1]} : vector<128x8xf32> to vector<16x8xf32>
    %67 = vector.extract_strided_slice %57 {offsets = [64, 0], sizes = [16, 8], strides = [1, 1]} : vector<128x8xf32> to vector<16x8xf32>
    %68 = vector.extract_strided_slice %58 {offsets = [64, 0], sizes = [16, 8], strides = [1, 1]} : vector<128x8xf32> to vector<16x8xf32>
    %69 = vector.extract_strided_slice %57 {offsets = [80, 0], sizes = [16, 8], strides = [1, 1]} : vector<128x8xf32> to vector<16x8xf32>
    %70 = vector.extract_strided_slice %58 {offsets = [80, 0], sizes = [16, 8], strides = [1, 1]} : vector<128x8xf32> to vector<16x8xf32>
    %71 = vector.extract_strided_slice %57 {offsets = [96, 0], sizes = [16, 8], strides = [1, 1]} : vector<128x8xf32> to vector<16x8xf32>
    %72 = vector.extract_strided_slice %58 {offsets = [96, 0], sizes = [16, 8], strides = [1, 1]} : vector<128x8xf32> to vector<16x8xf32>
    %73 = vector.extract_strided_slice %57 {offsets = [112, 0], sizes = [16, 8], strides = [1, 1]} : vector<128x8xf32> to vector<16x8xf32>
    %74 = vector.extract_strided_slice %58 {offsets = [112, 0], sizes = [16, 8], strides = [1, 1]} : vector<128x8xf32> to vector<16x8xf32>
    %75 = tpu.concatenate %59, %60, %61, %62, %63, %64, %65, %66, %67, %68, %69, %70, %71, %72, %73, %74 in 0 : vector<16x8xf32>, vector<16x8xf32>, vector<16x8xf32>, vector<16x8xf32>, vector<16x8xf32>, vector<16x8xf32>, vector<16x8xf32>, vector<16x8xf32>, vector<16x8xf32>, vector<16x8xf32>, vector<16x8xf32>, vector<16x8xf32>, vector<16x8xf32>, vector<16x8xf32>, vector<16x8xf32>, vector<16x8xf32> -> vector<256x8xf32>
    %76 = vector.shape_cast %75 : vector<256x8xf32> to vector<16x16x8xf32>
    %77 = vector.extract_strided_slice %56 {offsets = [0, 0], sizes = [16, 8], strides = [1, 1]} : vector<128x8xf32> to vector<16x8xf32>
    %78 = vector.shape_cast %77 : vector<16x8xf32> to vector<1x16x8xf32>
    %79 = vector.broadcast %78 : vector<1x16x8xf32> to vector<16x16x8xf32>
    %80 = arith.subf %76, %79 : vector<16x16x8xf32>
    %81 = arith.mulf %80, %80 : vector<16x16x8xf32>
    %cst_24 = arith.constant dense<0.000000e+00> : vector<16x8xf32>
    %82 = vector.multi_reduction <add>, %81, %cst_24 [1] : vector<16x16x8xf32> to vector<16x8xf32>
    %83 = vector.extract_strided_slice %56 {offsets = [16, 0], sizes = [16, 8], strides = [1, 1]} : vector<128x8xf32> to vector<16x8xf32>
    %84 = vector.shape_cast %83 : vector<16x8xf32> to vector<1x16x8xf32>
    %85 = vector.broadcast %84 : vector<1x16x8xf32> to vector<16x16x8xf32>
    %86 = arith.subf %76, %85 : vector<16x16x8xf32>
    %87 = arith.mulf %86, %86 : vector<16x16x8xf32>
    %cst_25 = arith.constant dense<0.000000e+00> : vector<16x8xf32>
    %88 = vector.multi_reduction <add>, %87, %cst_25 [1] : vector<16x16x8xf32> to vector<16x8xf32>
    %89 = vector.extract_strided_slice %56 {offsets = [32, 0], sizes = [16, 8], strides = [1, 1]} : vector<128x8xf32> to vector<16x8xf32>
    %90 = vector.shape_cast %89 : vector<16x8xf32> to vector<1x16x8xf32>
    %91 = vector.broadcast %90 : vector<1x16x8xf32> to vector<16x16x8xf32>
    %92 = arith.subf %76, %91 : vector<16x16x8xf32>
    %93 = arith.mulf %92, %92 : vector<16x16x8xf32>
    %cst_26 = arith.constant dense<0.000000e+00> : vector<16x8xf32>
    %94 = vector.multi_reduction <add>, %93, %cst_26 [1] : vector<16x16x8xf32> to vector<16x8xf32>
    %95 = vector.extract_strided_slice %56 {offsets = [48, 0], sizes = [16, 8], strides = [1, 1]} : vector<128x8xf32> to vector<16x8xf32>
    %96 = vector.shape_cast %95 : vector<16x8xf32> to vector<1x16x8xf32>
    %97 = vector.broadcast %96 : vector<1x16x8xf32> to vector<16x16x8xf32>
    %98 = arith.subf %76, %97 : vector<16x16x8xf32>
    %99 = arith.mulf %98, %98 : vector<16x16x8xf32>
    %cst_27 = arith.constant dense<0.000000e+00> : vector<16x8xf32>
    %100 = vector.multi_reduction <add>, %99, %cst_27 [1] : vector<16x16x8xf32> to vector<16x8xf32>
    %101 = vector.extract_strided_slice %56 {offsets = [64, 0], sizes = [16, 8], strides = [1, 1]} : vector<128x8xf32> to vector<16x8xf32>
    %102 = vector.shape_cast %101 : vector<16x8xf32> to vector<1x16x8xf32>
    %103 = vector.broadcast %102 : vector<1x16x8xf32> to vector<16x16x8xf32>
    %104 = arith.subf %76, %103 : vector<16x16x8xf32>
    %105 = arith.mulf %104, %104 : vector<16x16x8xf32>
    %cst_28 = arith.constant dense<0.000000e+00> : vector<16x8xf32>
    %106 = vector.multi_reduction <add>, %105, %cst_28 [1] : vector<16x16x8xf32> to vector<16x8xf32>
    %107 = vector.extract_strided_slice %56 {offsets = [80, 0], sizes = [16, 8], strides = [1, 1]} : vector<128x8xf32> to vector<16x8xf32>
    %108 = vector.shape_cast %107 : vector<16x8xf32> to vector<1x16x8xf32>
    %109 = vector.broadcast %108 : vector<1x16x8xf32> to vector<16x16x8xf32>
    %110 = arith.subf %76, %109 : vector<16x16x8xf32>
    %111 = arith.mulf %110, %110 : vector<16x16x8xf32>
    %cst_29 = arith.constant dense<0.000000e+00> : vector<16x8xf32>
    %112 = vector.multi_reduction <add>, %111, %cst_29 [1] : vector<16x16x8xf32> to vector<16x8xf32>
    %113 = vector.extract_strided_slice %56 {offsets = [96, 0], sizes = [16, 8], strides = [1, 1]} : vector<128x8xf32> to vector<16x8xf32>
    %114 = vector.shape_cast %113 : vector<16x8xf32> to vector<1x16x8xf32>
    %115 = vector.broadcast %114 : vector<1x16x8xf32> to vector<16x16x8xf32>
    %116 = arith.subf %76, %115 : vector<16x16x8xf32>
    %117 = arith.mulf %116, %116 : vector<16x16x8xf32>
    %cst_30 = arith.constant dense<0.000000e+00> : vector<16x8xf32>
    %118 = vector.multi_reduction <add>, %117, %cst_30 [1] : vector<16x16x8xf32> to vector<16x8xf32>
    %119 = vector.extract_strided_slice %56 {offsets = [112, 0], sizes = [16, 8], strides = [1, 1]} : vector<128x8xf32> to vector<16x8xf32>
    %120 = vector.shape_cast %119 : vector<16x8xf32> to vector<1x16x8xf32>
    %121 = vector.broadcast %120 : vector<1x16x8xf32> to vector<16x16x8xf32>
    %122 = arith.subf %76, %121 : vector<16x16x8xf32>
    %123 = arith.mulf %122, %122 : vector<16x16x8xf32>
    %cst_31 = arith.constant dense<0.000000e+00> : vector<16x8xf32>
    %124 = vector.multi_reduction <add>, %123, %cst_31 [1] : vector<16x16x8xf32> to vector<16x8xf32>
    %125 = tpu.concatenate %82, %88, %94, %100, %106, %112, %118, %124 in 0 : vector<16x8xf32>, vector<16x8xf32>, vector<16x8xf32>, vector<16x8xf32>, vector<16x8xf32>, vector<16x8xf32>, vector<16x8xf32>, vector<16x8xf32> -> vector<128x8xf32>
    %cst_32 = arith.constant 9.99999996E-13 : f32
    %126 = vector.broadcast %cst_32 : f32 to vector<128x8xf32>
    %127 = arith.maximumf %125, %126 : vector<128x8xf32>
    %128 = math.sqrt %127 : vector<128x8xf32>
    %cst_33 = arith.constant 5.000000e-01 : f32
    %129 = vector.broadcast %cst_33 : f32 to vector<128x8xf32>
    %130 = arith.mulf %129, %128 : vector<128x8xf32>
    %131 = math.tanh %130 : vector<128x8xf32>
    %132 = vector.extract_strided_slice %131 {offsets = [0, 0], sizes = [2, 8], strides = [1, 1]} : vector<128x8xf32> to vector<2x8xf32>
    %133 = vector.extract_strided_slice %131 {offsets = [2, 0], sizes = [2, 8], strides = [1, 1]} : vector<128x8xf32> to vector<2x8xf32>
    %134 = arith.addf %132, %133 : vector<2x8xf32>
    %135 = vector.extract_strided_slice %131 {offsets = [4, 0], sizes = [2, 8], strides = [1, 1]} : vector<128x8xf32> to vector<2x8xf32>
    %136 = arith.addf %134, %135 : vector<2x8xf32>
    %137 = vector.extract_strided_slice %131 {offsets = [6, 0], sizes = [2, 8], strides = [1, 1]} : vector<128x8xf32> to vector<2x8xf32>
    %138 = arith.addf %136, %137 : vector<2x8xf32>
    %139 = vector.extract_strided_slice %131 {offsets = [8, 0], sizes = [2, 8], strides = [1, 1]} : vector<128x8xf32> to vector<2x8xf32>
    %140 = arith.addf %138, %139 : vector<2x8xf32>
    %141 = vector.extract_strided_slice %131 {offsets = [10, 0], sizes = [2, 8], strides = [1, 1]} : vector<128x8xf32> to vector<2x8xf32>
    %142 = arith.addf %140, %141 : vector<2x8xf32>
    %143 = vector.extract_strided_slice %131 {offsets = [12, 0], sizes = [2, 8], strides = [1, 1]} : vector<128x8xf32> to vector<2x8xf32>
    %144 = arith.addf %142, %143 : vector<2x8xf32>
    %145 = vector.extract_strided_slice %131 {offsets = [14, 0], sizes = [2, 8], strides = [1, 1]} : vector<128x8xf32> to vector<2x8xf32>
    %146 = arith.addf %144, %145 : vector<2x8xf32>
    %147 = vector.extract_strided_slice %131 {offsets = [16, 0], sizes = [2, 8], strides = [1, 1]} : vector<128x8xf32> to vector<2x8xf32>
    %148 = arith.addf %132, %147 : vector<2x8xf32>
    %149 = vector.extract_strided_slice %131 {offsets = [18, 0], sizes = [2, 8], strides = [1, 1]} : vector<128x8xf32> to vector<2x8xf32>
    %150 = arith.minimumf %134, %148 : vector<2x8xf32>
    %151 = arith.addf %150, %149 : vector<2x8xf32>
    %152 = vector.extract_strided_slice %131 {offsets = [20, 0], sizes = [2, 8], strides = [1, 1]} : vector<128x8xf32> to vector<2x8xf32>
    %153 = arith.minimumf %136, %151 : vector<2x8xf32>
    %154 = arith.addf %153, %152 : vector<2x8xf32>
    %155 = vector.extract_strided_slice %131 {offsets = [22, 0], sizes = [2, 8], strides = [1, 1]} : vector<128x8xf32> to vector<2x8xf32>
    %156 = arith.minimumf %138, %154 : vector<2x8xf32>
    %157 = arith.addf %156, %155 : vector<2x8xf32>
    %158 = vector.extract_strided_slice %131 {offsets = [24, 0], sizes = [2, 8], strides = [1, 1]} : vector<128x8xf32> to vector<2x8xf32>
    %159 = arith.minimumf %140, %157 : vector<2x8xf32>
    %160 = arith.addf %159, %158 : vector<2x8xf32>
    %161 = vector.extract_strided_slice %131 {offsets = [26, 0], sizes = [2, 8], strides = [1, 1]} : vector<128x8xf32> to vector<2x8xf32>
    %162 = arith.minimumf %142, %160 : vector<2x8xf32>
    %163 = arith.addf %162, %161 : vector<2x8xf32>
    %164 = vector.extract_strided_slice %131 {offsets = [28, 0], sizes = [2, 8], strides = [1, 1]} : vector<128x8xf32> to vector<2x8xf32>
    %165 = arith.minimumf %144, %163 : vector<2x8xf32>
    %166 = arith.addf %165, %164 : vector<2x8xf32>
    %167 = vector.extract_strided_slice %131 {offsets = [30, 0], sizes = [2, 8], strides = [1, 1]} : vector<128x8xf32> to vector<2x8xf32>
    %168 = arith.minimumf %146, %166 : vector<2x8xf32>
    %169 = arith.addf %168, %167 : vector<2x8xf32>
    %170 = vector.extract_strided_slice %131 {offsets = [32, 0], sizes = [2, 8], strides = [1, 1]} : vector<128x8xf32> to vector<2x8xf32>
    %171 = arith.addf %148, %170 : vector<2x8xf32>
    %172 = vector.extract_strided_slice %131 {offsets = [34, 0], sizes = [2, 8], strides = [1, 1]} : vector<128x8xf32> to vector<2x8xf32>
    %173 = arith.minimumf %151, %171 : vector<2x8xf32>
    %174 = arith.addf %173, %172 : vector<2x8xf32>
    %175 = vector.extract_strided_slice %131 {offsets = [36, 0], sizes = [2, 8], strides = [1, 1]} : vector<128x8xf32> to vector<2x8xf32>
    %176 = arith.minimumf %154, %174 : vector<2x8xf32>
    %177 = arith.addf %176, %175 : vector<2x8xf32>
    %178 = vector.extract_strided_slice %131 {offsets = [38, 0], sizes = [2, 8], strides = [1, 1]} : vector<128x8xf32> to vector<2x8xf32>
    %179 = arith.minimumf %157, %177 : vector<2x8xf32>
    %180 = arith.addf %179, %178 : vector<2x8xf32>
    %181 = vector.extract_strided_slice %131 {offsets = [40, 0], sizes = [2, 8], strides = [1, 1]} : vector<128x8xf32> to vector<2x8xf32>
    %182 = arith.minimumf %160, %180 : vector<2x8xf32>
    %183 = arith.addf %182, %181 : vector<2x8xf32>
    %184 = vector.extract_strided_slice %131 {offsets = [42, 0], sizes = [2, 8], strides = [1, 1]} : vector<128x8xf32> to vector<2x8xf32>
    %185 = arith.minimumf %163, %183 : vector<2x8xf32>
    %186 = arith.addf %185, %184 : vector<2x8xf32>
    %187 = vector.extract_strided_slice %131 {offsets = [44, 0], sizes = [2, 8], strides = [1, 1]} : vector<128x8xf32> to vector<2x8xf32>
    %188 = arith.minimumf %166, %186 : vector<2x8xf32>
    %189 = arith.addf %188, %187 : vector<2x8xf32>
    %190 = vector.extract_strided_slice %131 {offsets = [46, 0], sizes = [2, 8], strides = [1, 1]} : vector<128x8xf32> to vector<2x8xf32>
    %191 = arith.minimumf %169, %189 : vector<2x8xf32>
    %192 = arith.addf %191, %190 : vector<2x8xf32>
    %193 = vector.extract_strided_slice %131 {offsets = [48, 0], sizes = [2, 8], strides = [1, 1]} : vector<128x8xf32> to vector<2x8xf32>
    %194 = arith.addf %171, %193 : vector<2x8xf32>
    %195 = vector.extract_strided_slice %131 {offsets = [50, 0], sizes = [2, 8], strides = [1, 1]} : vector<128x8xf32> to vector<2x8xf32>
    %196 = arith.minimumf %174, %194 : vector<2x8xf32>
    %197 = arith.addf %196, %195 : vector<2x8xf32>
    %198 = vector.extract_strided_slice %131 {offsets = [52, 0], sizes = [2, 8], strides = [1, 1]} : vector<128x8xf32> to vector<2x8xf32>
    %199 = arith.minimumf %177, %197 : vector<2x8xf32>
    %200 = arith.addf %199, %198 : vector<2x8xf32>
    %201 = vector.extract_strided_slice %131 {offsets = [54, 0], sizes = [2, 8], strides = [1, 1]} : vector<128x8xf32> to vector<2x8xf32>
    %202 = arith.minimumf %180, %200 : vector<2x8xf32>
    %203 = arith.addf %202, %201 : vector<2x8xf32>
    %204 = vector.extract_strided_slice %131 {offsets = [56, 0], sizes = [2, 8], strides = [1, 1]} : vector<128x8xf32> to vector<2x8xf32>
    %205 = arith.minimumf %183, %203 : vector<2x8xf32>
    %206 = arith.addf %205, %204 : vector<2x8xf32>
    %207 = vector.extract_strided_slice %131 {offsets = [58, 0], sizes = [2, 8], strides = [1, 1]} : vector<128x8xf32> to vector<2x8xf32>
    %208 = arith.minimumf %186, %206 : vector<2x8xf32>
    %209 = arith.addf %208, %207 : vector<2x8xf32>
    %210 = vector.extract_strided_slice %131 {offsets = [60, 0], sizes = [2, 8], strides = [1, 1]} : vector<128x8xf32> to vector<2x8xf32>
    %211 = arith.minimumf %189, %209 : vector<2x8xf32>
    %212 = arith.addf %211, %210 : vector<2x8xf32>
    %213 = vector.extract_strided_slice %131 {offsets = [62, 0], sizes = [2, 8], strides = [1, 1]} : vector<128x8xf32> to vector<2x8xf32>
    %214 = arith.minimumf %192, %212 : vector<2x8xf32>
    %215 = arith.addf %214, %213 : vector<2x8xf32>
    %216 = vector.extract_strided_slice %131 {offsets = [64, 0], sizes = [2, 8], strides = [1, 1]} : vector<128x8xf32> to vector<2x8xf32>
    %217 = arith.addf %194, %216 : vector<2x8xf32>
    %218 = vector.extract_strided_slice %131 {offsets = [66, 0], sizes = [2, 8], strides = [1, 1]} : vector<128x8xf32> to vector<2x8xf32>
    %219 = arith.minimumf %197, %217 : vector<2x8xf32>
    %220 = arith.addf %219, %218 : vector<2x8xf32>
    %221 = vector.extract_strided_slice %131 {offsets = [68, 0], sizes = [2, 8], strides = [1, 1]} : vector<128x8xf32> to vector<2x8xf32>
    %222 = arith.minimumf %200, %220 : vector<2x8xf32>
    %223 = arith.addf %222, %221 : vector<2x8xf32>
    %224 = vector.extract_strided_slice %131 {offsets = [70, 0], sizes = [2, 8], strides = [1, 1]} : vector<128x8xf32> to vector<2x8xf32>
    %225 = arith.minimumf %203, %223 : vector<2x8xf32>
    %226 = arith.addf %225, %224 : vector<2x8xf32>
    %227 = vector.extract_strided_slice %131 {offsets = [72, 0], sizes = [2, 8], strides = [1, 1]} : vector<128x8xf32> to vector<2x8xf32>
    %228 = arith.minimumf %206, %226 : vector<2x8xf32>
    %229 = arith.addf %228, %227 : vector<2x8xf32>
    %230 = vector.extract_strided_slice %131 {offsets = [74, 0], sizes = [2, 8], strides = [1, 1]} : vector<128x8xf32> to vector<2x8xf32>
    %231 = arith.minimumf %209, %229 : vector<2x8xf32>
    %232 = arith.addf %231, %230 : vector<2x8xf32>
    %233 = vector.extract_strided_slice %131 {offsets = [76, 0], sizes = [2, 8], strides = [1, 1]} : vector<128x8xf32> to vector<2x8xf32>
    %234 = arith.minimumf %212, %232 : vector<2x8xf32>
    %235 = arith.addf %234, %233 : vector<2x8xf32>
    %236 = vector.extract_strided_slice %131 {offsets = [78, 0], sizes = [2, 8], strides = [1, 1]} : vector<128x8xf32> to vector<2x8xf32>
    %237 = arith.minimumf %215, %235 : vector<2x8xf32>
    %238 = arith.addf %237, %236 : vector<2x8xf32>
    %239 = vector.extract_strided_slice %131 {offsets = [80, 0], sizes = [2, 8], strides = [1, 1]} : vector<128x8xf32> to vector<2x8xf32>
    %240 = arith.addf %217, %239 : vector<2x8xf32>
    %241 = vector.extract_strided_slice %131 {offsets = [82, 0], sizes = [2, 8], strides = [1, 1]} : vector<128x8xf32> to vector<2x8xf32>
    %242 = arith.minimumf %220, %240 : vector<2x8xf32>
    %243 = arith.addf %242, %241 : vector<2x8xf32>
    %244 = vector.extract_strided_slice %131 {offsets = [84, 0], sizes = [2, 8], strides = [1, 1]} : vector<128x8xf32> to vector<2x8xf32>
    %245 = arith.minimumf %223, %243 : vector<2x8xf32>
    %246 = arith.addf %245, %244 : vector<2x8xf32>
    %247 = vector.extract_strided_slice %131 {offsets = [86, 0], sizes = [2, 8], strides = [1, 1]} : vector<128x8xf32> to vector<2x8xf32>
    %248 = arith.minimumf %226, %246 : vector<2x8xf32>
    %249 = arith.addf %248, %247 : vector<2x8xf32>
    %250 = vector.extract_strided_slice %131 {offsets = [88, 0], sizes = [2, 8], strides = [1, 1]} : vector<128x8xf32> to vector<2x8xf32>
    %251 = arith.minimumf %229, %249 : vector<2x8xf32>
    %252 = arith.addf %251, %250 : vector<2x8xf32>
    %253 = vector.extract_strided_slice %131 {offsets = [90, 0], sizes = [2, 8], strides = [1, 1]} : vector<128x8xf32> to vector<2x8xf32>
    %254 = arith.minimumf %232, %252 : vector<2x8xf32>
    %255 = arith.addf %254, %253 : vector<2x8xf32>
    %256 = vector.extract_strided_slice %131 {offsets = [92, 0], sizes = [2, 8], strides = [1, 1]} : vector<128x8xf32> to vector<2x8xf32>
    %257 = arith.minimumf %235, %255 : vector<2x8xf32>
    %258 = arith.addf %257, %256 : vector<2x8xf32>
    %259 = vector.extract_strided_slice %131 {offsets = [94, 0], sizes = [2, 8], strides = [1, 1]} : vector<128x8xf32> to vector<2x8xf32>
    %260 = arith.minimumf %238, %258 : vector<2x8xf32>
    %261 = arith.addf %260, %259 : vector<2x8xf32>
    %262 = vector.extract_strided_slice %131 {offsets = [96, 0], sizes = [2, 8], strides = [1, 1]} : vector<128x8xf32> to vector<2x8xf32>
    %263 = arith.addf %240, %262 : vector<2x8xf32>
    %264 = vector.extract_strided_slice %131 {offsets = [98, 0], sizes = [2, 8], strides = [1, 1]} : vector<128x8xf32> to vector<2x8xf32>
    %265 = arith.minimumf %243, %263 : vector<2x8xf32>
    %266 = arith.addf %265, %264 : vector<2x8xf32>
    %267 = vector.extract_strided_slice %131 {offsets = [100, 0], sizes = [2, 8], strides = [1, 1]} : vector<128x8xf32> to vector<2x8xf32>
    %268 = arith.minimumf %246, %266 : vector<2x8xf32>
    %269 = arith.addf %268, %267 : vector<2x8xf32>
    %270 = vector.extract_strided_slice %131 {offsets = [102, 0], sizes = [2, 8], strides = [1, 1]} : vector<128x8xf32> to vector<2x8xf32>
    %271 = arith.minimumf %249, %269 : vector<2x8xf32>
    %272 = arith.addf %271, %270 : vector<2x8xf32>
    %273 = vector.extract_strided_slice %131 {offsets = [104, 0], sizes = [2, 8], strides = [1, 1]} : vector<128x8xf32> to vector<2x8xf32>
    %274 = arith.minimumf %252, %272 : vector<2x8xf32>
    %275 = arith.addf %274, %273 : vector<2x8xf32>
    %276 = vector.extract_strided_slice %131 {offsets = [106, 0], sizes = [2, 8], strides = [1, 1]} : vector<128x8xf32> to vector<2x8xf32>
    %277 = arith.minimumf %255, %275 : vector<2x8xf32>
    %278 = arith.addf %277, %276 : vector<2x8xf32>
    %279 = vector.extract_strided_slice %131 {offsets = [108, 0], sizes = [2, 8], strides = [1, 1]} : vector<128x8xf32> to vector<2x8xf32>
    %280 = arith.minimumf %258, %278 : vector<2x8xf32>
    %281 = arith.addf %280, %279 : vector<2x8xf32>
    %282 = vector.extract_strided_slice %131 {offsets = [110, 0], sizes = [2, 8], strides = [1, 1]} : vector<128x8xf32> to vector<2x8xf32>
    %283 = arith.minimumf %261, %281 : vector<2x8xf32>
    %284 = arith.addf %283, %282 : vector<2x8xf32>
    %285 = vector.extract_strided_slice %131 {offsets = [112, 0], sizes = [2, 8], strides = [1, 1]} : vector<128x8xf32> to vector<2x8xf32>
    %286 = arith.addf %263, %285 : vector<2x8xf32>
    %287 = vector.extract_strided_slice %131 {offsets = [114, 0], sizes = [2, 8], strides = [1, 1]} : vector<128x8xf32> to vector<2x8xf32>
    %288 = arith.minimumf %266, %286 : vector<2x8xf32>
    %289 = arith.addf %288, %287 : vector<2x8xf32>
    %290 = vector.extract_strided_slice %131 {offsets = [116, 0], sizes = [2, 8], strides = [1, 1]} : vector<128x8xf32> to vector<2x8xf32>
    %291 = arith.minimumf %269, %289 : vector<2x8xf32>
    %292 = arith.addf %291, %290 : vector<2x8xf32>
    %293 = vector.extract_strided_slice %131 {offsets = [118, 0], sizes = [2, 8], strides = [1, 1]} : vector<128x8xf32> to vector<2x8xf32>
    %294 = arith.minimumf %272, %292 : vector<2x8xf32>
    %295 = arith.addf %294, %293 : vector<2x8xf32>
    %296 = vector.extract_strided_slice %131 {offsets = [120, 0], sizes = [2, 8], strides = [1, 1]} : vector<128x8xf32> to vector<2x8xf32>
    %297 = arith.minimumf %275, %295 : vector<2x8xf32>
    %298 = arith.addf %297, %296 : vector<2x8xf32>
    %299 = vector.extract_strided_slice %131 {offsets = [122, 0], sizes = [2, 8], strides = [1, 1]} : vector<128x8xf32> to vector<2x8xf32>
    %300 = arith.minimumf %278, %298 : vector<2x8xf32>
    %301 = arith.addf %300, %299 : vector<2x8xf32>
    %302 = vector.extract_strided_slice %131 {offsets = [124, 0], sizes = [2, 8], strides = [1, 1]} : vector<128x8xf32> to vector<2x8xf32>
    %303 = arith.minimumf %281, %301 : vector<2x8xf32>
    %304 = arith.addf %303, %302 : vector<2x8xf32>
    %305 = vector.extract_strided_slice %131 {offsets = [126, 0], sizes = [2, 8], strides = [1, 1]} : vector<128x8xf32> to vector<2x8xf32>
    %306 = arith.minimumf %284, %304 : vector<2x8xf32>
    %307 = arith.addf %306, %305 : vector<2x8xf32>
    %308 = arith.subf %28, %30 : vector<1x8xf32>
    %cst_34 = arith.constant 3.000000e-01 : f32
    %309 = vector.broadcast %cst_34 : f32 to vector<1x8xf32>
    %310 = arith.addf %308, %309 : vector<1x8xf32>
    %cst_35 = arith.constant 0.000000e+00 : f32
    %311 = vector.broadcast %cst_35 : f32 to vector<1x8xf32>
    %312 = arith.maximumf %310, %311 : vector<1x8xf32>
    %313 = vector.extract_strided_slice %307 {offsets = [0, 0], sizes = [1, 8], strides = [1, 1]} : vector<2x8xf32> to vector<1x8xf32>
    %314 = vector.extract_strided_slice %307 {offsets = [1, 0], sizes = [1, 8], strides = [1, 1]} : vector<2x8xf32> to vector<1x8xf32>
    %315 = arith.subf %313, %314 : vector<1x8xf32>
    %cst_36 = arith.constant 3.000000e-01 : f32
    %316 = vector.broadcast %cst_36 : f32 to vector<1x8xf32>
    %317 = arith.addf %315, %316 : vector<1x8xf32>
    %cst_37 = arith.constant 0.000000e+00 : f32
    %318 = vector.broadcast %cst_37 : f32 to vector<1x8xf32>
    %319 = arith.maximumf %317, %318 : vector<1x8xf32>
    %320 = tpu.concatenate %312, %319 in 0 : vector<1x8xf32>, vector<1x8xf32> -> vector<2x8xf32>
    %c0_38 = arith.constant 0 : index
    %c0_39 = arith.constant 0 : index
    %321 = vector.load %arg4[%c0_38, %c0_39] : memref<2x8xf32, #tpu.memory_space<vmem>>, vector<2x8xf32>
    tpu.vector_store %arg4[%c0_38, %c0_39], %320 {strides = array<i32>} : memref<2x8xf32, #tpu.memory_space<vmem>>, vector<2x8xf32>,
    return
  }
}

</mosaic_0001>

<bundles_post_ra>
// kernel: tpu_custom_call.1
= control target key start
LH: loop header
LB: loop body
LE: loop exit
PB: predicated region body
PF: predicated region fallthrough
CT: control target
= control target key end

     0   :  { %vm20_vm0 = vcmask 261120   ;;  %s5364_s0 = inlined_call_operand.vmem [shape: f32[8,32], index: 0, kind: input, shape index: {}]   ;;  %s5365_s1 = inlined_call_operand.vmem [shape: s32[1,8], index: 1, kind: input, shape index: {}]   ;;  %s5366_s2 = inlined_call_operand.vmem [shape: s32[8,1], index: 2, kind: input, shape index: {}]   ;;  %s5367_s3 = inlined_call_operand.vmem [shape: f32[128,8], index: 3, kind: input, shape index: {}]   ;;  %s5368_s4 = inlined_call_operand.hbm [shape: f32[2,8], index: 4, kind: output, shape index: {}]  }
   0x1   :  { %v18_v0 = vld [vmem:[%s5364_s0] sm:$0xff] }
   0x2   :  { %9 = vsyncpa [#allocation3], 0  ;;  %v19_v1 = vmul.f32 %v18_v0, %v18_v0  ;;  %v3147_v3 = vmov 0.0   ;;  %vm3148_vm1 = vmmov 0   ;;  %v117_v4 = vld [vmem:[%s5366_s2] sm:$0xff]  ;;  %v3149_v5 = vmov 0  }
   0x3   :  { %2944 = vmatprep.subr.mxu0 %v3147_v3  ;;  %2946 = vmatprep.mubr.msk.f32.mxu0 %vm3148_vm1, %v3147_v3  ;;  %vm129_vm4 = vcmask 64512   ;;  %v3190_v15 = vld [vmem:[%s5367_s3] sm:$0xff]  ;;  %v144_v34 = vlaneseq  ;;  %vm3150_vm9 = vmmov 1   ;;  %v3216_v63 = vld [vmem:[%s5367_s3 + $0x8] sm:$0xff]  ;;  %vm5401_vm1 = vcmask 1042434  }
   0x4   :  { %v21_v2 = vsel %vm20_vm0, %v19_v1, 0.0  ;;  %3007 = vset.pattern.permute.xlu0 %v3149_v5  ;;  %2951 = vmatprep.mubr.msk.f32.mxu1 %vm129_vm4, %v3190_v15  ;;  %v2871_v21 = vld [vmem:[%s5365_s1] ss:$0 sm:$0xff]  ;;  %v3221_v1 = vld [vmem:[%s5367_s3 + $0x10] sm:$0xff] }
   0x5   :  { %22 = vadd.xlane.f32.xlu0 %v21_v2  ;;  %v145_v39 = vshrl.u32 %v144_v34, 7  ;;  %v3232_v2 = vld [vmem:[%s5367_s3 + $0x18] sm:$0xff]  ;;  %v3239_v3 = vld [vmem:[%s5367_s3 + $0x20] sm:$0xff]  ;;  %v3257_v5 = vld [vmem:[%s5367_s3 + $0x30] sm:$0xff] }
   0x7   :  { %v146_v44 = vcvt.s32.f32 %v145_v39 }
  0x1b   :  { %120 = vperm.xlu0 %3007, %v117_v4   ;;  %v3250_v4 = vld [vmem:[%s5367_s3 + $0x28] sm:$0xff] }
  0x92   :  { %v23_v6 = vpop.xlane.xlu0 %22 }
  0x93   :  { %3008 = vrsqrt.f32 %v23_v6  ;;  %vm26_vm2 = vcmp.eq.f32.partialorder %v23_v6, inf  ;;  %v29_v9 = vand.u32 2147483648, %v23_v6  ;;  %vm28_vm3 = vcmp.eq.f32.partialorder %v23_v6, 0.0 }
  0x9a   :  { %v121_v22 = vpop.permute.xlu0 %120 }
  0x9b   :  { %vm126_vm6 = vcmp.eq.s32.totalorder %v121_v22, %v2871_v21 }
  0x9c   :  { %vm157_vm10 = vmxor %vm126_vm6, %vm3150_vm9 }
  0x9d   :  { %v3009_v7 = vpop.eup %3008 }
  0x9e   :  { %v25_v8 = vmul.f32 %v3009_v7, %v23_v6  ;;  %v3275_v7 = vld [vmem:[%s5367_s3 + $0x40] sm:$0xff] }
  0xa0   :  { %v27_v10 = vsel %vm26_vm2, %v23_v6, %v25_v8  ;;  %v3268_v6 = vld [vmem:[%s5367_s3 + $0x38] sm:$0xff]  ;;  %v3286_v8 = vld [vmem:[%s5367_s3 + $0x48] sm:$0xff]  ;;  %vm5400_vm2 = vcmask 1043459  }
  0xa1   :  { %v30_v11 = vsel %vm28_vm3, %v29_v9, %v27_v10  ;;  %5424 = vst [vmem:[#allocation7_spill] sm:$0xff] %v3268_v6  ;;  %5425 = vst [vmem:[#allocation8_spill] sm:$0xff] %v3286_v8  ;;  %v3293_v9 = vld [vmem:[%s5367_s3 + $0x50] sm:$0xff]  ;;  %v3304_v10 = vld [vmem:[%s5367_s3 + $0x58] sm:$0xff]  ;;  %vm5399_vm3 = vcmask 1044484  }
  0xa2   :  { %v31_v12 = vadd.f32 1e-12, %v30_v11  ;;  %5426 = vst [vmem:[#allocation9_spill] sm:$0xff] %v3304_v10  ;;  %v3311_v11 = vld [vmem:[%s5367_s3 + $0x60] sm:$0xff] }
  0xa4   :  { %3010 = vrcp.f32 %v31_v12  ;;  %v3322_v12 = vld [vmem:[%s5367_s3 + $0x68] sm:$0xff] }
  0xa5   :  { %5427 = vst [vmem:[#allocation10_spill] sm:$0xff] %v3322_v12 }
  0xae   :  { %v3011_v13 = vpop.eup %3010 }
  0xaf   :  { %v33_v14 = vmul.f32 %v3011_v13, %v18_v0  ;;  %v3151_v0 = vmov 1.0   ;;  %v3329_v13 = vld [vmem:[%s5367_s3 + $0x70] sm:$0xff] }
  0xb1   :  { %2945 = vmatpush3.xpose.msk.msra.mxu0 %vm20_vm0, %v33_v14 }
  0xb4   :  { %2947 = vmatmul.mubr.msk.f32.vlgmr.msra.gmra.mrb[0].mxu0 %vm20_vm0, %v33_v14  ;;  %v3340_v14 = vld [vmem:[%s5367_s3 + $0x78] sm:$0xff]  ;;  %vm2208_vm0 = vcmask 1041409  }
  0xb5   :  { %2977 = vmatprep.mubr.msk.f32.mxu0 %vm129_vm4, %v3190_v15  ;;  %5428 = vst [vmem:[#allocation11_spill] sm:$0xff] %v3340_v14 }
 0x187   :  { %v103_v16 = vpop.f32.mrb[0].mxu0 }
 0x188   :  { %v107_v17 = vmul.f32 2.0, %v103_v16  ;;  %v2948_v18 = vpop.f32.mrb[1].mxu0 }
 0x18a   :  { %v108_v19 = vsub.f32 2.0, %v107_v17 }
 0x18c   :  { %v109_v20 = vmax.f32 %v108_v19, 1e-12 }
 0x18e   :  { %3012 = vrsqrt.f32 %v109_v20  ;;  %vm112_vm5 = vcmp.eq.f32.partialorder %v109_v20, inf  ;;  %v115_v25 = vand.u32 2147483648, %v109_v20  ;;  %vm114_vm7 = vcmp.eq.f32.partialorder %v109_v20, 0.0 }
 0x198   :  { %v3013_v23 = vpop.eup %3012 }
 0x199   :  { %v111_v24 = vmul.f32 %v3013_v23, %v109_v20 }
 0x19b   :  { %v113_v26 = vsel %vm112_vm5, %v109_v20, %v111_v24  ;;  %vm5398_vm5 = vcmask 1045509  }
 0x19c   :  { %v116_v27 = vsel %vm114_vm7, %v115_v25, %v113_v26  ;;  %vm5396_vm7 = vcmask 1047559  }
 0x19d   :  { %v127_v28 = vsel %vm126_vm6, %v116_v27, -1e+30  ;;  %v128_v29 = vsel %vm126_vm6, 1e+30, %v116_v27 }
 0x19e   :  { %v130_v30 = vsel %vm129_vm4, %v127_v28, -inf  ;;  %v137_v31 = vsel %vm129_vm4, %v128_v29, inf }
 0x19f   :  { %v131_v32 = vrot.slane %v130_v30, 4  ;;  %v138_v33 = vrot.slane %v137_v31, 4 }
 0x1a1   :  { %v132_v35 = vmax.f32 %v130_v30, %v131_v32  ;;  %v139_v36 = vmin.f32 %v137_v31, %v138_v33 }
 0x1a3   :  { %v133_v37 = vrot.slane %v132_v35, 2  ;;  %v140_v38 = vrot.slane %v139_v36, 2 }
 0x1a5   :  { %v134_v40 = vmax.f32 %v132_v35, %v133_v37  ;;  %v141_v41 = vmin.f32 %v139_v36, %v140_v38 }
 0x1a7   :  { %v135_v42 = vrot.slane %v134_v40, 1  ;;  %v142_v43 = vrot.slane %v141_v41, 1 }
 0x1a9   :  { %v3203_v45 = vmax.f32 %v134_v40, %v135_v42  ;;  %v3205_v46 = vmin.f32 %v141_v41, %v142_v43 }
 0x1ab   :  { %5422 = vst [vmem:[#allocation5_spill] sm:$0xff] %v3203_v45  ;;  %5423 = vst [vmem:[#allocation6_spill] sm:$0xff] %v3205_v46  ;;  %vm147_vm8 = vcmp.eq.f32.partialorder %v127_v28, %v3203_v45  ;;  %vm158_vm11 = vcmp.eq.f32.partialorder %v128_v29, %v3205_v46 }
 0x1ac   :  { %vm148_vm12 = vmand %vm126_vm6, %vm147_vm8  ;;  %vm5397_vm6 = vcmask 1046534  }
 0x1ad   :  { %v149_v47 = vsel %vm148_vm12, %v146_v44, 8.0  ;;  %vm159_vm13 = vmand %vm157_vm10, %vm158_vm11 }
 0x1ae   :  { %v150_v48 = vsel %vm129_vm4, %v149_v47, inf  ;;  %v160_v49 = vsel %vm159_vm13, %v146_v44, 8.0 }
 0x1af   :  { %v151_v50 = vrot.slane %v150_v48, 4  ;;  %v161_v51 = vsel %vm129_vm4, %v160_v49, inf }
 0x1b0   :  { %v162_v52 = vrot.slane %v161_v51, 4 }
 0x1b1   :  { %v152_v53 = vmin.f32 %v150_v48, %v151_v50 }
 0x1b2   :  { %v163_v54 = vmin.f32 %v161_v51, %v162_v52 }
 0x1b3   :  { %v153_v55 = vrot.slane %v152_v53, 2 }
 0x1b4   :  { %v164_v56 = vrot.slane %v163_v54, 2 }
 0x1b5   :  { %v154_v57 = vmin.f32 %v152_v53, %v153_v55 }
 0x1b6   :  { %v165_v58 = vmin.f32 %v163_v54, %v164_v56 }
 0x1b7   :  { %v155_v59 = vrot.slane %v154_v57, 1 }
 0x1b8   :  { %v166_v60 = vrot.slane %v165_v58, 1 }
 0x1b9   :  { %v156_v61 = vmin.f32 %v154_v57, %v155_v59 }
 0x1ba   :  { %v167_v62 = vmin.f32 %v165_v58, %v166_v60 }
 0x1bb   :  { %vm168_vm14 = vcmp.eq.f32.partialorder %v146_v44, %v156_v61 }
 0x1bc   :  { %2949 = vmatprep.subr.msk.mxu1 %vm168_vm14, %v3151_v0  ;;  %vm171_vm15 = vcmp.eq.f32.partialorder %v146_v44, %v167_v62 }
 0x1bd   :  { %2975 = vmatprep.subr.msk.mxu0 %vm171_vm15, %v3151_v0  ;;  %2950 = vmatpush3.msk.msra.mxu1 %vm168_vm14, %v3151_v0 }
 0x1be   :  { %2976 = vmatpush3.msk.msra.mxu0 %vm171_vm15, %v3151_v0  ;;  %2952 = vmatmul.mubr.msk.f32.vlgmr.msra.gmra.mrb[0].mxu1 %vm129_vm4, %v3216_v63 }
 0x1bf   :  { %2978 = vmatmul.mubr.msk.f32.vlgmr.msra.gmra.mrb[2].mxu0 %vm129_vm4, %v3216_v63  ;;  %2954 = vmatprep.mubr.msk.f32.mxu1 %vm129_vm4, %v3221_v1 }
 0x1c0   :  { %2980 = vmatprep.mubr.msk.f32.mxu0 %vm129_vm4, %v3221_v1 }
 0x1c2   :  { %2955 = vmatmul.mubr.msk.f32.gmra.mrb[2].mxu1 %vm129_vm4, %v3232_v2 }
 0x1c3   :  { %2981 = vmatmul.mubr.msk.f32.gmra.mrb[4].mxu0 %vm129_vm4, %v3232_v2  ;;  %2957 = vmatprep.mubr.msk.f32.mxu1 %vm129_vm4, %v3239_v3 }
 0x1c4   :  { %2983 = vmatprep.mubr.msk.f32.mxu0 %vm129_vm4, %v3239_v3 }
 0x1c6   :  { %2958 = vmatmul.mubr.msk.f32.gmra.mrb[4].mxu1 %vm129_vm4, %v3250_v4 }
 0x1c7   :  { %2984 = vmatmul.mubr.msk.f32.gmra.mrb[6].mxu0 %vm129_vm4, %v3250_v4  ;;  %2960 = vmatprep.mubr.msk.f32.mxu1 %vm129_vm4, %v3257_v5 }
 0x1c8   :  { %2986 = vmatprep.mubr.msk.f32.mxu0 %vm129_vm4, %v3257_v5 }
 0x1ca   :  { %2961 = vmatmul.mubr.msk.f32.gmra.mrb[6].mxu1 %vm129_vm4, %v3268_v6 }
 0x1cb   :  { %2987 = vmatmul.mubr.msk.f32.gmra.mrb[8].mxu0 %vm129_vm4, %v3268_v6  ;;  %2963 = vmatprep.mubr.msk.f32.mxu1 %vm129_vm4, %v3275_v7 }
 0x1cc   :  { %2989 = vmatprep.mubr.msk.f32.mxu0 %vm129_vm4, %v3275_v7 }
 0x1ce   :  { %2964 = vmatmul.mubr.msk.f32.gmra.mrb[8].mxu1 %vm129_vm4, %v3286_v8 }
 0x1cf   :  { %2990 = vmatmul.mubr.msk.f32.gmra.mrb[10].mxu0 %vm129_vm4, %v3286_v8  ;;  %2966 = vmatprep.mubr.msk.f32.mxu1 %vm129_vm4, %v3293_v9 }
 0x1d0   :  { %2992 = vmatprep.mubr.msk.f32.mxu0 %vm129_vm4, %v3293_v9 }
 0x1d2   :  { %2967 = vmatmul.mubr.msk.f32.gmra.mrb[10].mxu1 %vm129_vm4, %v3304_v10 }
 0x1d3   :  { %2993 = vmatmul.mubr.msk.f32.gmra.mrb[12].mxu0 %vm129_vm4, %v3304_v10  ;;  %2969 = vmatprep.mubr.msk.f32.mxu1 %vm129_vm4, %v3311_v11 }
 0x1d4   :  { %2995 = vmatprep.mubr.msk.f32.mxu0 %vm129_vm4, %v3311_v11 }
 0x1d6   :  { %2970 = vmatmul.mubr.msk.f32.gmra.mrb[12].mxu1 %vm129_vm4, %v3322_v12 }
 0x1d7   :  { %2996 = vmatmul.mubr.msk.f32.gmra.mrb[14].mxu0 %vm129_vm4, %v3322_v12  ;;  %2972 = vmatprep.mubr.msk.f32.mxu1 %vm129_vm4, %v3329_v13 }
 0x1d8   :  { %2998 = vmatprep.mubr.msk.f32.mxu0 %vm129_vm4, %v3329_v13 }
 0x1da   :  { %2973 = vmatmul.mubr.msk.f32.gmra.mrb[14].mxu1 %vm129_vm4, %v3340_v14 }
 0x1db   :  { %2999 = vmatmul.mubr.msk.f32.gmra.mrb[16].mxu0 %vm129_vm4, %v3340_v14 }
 0x291   :  { %v2953_v16 = vpop.f32.mrb[0].mxu1 }
 0x292   :  { %v529_v17 = vsub.f32 %v2953_v16, %v3216_v63  ;;  %v737_v18 = vsub.f32 %v2953_v16, %v3232_v2  ;;  %v945_v19 = vsub.f32 %v2953_v16, %v3250_v4  ;;  %v1153_v20 = vsub.f32 %v2953_v16, %v3268_v6  ;;  %v2979_v21 = vpop.f32.mrb[2].mxu0  ;;  %v304_v22 = vpop.f32.mrb[1].mxu1 }
 0x293   :  { %v1361_v23 = vsub.f32 %v2953_v16, %v3286_v8  ;;  %v1569_v24 = vsub.f32 %v2953_v16, %v3304_v10  ;;  %v1777_v25 = vsub.f32 %v2953_v16, %v3322_v12  ;;  %v1985_v26 = vsub.f32 %v2953_v16, %v3340_v14  ;;  %v3356_v27 = vpop.f32.mrb[3].mxu0 }
 0x294   :  { %v561_v28 = vmul.f32 %v529_v17, %v529_v17  ;;  %v769_v29 = vmul.f32 %v737_v18, %v737_v18  ;;  %v977_v30 = vmul.f32 %v945_v19, %v945_v19  ;;  %v1185_v31 = vmul.f32 %v1153_v20, %v1153_v20 }
 0x295   :  { %v1393_v32 = vmul.f32 %v1361_v23, %v1361_v23  ;;  %v1601_v33 = vmul.f32 %v1569_v24, %v1569_v24  ;;  %v1809_v34 = vmul.f32 %v1777_v25, %v1777_v25  ;;  %v2017_v35 = vmul.f32 %v1985_v26, %v1985_v26  ;;  %v3358_v36 = vpop.f32.mrb[2].mxu1 }
 0x296   :  { %v593_v37 = vsel %vm129_vm4, %v561_v28, 0.0  ;;  %v801_v38 = vsel %vm129_vm4, %v769_v29, 0.0  ;;  %v1009_v39 = vsel %vm129_vm4, %v977_v30, 0.0  ;;  %v1217_v40 = vsel %vm129_vm4, %v1185_v31, 0.0  ;;  %v3364_v41 = vpop.f32.mrb[4].mxu0  ;;  %v3366_v42 = vpop.f32.mrb[3].mxu1 }
 0x297   :  { %v3369_v43 = vsel %vm129_vm4, %v1393_v32, 0.0  ;;  %v3372_v44 = vsel %vm129_vm4, %v1601_v33, 0.0  ;;  %v3375_v47 = vsel %vm129_vm4, %v1809_v34, 0.0  ;;  %v3378_v48 = vsel %vm129_vm4, %v2017_v35, 0.0  ;;  %v3380_v49 = vpop.f32.mrb[5].mxu0 }
 0x298   :  { %v531_v50 = vsub.f32 %v2979_v21, %v3216_v63  ;;  %v739_v51 = vsub.f32 %v2979_v21, %v3232_v2  ;;  %v947_v52 = vsub.f32 %v2979_v21, %v3250_v4  ;;  %v1155_v53 = vsub.f32 %v2979_v21, %v3268_v6 }
 0x299   :  { %v1363_v54 = vsub.f32 %v2979_v21, %v3286_v8  ;;  %v1571_v55 = vsub.f32 %v2979_v21, %v3304_v10  ;;  %v1779_v56 = vsub.f32 %v2979_v21, %v3322_v12  ;;  %v1987_v57 = vsub.f32 %v2979_v21, %v3340_v14  ;;  %v3390_v58 = vpop.f32.mrb[4].mxu1 }
 0x29a   :  { %5429 = vst [vmem:[#allocation12_spill] sm:$0xff] %v3390_v58  ;;  %v563_v59 = vmul.f32 %v531_v50, %v531_v50  ;;  %v771_v60 = vmul.f32 %v739_v51, %v739_v51  ;;  %v979_v61 = vmul.f32 %v947_v52, %v947_v52  ;;  %v1187_v62 = vmul.f32 %v1155_v53, %v1155_v53  ;;  %v3392_v0 = vpop.f32.mrb[6].mxu0  ;;  %v3394_v16 = vpop.f32.mrb[5].mxu1 }
 0x29b   :  { %5430 = vst [vmem:[#allocation13_spill] sm:$0xff] %v3392_v0  ;;  %5431 = vst [vmem:[#allocation14_spill] sm:$0xff] %v3394_v16  ;;  %v1395_v17 = vmul.f32 %v1363_v54, %v1363_v54  ;;  %v1603_v18 = vmul.f32 %v1571_v55, %v1571_v55  ;;  %v1811_v19 = vmul.f32 %v1779_v56, %v1779_v56  ;;  %v3396_v23 = vpop.f32.mrb[7].mxu0 }
 0x29c   :  { %v2019_v20 = vmul.f32 %v1987_v57, %v1987_v57  ;;  %5432 = vst [vmem:[#allocation15_spill] sm:$0xff] %v3396_v23  ;;  %v3399_v24 = vsel %vm129_vm4, %v563_v59, 0.0  ;;  %v3402_v21 = vsel %vm129_vm4, %v771_v60, 0.0  ;;  %v3405_v25 = vsel %vm129_vm4, %v979_v61, 0.0 }
 0x29d   :  { %v3408_v26 = vsel %vm129_vm4, %v1187_v62, 0.0  ;;  %v3411_v28 = vsel %vm129_vm4, %v1395_v17, 0.0  ;;  %v3414_v29 = vsel %vm129_vm4, %v1603_v18, 0.0  ;;  %v3417_v30 = vsel %vm129_vm4, %v1811_v19, 0.0 }
 0x29e   :  { %v3420_v31 = vsel %vm129_vm4, %v2019_v20, 0.0  ;;  %v528_v32 = vsub.f32 %v304_v22, %v3190_v15  ;;  %v736_v33 = vsub.f32 %v304_v22, %v3221_v1  ;;  %v944_v34 = vsub.f32 %v304_v22, %v3239_v3 }
 0x29f   :  { %v1152_v35 = vsub.f32 %v304_v22, %v3257_v5  ;;  %v1360_v50 = vsub.f32 %v304_v22, %v3275_v7  ;;  %v1568_v51 = vsub.f32 %v304_v22, %v3293_v9  ;;  %v1776_v52 = vsub.f32 %v304_v22, %v3311_v11 }
 0x2a0   :  { %v1984_v53 = vsub.f32 %v304_v22, %v3329_v13  ;;  %v560_v54 = vmul.f32 %v528_v32, %v528_v32  ;;  %v768_v55 = vmul.f32 %v736_v33, %v736_v33  ;;  %v976_v56 = vmul.f32 %v944_v34, %v944_v34 }
 0x2a1   :  { %v1184_v57 = vmul.f32 %v1152_v35, %v1152_v35  ;;  %v1392_v59 = vmul.f32 %v1360_v50, %v1360_v50  ;;  %v1600_v60 = vmul.f32 %v1568_v51, %v1568_v51  ;;  %v1808_v61 = vmul.f32 %v1776_v52, %v1776_v52 }
 0x2a2   :  { %v2016_v62 = vmul.f32 %v1984_v53, %v1984_v53  ;;  %v592_v17 = vsel %vm129_vm4, %v560_v54, 0.0  ;;  %v800_v18 = vsel %vm129_vm4, %v768_v55, 0.0  ;;  %v1008_v19 = vsel %vm129_vm4, %v976_v56, 0.0 }
 0x2a3   :  { %v1216_v20 = vsel %vm129_vm4, %v1184_v57, 0.0  ;;  %v594_v45 = vadd.f32 %v593_v37, %v592_v17  ;;  %v802_v46 = vadd.f32 %v801_v38, %v800_v18  ;;  %v1010_v23 = vadd.f32 %v1009_v39, %v1008_v19 }
 0x2a4   :  { %v1218_v22 = vadd.f32 %v1217_v40, %v1216_v20  ;;  %v1424_v32 = vsel %vm129_vm4, %v1392_v59, 0.0  ;;  %v1632_v33 = vsel %vm129_vm4, %v1600_v60, 0.0  ;;  %v1840_v34 = vsel %vm129_vm4, %v1808_v61, 0.0 }
 0x2a5   :  { %v2048_v35 = vsel %vm129_vm4, %v2016_v62, 0.0  ;;  %v595_v50 = vrot.slane %v594_v45, 4  ;;  %v803_v51 = vrot.slane %v802_v46, 4  ;;  %v1011_v52 = vrot.slane %v1010_v23, 4 }
 0x2a6   :  { %v1219_v53 = vrot.slane %v1218_v22, 4  ;;  %v1426_v54 = vadd.f32 %v3369_v43, %v1424_v32  ;;  %v1634_v55 = vadd.f32 %v3372_v44, %v1632_v33  ;;  %v1842_v37 = vadd.f32 %v3375_v47, %v1840_v34 }
 0x2a7   :  { %v2050_v38 = vadd.f32 %v3378_v48, %v2048_v35  ;;  %v596_v39 = vadd.f32 %v595_v50, %v594_v45  ;;  %v804_v40 = vadd.f32 %v803_v51, %v802_v46  ;;  %v1012_v56 = vadd.f32 %v1011_v52, %v1010_v23  ;;  %v3442_v45 = vpop.f32.mrb[6].mxu1 }
 0x2a8   :  { %v1220_v57 = vadd.f32 %v1219_v53, %v1218_v22  ;;  %v1427_v59 = vrot.slane %v1426_v54, 4  ;;  %v1635_v60 = vrot.slane %v1634_v55, 4  ;;  %v1843_v61 = vrot.slane %v1842_v37, 4  ;;  %5433 = vst [vmem:[#allocation16_spill] sm:$0xff] %v3442_v45 }
 0x2a9   :  { %v2051_v62 = vrot.slane %v2050_v38, 4  ;;  %v597_v17 = vrot.slane %v596_v39, 2  ;;  %v805_v18 = vrot.slane %v804_v40, 2  ;;  %v1013_v19 = vrot.slane %v1012_v56, 2 }
 0x2aa   :  { %v1221_v20 = vrot.slane %v1220_v57, 2  ;;  %v1428_v16 = vadd.f32 %v1427_v59, %v1426_v54  ;;  %v1636_v43 = vadd.f32 %v1635_v60, %v1634_v55  ;;  %v1844_v32 = vadd.f32 %v1843_v61, %v1842_v37 }
 0x2ab   :  { %v2052_v44 = vadd.f32 %v2051_v62, %v2050_v38  ;;  %v598_v33 = vadd.f32 %v597_v17, %v596_v39  ;;  %v806_v47 = vadd.f32 %v805_v18, %v804_v40  ;;  %v1014_v34 = vadd.f32 %v1013_v19, %v1012_v56 }
 0x2ac   :  { %v1222_v48 = vadd.f32 %v1221_v20, %v1220_v57  ;;  %v1429_v46 = vrot.slane %v1428_v16, 2  ;;  %v1637_v23 = vrot.slane %v1636_v43, 2  ;;  %v1845_v22 = vrot.slane %v1844_v32, 2 }
 0x2ad   :  { %v2053_v35 = vrot.slane %v2052_v44, 2  ;;  %v599_v50 = vrot.slane %v598_v33, 1  ;;  %v807_v51 = vrot.slane %v806_v47, 1  ;;  %v1015_v52 = vrot.slane %v1014_v34, 1 }
 0x2ae   :  { %v1223_v53 = vrot.slane %v1222_v48, 1  ;;  %v1430_v0 = vadd.f32 %v1429_v46, %v1428_v16  ;;  %v1638_v58 = vadd.f32 %v1637_v23, %v1636_v43  ;;  %v1846_v54 = vadd.f32 %v1845_v22, %v1844_v32 }
 0x2af   :  { %v2054_v55 = vadd.f32 %v2053_v35, %v2052_v44  ;;  %v3444_v37 = vadd.f32 %v599_v50, %v598_v33  ;;  %v3446_v38 = vadd.f32 %v807_v51, %v806_v47  ;;  %v3448_v39 = vadd.f32 %v1015_v52, %v1014_v34 }
 0x2b0   :  { %v3450_v40 = vadd.f32 %v1223_v53, %v1222_v48  ;;  %v1431_v56 = vrot.slane %v1430_v0, 1  ;;  %v1639_v57 = vrot.slane %v1638_v58, 1  ;;  %v1847_v59 = vrot.slane %v1846_v54, 1 }
 0x2b1   :  { %v2055_v60 = vrot.slane %v2054_v55, 1  ;;  %v530_v61 = vsub.f32 %v3356_v27, %v3190_v15  ;;  %v738_v16 = vsub.f32 %v3356_v27, %v3221_v1  ;;  %v946_v62 = vsub.f32 %v3356_v27, %v3239_v3 }
 0x2b2   :  { %v1154_v17 = vsub.f32 %v3356_v27, %v3257_v5  ;;  %v3460_v18 = vadd.f32 %v1431_v56, %v1430_v0  ;;  %v3462_v19 = vadd.f32 %v1639_v57, %v1638_v58  ;;  %v3464_v20 = vadd.f32 %v1847_v59, %v1846_v54 }
 0x2b3   :  { %v3466_v43 = vadd.f32 %v2055_v60, %v2054_v55  ;;  %v562_v32 = vmul.f32 %v530_v61, %v530_v61  ;;  %v770_v44 = vmul.f32 %v738_v16, %v738_v16  ;;  %v978_v33 = vmul.f32 %v946_v62, %v946_v62 }
 0x2b4   :  { %v1186_v47 = vmul.f32 %v1154_v17, %v1154_v17  ;;  %v1362_v34 = vsub.f32 %v3356_v27, %v3275_v7  ;;  %v1570_v48 = vsub.f32 %v3356_v27, %v3293_v9  ;;  %v1778_v0 = vsub.f32 %v3356_v27, %v3311_v11 }
 0x2b5   :  { %v1986_v58 = vsub.f32 %v3356_v27, %v3329_v13  ;;  %v601_v46 = vsel %vm129_vm4, %v562_v32, 0.0  ;;  %v809_v23 = vsel %vm129_vm4, %v770_v44, 0.0  ;;  %v1017_v22 = vsel %vm129_vm4, %v978_v33, 0.0 }
 0x2b6   :  { %v1225_v35 = vsel %vm129_vm4, %v1186_v47, 0.0  ;;  %v603_v50 = vadd.f32 %v3399_v24, %v601_v46  ;;  %v811_v51 = vadd.f32 %v3402_v21, %v809_v23  ;;  %v1019_v52 = vadd.f32 %v3405_v25, %v1017_v22 }
 0x2b7   :  { %v1227_v53 = vadd.f32 %v3408_v26, %v1225_v35  ;;  %v1394_v54 = vmul.f32 %v1362_v34, %v1362_v34  ;;  %v1602_v55 = vmul.f32 %v1570_v48, %v1570_v48  ;;  %v1810_v56 = vmul.f32 %v1778_v0, %v1778_v0  ;;  %v3492_v48 = vpop.f32.mrb[8].mxu0 }
 0x2b8   :  { %v2018_v27 = vmul.f32 %v1986_v58, %v1986_v58  ;;  %v604_v57 = vrot.slane %v603_v50, 4  ;;  %v812_v59 = vrot.slane %v811_v51, 4  ;;  %v1020_v60 = vrot.slane %v1019_v52, 4  ;;  %5434 = vst [vmem:[#allocation17_spill] sm:$0xff] %v3492_v48 }
 0x2b9   :  { %v1228_v61 = vrot.slane %v1227_v53, 4  ;;  %v1433_v16 = vsel %vm129_vm4, %v1394_v54, 0.0  ;;  %v1641_v62 = vsel %vm129_vm4, %v1602_v55, 0.0  ;;  %v1849_v24 = vsel %vm129_vm4, %v1810_v56, 0.0 }
 0x2ba   :  { %v2057_v21 = vsel %vm129_vm4, %v2018_v27, 0.0  ;;  %v605_v25 = vadd.f32 %v604_v57, %v603_v50  ;;  %v813_v17 = vadd.f32 %v812_v59, %v811_v51  ;;  %v1021_v26 = vadd.f32 %v1020_v60, %v1019_v52 }
 0x2bb   :  { %v1229_v32 = vadd.f32 %v1228_v61, %v1227_v53  ;;  %v1435_v44 = vadd.f32 %v3411_v28, %v1433_v16  ;;  %v1643_v33 = vadd.f32 %v3414_v29, %v1641_v62  ;;  %v1851_v47 = vadd.f32 %v3417_v30, %v1849_v24  ;;  %v3494_v24 = vpop.f32.mrb[7].mxu1 }
 0x2bc   :  { %v2059_v34 = vadd.f32 %v3420_v31, %v2057_v21  ;;  %v606_v0 = vrot.slane %v605_v25, 2  ;;  %v814_v58 = vrot.slane %v813_v17, 2  ;;  %v1022_v46 = vrot.slane %v1021_v26, 2  ;;  %5435 = vst [vmem:[#allocation18_spill] sm:$0xff] %v3494_v24 }
 0x2bd   :  { %v1230_v23 = vrot.slane %v1229_v32, 2  ;;  %v1436_v22 = vrot.slane %v1435_v44, 4  ;;  %v1644_v35 = vrot.slane %v1643_v33, 4  ;;  %v1852_v50 = vrot.slane %v1851_v47, 4 }
 0x2be   :  { %v2060_v51 = vrot.slane %v2059_v34, 4  ;;  %v607_v52 = vadd.f32 %v606_v0, %v605_v25  ;;  %v815_v53 = vadd.f32 %v814_v58, %v813_v17  ;;  %v1023_v54 = vadd.f32 %v1022_v46, %v1021_v26 }
 0x2bf   :  { %v1231_v28 = vadd.f32 %v1230_v23, %v1229_v32  ;;  %v1437_v55 = vadd.f32 %v1436_v22, %v1435_v44  ;;  %v1645_v29 = vadd.f32 %v1644_v35, %v1643_v33  ;;  %v1853_v56 = vadd.f32 %v1852_v50, %v1851_v47 }
 0x2c0   :  { %v2061_v30 = vadd.f32 %v2060_v51, %v2059_v34  ;;  %v608_v27 = vrot.slane %v607_v52, 1  ;;  %v816_v31 = vrot.slane %v815_v53, 1  ;;  %v1024_v57 = vrot.slane %v1023_v54, 1 }
 0x2c1   :  { %v1232_v59 = vrot.slane %v1231_v28, 1  ;;  %v1438_v60 = vrot.slane %v1437_v55, 2  ;;  %v1646_v61 = vrot.slane %v1645_v29, 2  ;;  %v1854_v16 = vrot.slane %v1853_v56, 2 }
 0x2c2   :  { %v2062_v62 = vrot.slane %v2061_v30, 2  ;;  %v609_v21 = vadd.f32 %v608_v27, %v607_v52  ;;  %v817_v48 = vadd.f32 %v816_v31, %v815_v53  ;;  %v1025_v25 = vadd.f32 %v1024_v57, %v1023_v54 }
 0x2c3   :  { %v1233_v17 = vadd.f32 %v1232_v59, %v1231_v28  ;;  %v1439_v26 = vadd.f32 %v1438_v60, %v1437_v55  ;;  %v1647_v32 = vadd.f32 %v1646_v61, %v1645_v29  ;;  %v1855_v44 = vadd.f32 %v1854_v16, %v1853_v56 }
 0x2c4   :  { %v2063_v33 = vadd.f32 %v2062_v62, %v2061_v30  ;;  %v3498_v47 = vsel %vm2208_vm0, %v609_v21, %v3444_v37  ;;  %v3502_v34 = vsel %vm2208_vm0, %v817_v48, %v3446_v38  ;;  %v3506_v0 = vsel %vm2208_vm0, %v1025_v25, %v3448_v39  ;;  %v3556_v25 = vpop.f32.mrb[9].mxu0 }
 0x2c5   :  { %v3510_v58 = vsel %vm2208_vm0, %v1233_v17, %v3450_v40  ;;  %v1440_v46 = vrot.slane %v1439_v26, 1  ;;  %v1648_v23 = vrot.slane %v1647_v32, 1  ;;  %v1856_v22 = vrot.slane %v1855_v44, 1  ;;  %5436 = vst [vmem:[#allocation19_spill] sm:$0xff] %v3556_v25 }
 0x2c6   :  { %v2064_v35 = vrot.slane %v2063_v33, 1  ;;  %v533_v37 = vsub.f32 %v3358_v36, %v3216_v63  ;;  %v741_v50 = vsub.f32 %v3358_v36, %v3232_v2  ;;  %v949_v38 = vsub.f32 %v3358_v36, %v3250_v4 }
 0x2c7   :  { %v1157_v39 = vsub.f32 %v3358_v36, %v3268_v6  ;;  %v1441_v48 = vadd.f32 %v1440_v46, %v1439_v26  ;;  %v1649_v51 = vadd.f32 %v1648_v23, %v1647_v32  ;;  %v1857_v40 = vadd.f32 %v1856_v22, %v1855_v44 }
 0x2c8   :  { %v2065_v52 = vadd.f32 %v2064_v35, %v2063_v33  ;;  %v565_v53 = vmul.f32 %v533_v37, %v533_v37  ;;  %v773_v54 = vmul.f32 %v741_v50, %v741_v50  ;;  %v981_v28 = vmul.f32 %v949_v38, %v949_v38 }
 0x2c9   :  { %v1189_v55 = vmul.f32 %v1157_v39, %v1157_v39  ;;  %v3522_v29 = vsel %vm2208_vm0, %v1441_v48, %v3460_v18  ;;  %v3526_v56 = vsel %vm2208_vm0, %v1649_v51, %v3462_v19  ;;  %v3530_v30 = vsel %vm2208_vm0, %v1857_v40, %v3464_v20 }
 0x2ca   :  { %v3534_v27 = vsel %vm2208_vm0, %v2065_v52, %v3466_v43  ;;  %v611_v31 = vsel %vm129_vm4, %v565_v53, 0.0  ;;  %v819_v57 = vsel %vm129_vm4, %v773_v54, 0.0  ;;  %v1027_v59 = vsel %vm129_vm4, %v981_v28, 0.0 }
 0x2cb   :  { %v1235_v18 = vsel %vm129_vm4, %v1189_v55, 0.0  ;;  %v1365_v19 = vsub.f32 %v3358_v36, %v3286_v8  ;;  %v1573_v60 = vsub.f32 %v3358_v36, %v3304_v10  ;;  %v1781_v20 = vsub.f32 %v3358_v36, %v3322_v12 }
 0x2cc   :  { %v1989_v43 = vsub.f32 %v3358_v36, %v3340_v14  ;;  %v535_v61 = vsub.f32 %v3364_v41, %v3216_v63  ;;  %v743_v16 = vsub.f32 %v3364_v41, %v3232_v2  ;;  %v951_v62 = vsub.f32 %v3364_v41, %v3250_v4 }
 0x2cd   :  { %v1159_v21 = vsub.f32 %v3364_v41, %v3268_v6  ;;  %v1397_v17 = vmul.f32 %v1365_v19, %v1365_v19  ;;  %v1605_v26 = vmul.f32 %v1573_v60, %v1573_v60  ;;  %v1813_v32 = vmul.f32 %v1781_v20, %v1781_v20 }
 0x2ce   :  { %v2021_v44 = vmul.f32 %v1989_v43, %v1989_v43  ;;  %v567_v33 = vmul.f32 %v535_v61, %v535_v61  ;;  %v775_v36 = vmul.f32 %v743_v16, %v743_v16  ;;  %v983_v46 = vmul.f32 %v951_v62, %v951_v62 }
 0x2cf   :  { %v1191_v23 = vmul.f32 %v1159_v21, %v1159_v21  ;;  %v1443_v22 = vsel %vm129_vm4, %v1397_v17, 0.0  ;;  %v1651_v35 = vsel %vm129_vm4, %v1605_v26, 0.0  ;;  %v1859_v37 = vsel %vm129_vm4, %v1813_v32, 0.0 }
 0x2d0   :  { %v2067_v50 = vsel %vm129_vm4, %v2021_v44, 0.0  ;;  %v3563_v38 = vsel %vm129_vm4, %v567_v33, 0.0  ;;  %v3566_v39 = vsel %vm129_vm4, %v775_v36, 0.0  ;;  %v3569_v48 = vsel %vm129_vm4, %v983_v46, 0.0 }
 0x2d1   :  { %v3572_v51 = vsel %vm129_vm4, %v1191_v23, 0.0  ;;  %v1367_v40 = vsub.f32 %v3364_v41, %v3286_v8  ;;  %v1575_v52 = vsub.f32 %v3364_v41, %v3304_v10  ;;  %v1783_v53 = vsub.f32 %v3364_v41, %v3322_v12 }
 0x2d2   :  { %v1991_v54 = vsub.f32 %v3364_v41, %v3340_v14  ;;  %v532_v28 = vsub.f32 %v3366_v42, %v3190_v15  ;;  %v740_v55 = vsub.f32 %v3366_v42, %v3221_v1  ;;  %v948_v19 = vsub.f32 %v3366_v42, %v3239_v3 }
 0x2d3   :  { %v1156_v60 = vsub.f32 %v3366_v42, %v3257_v5  ;;  %v1399_v20 = vmul.f32 %v1367_v40, %v1367_v40  ;;  %v1607_v43 = vmul.f32 %v1575_v52, %v1575_v52  ;;  %v1815_v61 = vmul.f32 %v1783_v53, %v1783_v53 }
 0x2d4   :  { %v2023_v16 = vmul.f32 %v1991_v54, %v1991_v54  ;;  %v564_v62 = vmul.f32 %v532_v28, %v532_v28  ;;  %v772_v21 = vmul.f32 %v740_v55, %v740_v55  ;;  %v980_v17 = vmul.f32 %v948_v19, %v948_v19 }
 0x2d5   :  { %v1188_v41 = vmul.f32 %v1156_v60, %v1156_v60  ;;  %v3591_v26 = vsel %vm129_vm4, %v1399_v20, 0.0  ;;  %v3594_v32 = vsel %vm129_vm4, %v1607_v43, 0.0  ;;  %v3597_v44 = vsel %vm129_vm4, %v1815_v61, 0.0 }
 0x2d6   :  { %v3600_v33 = vsel %vm129_vm4, %v2023_v16, 0.0  ;;  %v610_v36 = vsel %vm129_vm4, %v564_v62, 0.0  ;;  %v818_v46 = vsel %vm129_vm4, %v772_v21, 0.0  ;;  %v1026_v23 = vsel %vm129_vm4, %v980_v17, 0.0 }
 0x2d7   :  { %v1234_v40 = vsel %vm129_vm4, %v1188_v41, 0.0  ;;  %v612_v52 = vadd.f32 %v611_v31, %v610_v36  ;;  %v820_v53 = vadd.f32 %v819_v57, %v818_v46  ;;  %v1028_v54 = vadd.f32 %v1027_v59, %v1026_v23 }
 0x2d8   :  { %v1236_v28 = vadd.f32 %v1235_v18, %v1234_v40  ;;  %v1364_v55 = vsub.f32 %v3366_v42, %v3275_v7  ;;  %v1572_v19 = vsub.f32 %v3366_v42, %v3293_v9  ;;  %v1780_v60 = vsub.f32 %v3366_v42, %v3311_v11 }
 0x2d9   :  { %v1988_v20 = vsub.f32 %v3366_v42, %v3329_v13  ;;  %v613_v43 = vrot.slane %v612_v52, 4  ;;  %v821_v61 = vrot.slane %v820_v53, 4  ;;  %v1029_v16 = vrot.slane %v1028_v54, 4 }
 0x2da   :  { %v1237_v62 = vrot.slane %v1236_v28, 4  ;;  %v1396_v31 = vmul.f32 %v1364_v55, %v1364_v55  ;;  %v1604_v57 = vmul.f32 %v1572_v19, %v1572_v19  ;;  %v1812_v59 = vmul.f32 %v1780_v60, %v1780_v60 }
 0x2db   :  { %v2020_v18 = vmul.f32 %v1988_v20, %v1988_v20  ;;  %v614_v21 = vadd.f32 %v613_v43, %v612_v52  ;;  %v822_v17 = vadd.f32 %v821_v61, %v820_v53  ;;  %v1030_v41 = vadd.f32 %v1029_v16, %v1028_v54 }
 0x2dc   :  { %v1238_v36 = vadd.f32 %v1237_v62, %v1236_v28  ;;  %v1442_v46 = vsel %vm129_vm4, %v1396_v31, 0.0  ;;  %v1650_v23 = vsel %vm129_vm4, %v1604_v57, 0.0  ;;  %v1858_v40 = vsel %vm129_vm4, %v1812_v59, 0.0 }
 0x2dd   :  { %v2066_v42 = vsel %vm129_vm4, %v2020_v18, 0.0  ;;  %v615_v25 = vrot.slane %v614_v21, 2  ;;  %v823_v24 = vrot.slane %v822_v17, 2  ;;  %v1031_v45 = vrot.slane %v1030_v41, 2 }
 0x2de   :  { %v1239_v55 = vrot.slane %v1238_v36, 2  ;;  %v1444_v19 = vadd.f32 %v1443_v22, %v1442_v46  ;;  %v1652_v60 = vadd.f32 %v1651_v35, %v1650_v23  ;;  %v1860_v20 = vadd.f32 %v1859_v37, %v1858_v40 }
 0x2df   :  { %v2068_v14 = vadd.f32 %v2067_v50, %v2066_v42  ;;  %v616_v52 = vadd.f32 %v615_v25, %v614_v21  ;;  %v824_v53 = vadd.f32 %v823_v24, %v822_v17  ;;  %v1032_v54 = vadd.f32 %v1031_v45, %v1030_v41 }
 0x2e0   :  { %v1240_v28 = vadd.f32 %v1239_v55, %v1238_v36  ;;  %v1445_v43 = vrot.slane %v1444_v19, 4  ;;  %v1653_v61 = vrot.slane %v1652_v60, 4  ;;  %v1861_v16 = vrot.slane %v1860_v20, 4  ;;  %v3634_v55 = vpop.f32.mrb[8].mxu1 }
 0x2e1   :  { %v2069_v62 = vrot.slane %v2068_v14, 4  ;;  %v617_v31 = vrot.slane %v616_v52, 1  ;;  %v825_v57 = vrot.slane %v824_v53, 1  ;;  %v1033_v59 = vrot.slane %v1032_v54, 1 }
 0x2e2   :  { %v1241_v18 = vrot.slane %v1240_v28, 1  ;;  %v1446_v12 = vadd.f32 %v1445_v43, %v1444_v19  ;;  %v1654_v10 = vadd.f32 %v1653_v61, %v1652_v60  ;;  %v1862_v8 = vadd.f32 %v1861_v16, %v1860_v20 }
 0x2e3   :  { %v2070_v6 = vadd.f32 %v2069_v62, %v2068_v14  ;;  %v618_v22 = vadd.f32 %v617_v31, %v616_v52  ;;  %v826_v35 = vadd.f32 %v825_v57, %v824_v53  ;;  %v1034_v37 = vadd.f32 %v1033_v59, %v1032_v54 }
 0x2e4   :  { %v1242_v50 = vadd.f32 %v1241_v18, %v1240_v28  ;;  %v1447_v25 = vrot.slane %v1446_v12, 2  ;;  %v1655_v24 = vrot.slane %v1654_v10, 2  ;;  %v1863_v45 = vrot.slane %v1862_v8, 2 }
 0x2e5   :  { %v2071_v21 = vrot.slane %v2070_v6, 2  ;;  %v3620_v17 = vsel %vm5401_vm1, %v618_v22, %v3498_v47  ;;  %v3624_v41 = vsel %vm5401_vm1, %v826_v35, %v3502_v34  ;;  %v3628_v36 = vsel %vm5401_vm1, %v1034_v37, %v3506_v0 }
 0x2e6   :  { %v3632_v14 = vsel %vm5401_vm1, %v1242_v50, %v3510_v58  ;;  %v1448_v46 = vadd.f32 %v1447_v25, %v1446_v12  ;;  %v1656_v23 = vadd.f32 %v1655_v24, %v1654_v10  ;;  %v1864_v40 = vadd.f32 %v1863_v45, %v1862_v8 }
 0x2e7   :  { %v2072_v42 = vadd.f32 %v2071_v21, %v2070_v6  ;;  %v534_v47 = vsub.f32 %v3380_v49, %v3190_v15  ;;  %v742_v34 = vsub.f32 %v3380_v49, %v3221_v1  ;;  %v950_v0 = vsub.f32 %v3380_v49, %v3239_v3 }
 0x2e8   :  { %v1158_v19 = vsub.f32 %v3380_v49, %v3257_v5  ;;  %v1449_v58 = vrot.slane %v1448_v46, 1  ;;  %v1657_v60 = vrot.slane %v1656_v23, 1  ;;  %v1865_v12 = vrot.slane %v1864_v40, 1 }
 0x2e9   :  { %v2073_v10 = vrot.slane %v2072_v42, 1  ;;  %v566_v8 = vmul.f32 %v534_v47, %v534_v47  ;;  %v774_v6 = vmul.f32 %v742_v34, %v742_v34  ;;  %v982_v20 = vmul.f32 %v950_v0, %v950_v0 }
 0x2ea   :  { %v1190_v52 = vmul.f32 %v1158_v19, %v1158_v19  ;;  %v1450_v53 = vadd.f32 %v1449_v58, %v1448_v46  ;;  %v1658_v54 = vadd.f32 %v1657_v60, %v1656_v23  ;;  %v1866_v15 = vadd.f32 %v1865_v12, %v1864_v40 }
 0x2eb   :  { %v2074_v28 = vadd.f32 %v2073_v10, %v2072_v42  ;;  %v619_v1 = vsel %vm129_vm4, %v566_v8, 0.0  ;;  %v827_v43 = vsel %vm129_vm4, %v774_v6, 0.0  ;;  %v1035_v3 = vsel %vm129_vm4, %v982_v20, 0.0 }
 0x2ec   :  { %v1243_v5 = vsel %vm129_vm4, %v1190_v52, 0.0  ;;  %v3650_v61 = vsel %vm5401_vm1, %v1450_v53, %v3522_v29  ;;  %v3654_v16 = vsel %vm5401_vm1, %v1658_v54, %v3526_v56  ;;  %v3658_v62 = vsel %vm5401_vm1, %v1866_v15, %v3530_v30 }
 0x2ed   :  { %v3662_v31 = vsel %vm5401_vm1, %v2074_v28, %v3534_v27  ;;  %v621_v57 = vadd.f32 %v3563_v38, %v619_v1  ;;  %v829_v59 = vadd.f32 %v3566_v39, %v827_v43  ;;  %v1037_v18 = vadd.f32 %v3569_v48, %v1035_v3 }
 0x2ee   :  { %v1245_v29 = vadd.f32 %v3572_v51, %v1243_v5  ;;  %v1366_v56 = vsub.f32 %v3380_v49, %v3275_v7  ;;  %v1574_v22 = vsub.f32 %v3380_v49, %v3293_v9  ;;  %v1782_v30 = vsub.f32 %v3380_v49, %v3311_v11 }
 0x2ef   :  { %v1990_v27 = vsub.f32 %v3380_v49, %v3329_v13  ;;  %v622_v35 = vrot.slane %v621_v57, 4  ;;  %v830_v38 = vrot.slane %v829_v59, 4  ;;  %v1038_v37 = vrot.slane %v1037_v18, 4 }
 0x2f0   :  { %v1246_v39 = vrot.slane %v1245_v29, 4  ;;  %v1398_v50 = vmul.f32 %v1366_v56, %v1366_v56  ;;  %v1606_v48 = vmul.f32 %v1574_v22, %v1574_v22  ;;  %v1814_v25 = vmul.f32 %v1782_v30, %v1782_v30 }
 0x2f1   :  { %v2022_v51 = vmul.f32 %v1990_v27, %v1990_v27  ;;  %v623_v24 = vadd.f32 %v622_v35, %v621_v57  ;;  %v831_v7 = vadd.f32 %v830_v38, %v829_v59  ;;  %v1039_v45 = vadd.f32 %v1038_v37, %v1037_v18 }
 0x2f2   :  { %v1247_v21 = vadd.f32 %v1246_v39, %v1245_v29  ;;  %v1451_v9 = vsel %vm129_vm4, %v1398_v50, 0.0  ;;  %v1659_v11 = vsel %vm129_vm4, %v1606_v48, 0.0  ;;  %v1867_v46 = vsel %vm129_vm4, %v1814_v25, 0.0  ;;  %v5437_v50 = vld [vmem:[#allocation12_spill] sm:$0xff]  ;;  %v5438_v25 = vld [vmem:[#allocation7_spill] sm:$0xff] }
 0x2f3   :  { %v2075_v13 = vsel %vm129_vm4, %v2022_v51, 0.0  ;;  %v624_v49 = vrot.slane %v623_v24, 2  ;;  %v832_v23 = vrot.slane %v831_v7, 2  ;;  %v1040_v40 = vrot.slane %v1039_v45, 2 }
 0x2f4   :  { %v1248_v42 = vrot.slane %v1247_v21, 2  ;;  %v1453_v47 = vadd.f32 %v3591_v26, %v1451_v9  ;;  %v1661_v34 = vadd.f32 %v3594_v32, %v1659_v11  ;;  %v1869_v0 = vadd.f32 %v3597_v44, %v1867_v46 }
 0x2f5   :  { %v2077_v19 = vadd.f32 %v3600_v33, %v2075_v13  ;;  %v625_v58 = vadd.f32 %v624_v49, %v623_v24  ;;  %v833_v60 = vadd.f32 %v832_v23, %v831_v7  ;;  %v1041_v12 = vadd.f32 %v1040_v40, %v1039_v45 }
 0x2f6   :  { %v1249_v10 = vadd.f32 %v1248_v42, %v1247_v21  ;;  %v1454_v8 = vrot.slane %v1453_v47, 4  ;;  %v1662_v6 = vrot.slane %v1661_v34, 4  ;;  %v1870_v20 = vrot.slane %v1869_v0, 4 }
 0x2f7   :  { %v2078_v52 = vrot.slane %v2077_v19, 4  ;;  %v626_v53 = vrot.slane %v625_v58, 1  ;;  %v834_v54 = vrot.slane %v833_v60, 1  ;;  %v1042_v15 = vrot.slane %v1041_v12, 1 }
 0x2f8   :  { %v1250_v28 = vrot.slane %v1249_v10, 1  ;;  %v1455_v1 = vadd.f32 %v1454_v8, %v1453_v47  ;;  %v1663_v26 = vadd.f32 %v1662_v6, %v1661_v34  ;;  %v1871_v43 = vadd.f32 %v1870_v20, %v1869_v0  ;;  %v5442_v8 = vld [vmem:[#allocation11_spill] sm:$0xff] }
 0x2f9   :  { %v2079_v32 = vadd.f32 %v2078_v52, %v2077_v19  ;;  %v627_v3 = vadd.f32 %v626_v53, %v625_v58  ;;  %v835_v44 = vadd.f32 %v834_v54, %v833_v60  ;;  %v1043_v5 = vadd.f32 %v1042_v15, %v1041_v12  ;;  %v5439_v19 = vld [vmem:[#allocation8_spill] sm:$0xff]  ;;  %v5440_v60 = vld [vmem:[#allocation9_spill] sm:$0xff] }
 0x2fa   :  { %v1251_v33 = vadd.f32 %v1250_v28, %v1249_v10  ;;  %v1456_v57 = vrot.slane %v1455_v1, 2  ;;  %v1664_v59 = vrot.slane %v1663_v26, 2  ;;  %v1872_v18 = vrot.slane %v1871_v43, 2  ;;  %v3754_v20 = vld [vmem:[%s5367_s3 + $0x18] sm:$0xff]  ;;  %v3761_v53 = vld [vmem:[%s5367_s3 + $0x28] sm:$0xff] }
 0x2fb   :  { %v2080_v29 = vrot.slane %v2079_v32, 2  ;;  %v3686_v56 = vsel %vm5400_vm2, %v627_v3, %v3620_v17  ;;  %v3690_v22 = vsel %vm5400_vm2, %v835_v44, %v3624_v41  ;;  %v3694_v30 = vsel %vm5400_vm2, %v1043_v5, %v3628_v36 }
 0x2fc   :  { %v3698_v27 = vsel %vm5400_vm2, %v1251_v33, %v3632_v14  ;;  %v1457_v35 = vadd.f32 %v1456_v57, %v1455_v1  ;;  %v1665_v38 = vadd.f32 %v1664_v59, %v1663_v26  ;;  %v1873_v37 = vadd.f32 %v1872_v18, %v1871_v43 }
 0x2fd   :  { %v2081_v39 = vadd.f32 %v2080_v29, %v2079_v32  ;;  %v537_v17 = vsub.f32 %v5437_v50, %v3216_v63  ;;  %v745_v48 = vsub.f32 %v5437_v50, %v3232_v2  ;;  %v953_v41 = vsub.f32 %v5437_v50, %v3250_v4  ;;  %v3779_v29 = vpop.f32.mrb[10].mxu0 }
 0x2fe   :  { %v1161_v36 = vsub.f32 %v5437_v50, %v5438_v25  ;;  %v1458_v51 = vrot.slane %v1457_v35, 1  ;;  %v1666_v24 = vrot.slane %v1665_v38, 1  ;;  %v1874_v14 = vrot.slane %v1873_v37, 1  ;;  %5444 = vst [vmem:[#allocation12_spill] sm:$0xff] %v3779_v29 }
 0x2ff   :  { %v2082_v7 = vrot.slane %v2081_v39, 1  ;;  %v569_v45 = vmul.f32 %v537_v17, %v537_v17  ;;  %v777_v21 = vmul.f32 %v745_v48, %v745_v48  ;;  %v985_v9 = vmul.f32 %v953_v41, %v953_v41  ;;  %v3803_v48 = vld [vmem:[%s5367_s3 + $0x58] sm:$0xff] }
 0x300   :  { %v1193_v11 = vmul.f32 %v1161_v36, %v1161_v36  ;;  %v1459_v46 = vadd.f32 %v1458_v51, %v1457_v35  ;;  %v1667_v13 = vadd.f32 %v1666_v24, %v1665_v38  ;;  %v1875_v63 = vadd.f32 %v1874_v14, %v1873_v37  ;;  %v3814_v51 = vld [vmem:[%s5367_s3] sm:$0xff]  ;;  %v5445_v24 = vld [vmem:[#allocation14_spill] sm:$0xff] }
 0x301   :  { %v2083_v49 = vadd.f32 %v2082_v7, %v2081_v39  ;;  %v3709_v2 = vsel %vm129_vm4, %v569_v45, 0.0  ;;  %v3712_v4 = vsel %vm129_vm4, %v777_v21, 0.0  ;;  %v3715_v23 = vsel %vm129_vm4, %v985_v9, 0.0  ;;  %v3821_v7 = vld [vmem:[%s5367_s3 + $0x10] sm:$0xff]  ;;  %v3828_v21 = vld [vmem:[%s5367_s3 + $0x20] sm:$0xff] }
 0x302   :  { %v3718_v40 = vsel %vm129_vm4, %v1193_v11, 0.0  ;;  %v3722_v42 = vsel %vm5400_vm2, %v1459_v46, %v3650_v61  ;;  %v3726_v47 = vsel %vm5400_vm2, %v1667_v13, %v3654_v16  ;;  %v3730_v34 = vsel %vm5400_vm2, %v1875_v63, %v3658_v62  ;;  %v5441_v61 = vld [vmem:[#allocation10_spill] sm:$0xff] }
 0x303   :  { %v3734_v0 = vsel %vm5400_vm2, %v2083_v49, %v3662_v31  ;;  %v1369_v58 = vsub.f32 %v5437_v50, %v5439_v19  ;;  %v1577_v12 = vsub.f32 %v5437_v50, %v5440_v60  ;;  %v1785_v10 = vsub.f32 %v5437_v50, %v5441_v61  ;;  %v3747_v62 = vld [vmem:[%s5367_s3 + $0x8] sm:$0xff]  ;;  %v3835_v11 = vld [vmem:[%s5367_s3 + $0x30] sm:$0xff] }
 0x304   :  { %v1993_v16 = vsub.f32 %v5437_v50, %v5442_v8  ;;  %v5443_v31 = vld [vmem:[#allocation13_spill] sm:$0xff]  ;;  %v536_v14 = vsub.f32 %v5445_v24, %v3814_v51  ;;  %v744_v45 = vsub.f32 %v5445_v24, %v3821_v7  ;;  %v952_v9 = vsub.f32 %v5445_v24, %v3828_v21 }
 0x305   :  { %v539_v6 = vsub.f32 %v5443_v31, %v3747_v62  ;;  %v747_v52 = vsub.f32 %v5443_v31, %v3754_v20  ;;  %v955_v54 = vsub.f32 %v5443_v31, %v3761_v53  ;;  %v1163_v15 = vsub.f32 %v5443_v31, %v5438_v25  ;;  %v3796_v50 = vld [vmem:[%s5367_s3 + $0x48] sm:$0xff] }
 0x306   :  { %v1401_v28 = vmul.f32 %v1369_v58, %v1369_v58  ;;  %v1609_v1 = vmul.f32 %v1577_v12, %v1577_v12  ;;  %v1817_v26 = vmul.f32 %v1785_v10, %v1785_v10  ;;  %v2025_v43 = vmul.f32 %v1993_v16, %v1993_v16 }
 0x307   :  { %v571_v32 = vmul.f32 %v539_v6, %v539_v6  ;;  %v779_v3 = vmul.f32 %v747_v52, %v747_v52  ;;  %v987_v44 = vmul.f32 %v955_v54, %v955_v54  ;;  %v1195_v5 = vmul.f32 %v1163_v15, %v1163_v15  ;;  %v3851_v6 = vpop.f32.mrb[9].mxu1 }
 0x308   :  { %v3768_v33 = vsel %vm129_vm4, %v1401_v28, 0.0  ;;  %v3771_v57 = vsel %vm129_vm4, %v1609_v1, 0.0  ;;  %v3774_v59 = vsel %vm129_vm4, %v1817_v26, 0.0  ;;  %v3777_v18 = vsel %vm129_vm4, %v2025_v43, 0.0  ;;  %5446 = vst [vmem:[#allocation7_spill] sm:$0xff] %v3851_v6 }
 0x309   :  { %v3782_v35 = vsel %vm129_vm4, %v571_v32, 0.0  ;;  %v3785_v38 = vsel %vm129_vm4, %v779_v3, 0.0  ;;  %v3788_v37 = vsel %vm129_vm4, %v987_v44, 0.0  ;;  %v3791_v39 = vsel %vm129_vm4, %v1195_v5, 0.0  ;;  %v3864_v3 = vld [vmem:[%s5367_s3 + $0x40] sm:$0xff]  ;;  %v3871_v5 = vld [vmem:[%s5367_s3 + $0x50] sm:$0xff] }
 0x30a   :  { %v1371_v17 = vsub.f32 %v5443_v31, %v3796_v50  ;;  %v1579_v41 = vsub.f32 %v5443_v31, %v3803_v48  ;;  %v1787_v25 = vsub.f32 %v5443_v31, %v5441_v61  ;;  %v1995_v36 = vsub.f32 %v5443_v31, %v5442_v8 }
 0x30b   :  { %v1160_v46 = vsub.f32 %v5445_v24, %v3835_v11  ;;  %v568_v58 = vmul.f32 %v536_v14, %v536_v14  ;;  %v776_v60 = vmul.f32 %v744_v45, %v744_v45  ;;  %v984_v12 = vmul.f32 %v952_v9, %v952_v9 }
 0x30c   :  { %v1403_v13 = vmul.f32 %v1371_v17, %v1371_v17  ;;  %v1611_v63 = vmul.f32 %v1579_v41, %v1579_v41  ;;  %v1819_v49 = vmul.f32 %v1787_v25, %v1787_v25  ;;  %v2027_v19 = vmul.f32 %v1995_v36, %v1995_v36 }
 0x30d   :  { %v1192_v61 = vmul.f32 %v1160_v46, %v1160_v46  ;;  %v628_v52 = vsel %vm129_vm4, %v568_v58, 0.0  ;;  %v836_v54 = vsel %vm129_vm4, %v776_v60, 0.0  ;;  %v1044_v15 = vsel %vm129_vm4, %v984_v12, 0.0 }
 0x30e   :  { %v3840_v10 = vsel %vm129_vm4, %v1403_v13, 0.0  ;;  %v3843_v8 = vsel %vm129_vm4, %v1611_v63, 0.0  ;;  %v3846_v16 = vsel %vm129_vm4, %v1819_v49, 0.0  ;;  %v3849_v31 = vsel %vm129_vm4, %v2027_v19, 0.0 }
 0x30f   :  { %v1252_v28 = vsel %vm129_vm4, %v1192_v61, 0.0  ;;  %v630_v1 = vadd.f32 %v3709_v2, %v628_v52  ;;  %v838_v26 = vadd.f32 %v3712_v4, %v836_v54  ;;  %v1046_v43 = vadd.f32 %v3715_v23, %v1044_v15  ;;  %v3878_v4 = vld [vmem:[%s5367_s3 + $0x60] sm:$0xff] }
 0x310   :  { %v1254_v32 = vadd.f32 %v3718_v40, %v1252_v28  ;;  %v1368_v44 = vsub.f32 %v5445_v24, %v3864_v3  ;;  %v1576_v2 = vsub.f32 %v5445_v24, %v3871_v5  ;;  %v1784_v23 = vsub.f32 %v5445_v24, %v3878_v4  ;;  %v3885_v40 = vld [vmem:[%s5367_s3 + $0x70] sm:$0xff] }
 0x311   :  { %v1992_v17 = vsub.f32 %v5445_v24, %v3885_v40  ;;  %v631_v41 = vrot.slane %v630_v1, 4  ;;  %v839_v25 = vrot.slane %v838_v26, 4  ;;  %v1047_v36 = vrot.slane %v1046_v43, 4 }
 0x312   :  { %v1255_v14 = vrot.slane %v1254_v32, 4  ;;  %v1400_v45 = vmul.f32 %v1368_v44, %v1368_v44  ;;  %v1608_v9 = vmul.f32 %v1576_v2, %v1576_v2  ;;  %v1816_v46 = vmul.f32 %v1784_v23, %v1784_v23 }
 0x313   :  { %v2024_v13 = vmul.f32 %v1992_v17, %v1992_v17  ;;  %v632_v63 = vadd.f32 %v631_v41, %v630_v1  ;;  %v840_v49 = vadd.f32 %v839_v25, %v838_v26  ;;  %v1048_v19 = vadd.f32 %v1047_v36, %v1046_v43 }
 0x314   :  { %v1256_v58 = vadd.f32 %v1255_v14, %v1254_v32  ;;  %v1460_v60 = vsel %vm129_vm4, %v1400_v45, 0.0  ;;  %v1668_v12 = vsel %vm129_vm4, %v1608_v9, 0.0  ;;  %v1876_v61 = vsel %vm129_vm4, %v1816_v46, 0.0 }
 0x315   :  { %v2084_v24 = vsel %vm129_vm4, %v2024_v13, 0.0  ;;  %v633_v52 = vrot.slane %v632_v63, 2  ;;  %v841_v54 = vrot.slane %v840_v49, 2  ;;  %v1049_v15 = vrot.slane %v1048_v19, 2 }
 0x316   :  { %v1257_v28 = vrot.slane %v1256_v58, 2  ;;  %v1462_v44 = vadd.f32 %v3768_v33, %v1460_v60  ;;  %v1670_v2 = vadd.f32 %v3771_v57, %v1668_v12  ;;  %v1878_v1 = vadd.f32 %v3774_v59, %v1876_v61  ;;  %v3897_v12 = vpop.f32.mrb[11].mxu0 }
 0x317   :  { %v2086_v26 = vadd.f32 %v3777_v18, %v2084_v24  ;;  %v634_v43 = vadd.f32 %v633_v52, %v632_v63  ;;  %v842_v32 = vadd.f32 %v841_v54, %v840_v49  ;;  %v1050_v23 = vadd.f32 %v1049_v15, %v1048_v19  ;;  %5447 = vst [vmem:[#allocation8_spill] sm:$0xff] %v3897_v12  ;;  %v5448_v52 = vld [vmem:[#allocation15_spill] sm:$0xff] }
 0x318   :  { %v1258_v17 = vadd.f32 %v1257_v28, %v1256_v58  ;;  %v1463_v41 = vrot.slane %v1462_v44, 4  ;;  %v1671_v25 = vrot.slane %v1670_v2, 4  ;;  %v1879_v36 = vrot.slane %v1878_v1, 4 }
 0x319   :  { %v2087_v14 = vrot.slane %v2086_v26, 4  ;;  %v635_v45 = vrot.slane %v634_v43, 1  ;;  %v843_v9 = vrot.slane %v842_v32, 1  ;;  %v1051_v46 = vrot.slane %v1050_v23, 1 }
 0x31a   :  { %v1259_v13 = vrot.slane %v1258_v17, 1  ;;  %v1464_v6 = vadd.f32 %v1463_v41, %v1462_v44  ;;  %v1672_v33 = vadd.f32 %v1671_v25, %v1670_v2  ;;  %v1880_v60 = vadd.f32 %v1879_v36, %v1878_v1 }
 0x31b   :  { %v2088_v57 = vadd.f32 %v2087_v14, %v2086_v26  ;;  %v636_v59 = vadd.f32 %v635_v45, %v634_v43  ;;  %v844_v18 = vadd.f32 %v843_v9, %v842_v32  ;;  %v1052_v63 = vadd.f32 %v1051_v46, %v1050_v23 }
 0x31c   :  { %v1260_v49 = vadd.f32 %v1259_v13, %v1258_v17  ;;  %v1465_v19 = vrot.slane %v1464_v6, 2  ;;  %v1673_v58 = vrot.slane %v1672_v33, 2  ;;  %v1881_v61 = vrot.slane %v1880_v60, 2 }
 0x31d   :  { %v2089_v24 = vrot.slane %v2088_v57, 2  ;;  %v538_v54 = vsub.f32 %v5448_v52, %v3814_v51  ;;  %v746_v15 = vsub.f32 %v5448_v52, %v3821_v7  ;;  %v954_v28 = vsub.f32 %v5448_v52, %v3828_v21 }
 0x31e   :  { %v1466_v44 = vadd.f32 %v1465_v19, %v1464_v6  ;;  %v1674_v2 = vadd.f32 %v1673_v58, %v1672_v33  ;;  %v1882_v1 = vadd.f32 %v1881_v61, %v1880_v60  ;;  %v3907_v43 = vsel %vm5399_vm3, %v636_v59, %v3686_v56 }
 0x31f   :  { %v2090_v26 = vadd.f32 %v2089_v24, %v2088_v57  ;;  %v3911_v32 = vsel %vm5399_vm3, %v844_v18, %v3690_v22  ;;  %v3915_v23 = vsel %vm5399_vm3, %v1052_v63, %v3694_v30  ;;  %v3919_v17 = vsel %vm5399_vm3, %v1260_v49, %v3698_v27 }
 0x320   :  { %v1467_v6 = vrot.slane %v1466_v44, 1  ;;  %v1675_v41 = vrot.slane %v1674_v2, 1  ;;  %v1883_v25 = vrot.slane %v1882_v1, 1  ;;  %v570_v14 = vmul.f32 %v538_v54, %v538_v54 }
 0x321   :  { %v2091_v36 = vrot.slane %v2090_v26, 1  ;;  %v778_v45 = vmul.f32 %v746_v15, %v746_v15  ;;  %v986_v56 = vmul.f32 %v954_v28, %v954_v28  ;;  %v1162_v9 = vsub.f32 %v5448_v52, %v3835_v11 }
 0x322   :  { %v1468_v22 = vadd.f32 %v1467_v6, %v1466_v44  ;;  %v1676_v46 = vadd.f32 %v1675_v41, %v1674_v2  ;;  %v1884_v13 = vadd.f32 %v1883_v25, %v1882_v1  ;;  %v637_v30 = vsel %vm129_vm4, %v570_v14, 0.0 }
 0x323   :  { %v2092_v33 = vadd.f32 %v2091_v36, %v2090_v26  ;;  %v845_v60 = vsel %vm129_vm4, %v778_v45, 0.0  ;;  %v1053_v27 = vsel %vm129_vm4, %v986_v56, 0.0  ;;  %v1194_v57 = vmul.f32 %v1162_v9, %v1162_v9 }
 0x324   :  { %v3928_v59 = vsel %vm5399_vm3, %v1468_v22, %v3722_v42  ;;  %v3932_v18 = vsel %vm5399_vm3, %v1676_v46, %v3726_v47  ;;  %v3936_v63 = vsel %vm5399_vm3, %v1884_v13, %v3730_v34  ;;  %v639_v19 = vadd.f32 %v3782_v35, %v637_v30 }
 0x325   :  { %v3940_v49 = vsel %vm5399_vm3, %v2092_v33, %v3734_v0  ;;  %v847_v58 = vadd.f32 %v3785_v38, %v845_v60  ;;  %v1055_v61 = vadd.f32 %v3788_v37, %v1053_v27  ;;  %v1261_v42 = vsel %vm129_vm4, %v1194_v57, 0.0 }
 0x326   :  { %v1263_v24 = vadd.f32 %v3791_v39, %v1261_v42  ;;  %v1370_v47 = vsub.f32 %v5448_v52, %v3864_v3  ;;  %v1578_v34 = vsub.f32 %v5448_v52, %v3871_v5  ;;  %v1786_v0 = vsub.f32 %v5448_v52, %v3878_v4 }
 0x327   :  { %v640_v54 = vrot.slane %v639_v19, 4  ;;  %v848_v15 = vrot.slane %v847_v58, 4  ;;  %v1056_v35 = vrot.slane %v1055_v61, 4  ;;  %v1994_v38 = vsub.f32 %v5448_v52, %v3885_v40 }
 0x328   :  { %v1264_v37 = vrot.slane %v1263_v24, 4  ;;  %v1402_v28 = vmul.f32 %v1370_v47, %v1370_v47  ;;  %v1610_v44 = vmul.f32 %v1578_v34, %v1578_v34  ;;  %v1818_v2 = vmul.f32 %v1786_v0, %v1786_v0 }
 0x329   :  { %v641_v39 = vadd.f32 %v640_v54, %v639_v19  ;;  %v849_v1 = vadd.f32 %v848_v15, %v847_v58  ;;  %v1057_v26 = vadd.f32 %v1056_v35, %v1055_v61  ;;  %v2026_v6 = vmul.f32 %v1994_v38, %v1994_v38 }
 0x32a   :  { %v1265_v41 = vadd.f32 %v1264_v37, %v1263_v24  ;;  %v1469_v25 = vsel %vm129_vm4, %v1402_v28, 0.0  ;;  %v1677_v36 = vsel %vm129_vm4, %v1610_v44, 0.0  ;;  %v1885_v14 = vsel %vm129_vm4, %v1818_v2, 0.0 }
 0x32b   :  { %v642_v45 = vrot.slane %v641_v39, 2  ;;  %v850_v56 = vrot.slane %v849_v1, 2  ;;  %v1058_v9 = vrot.slane %v1057_v26, 2  ;;  %v1471_v52 = vadd.f32 %v3840_v10, %v1469_v25 }
 0x32c   :  { %v1266_v22 = vrot.slane %v1265_v41, 2  ;;  %v1679_v46 = vadd.f32 %v3843_v8, %v1677_v36  ;;  %v1887_v13 = vadd.f32 %v3846_v16, %v1885_v14  ;;  %v2093_v33 = vsel %vm129_vm4, %v2026_v6, 0.0 }
 0x32d   :  { %v643_v30 = vadd.f32 %v642_v45, %v641_v39  ;;  %v851_v60 = vadd.f32 %v850_v56, %v849_v1  ;;  %v1059_v27 = vadd.f32 %v1058_v9, %v1057_v26  ;;  %v1472_v57 = vrot.slane %v1471_v52, 4  ;;  %v3963_v1 = vpop.f32.mrb[10].mxu1 }
 0x32e   :  { %v1267_v19 = vadd.f32 %v1266_v22, %v1265_v41  ;;  %v1680_v58 = vrot.slane %v1679_v46, 4  ;;  %v1888_v61 = vrot.slane %v1887_v13, 4  ;;  %v2095_v42 = vadd.f32 %v3849_v31, %v2093_v33  ;;  %5449 = vst [vmem:[#allocation9_spill] sm:$0xff] %v3963_v1  ;;  %v5450_v31 = vld [vmem:[#allocation16_spill] sm:$0xff] }
 0x32f   :  { %v644_v24 = vrot.slane %v643_v30, 1  ;;  %v852_v47 = vrot.slane %v851_v60, 1  ;;  %v1060_v34 = vrot.slane %v1059_v27, 1  ;;  %v1473_v10 = vadd.f32 %v1472_v57, %v1471_v52 }
 0x330   :  { %v1268_v0 = vrot.slane %v1267_v19, 1  ;;  %v1681_v54 = vadd.f32 %v1680_v58, %v1679_v46  ;;  %v1889_v8 = vadd.f32 %v1888_v61, %v1887_v13  ;;  %v2096_v15 = vrot.slane %v2095_v42, 4 }
 0x331   :  { %v645_v16 = vadd.f32 %v644_v24, %v643_v30  ;;  %v853_v35 = vadd.f32 %v852_v47, %v851_v60  ;;  %v1061_v38 = vadd.f32 %v1060_v34, %v1059_v27  ;;  %v1474_v37 = vrot.slane %v1473_v10, 2 }
 0x332   :  { %v1269_v28 = vadd.f32 %v1268_v0, %v1267_v19  ;;  %v1682_v44 = vrot.slane %v1681_v54, 2  ;;  %v1890_v2 = vrot.slane %v1889_v8, 2  ;;  %v2097_v39 = vadd.f32 %v2096_v15, %v2095_v42 }
 0x333   :  { %v1475_v26 = vadd.f32 %v1474_v37, %v1473_v10  ;;  %v541_v6 = vsub.f32 %v5450_v31, %v3747_v62  ;;  %v749_v41 = vsub.f32 %v5450_v31, %v3754_v20  ;;  %v3971_v45 = vsel %vm5398_vm5, %v645_v16, %v3907_v43  ;;  %v4019_v16 = vld [vmem:[%s5367_s3 + $0x68] sm:$0xff] }
 0x334   :  { %v1683_v25 = vadd.f32 %v1682_v44, %v1681_v54  ;;  %v1891_v36 = vadd.f32 %v1890_v2, %v1889_v8  ;;  %v2098_v14 = vrot.slane %v2097_v39, 2  ;;  %v3975_v9 = vsel %vm5398_vm5, %v853_v35, %v3911_v32  ;;  %v3990_v32 = vld [vmem:[%s5367_s3 + $0x38] sm:$0xff] }
 0x335   :  { %v1476_v56 = vrot.slane %v1475_v26, 1  ;;  %v3979_v52 = vsel %vm5398_vm5, %v1061_v38, %v3915_v23  ;;  %v3983_v22 = vsel %vm5398_vm5, %v1269_v28, %v3919_v17  ;;  %v573_v30 = vmul.f32 %v541_v6, %v541_v6  ;;  %v4030_v38 = vld [vmem:[%s5367_s3 + $0x78] sm:$0xff]  ;;  %v5452_v28 = vld [vmem:[#allocation17_spill] sm:$0xff]  ;;  %v4040_v6 = vpop.f32.mrb[12].mxu0 }
 0x336   :  { %v1684_v46 = vrot.slane %v1683_v25, 1  ;;  %v1892_v13 = vrot.slane %v1891_v36, 1  ;;  %v2099_v33 = vadd.f32 %v2098_v14, %v2097_v39  ;;  %v781_v43 = vmul.f32 %v749_v41, %v749_v41  ;;  %5451 = vst [vmem:[#allocation10_spill] sm:$0xff] %v4030_v38  ;;  %5453 = vst [vmem:[#allocation11_spill] sm:$0xff] %v4040_v6  ;;  %v4109_v12 = vpop.f32.mrb[13].mxu0 }
 0x337   :  { %v1477_v60 = vadd.f32 %v1476_v56, %v1475_v26  ;;  %v957_v27 = vsub.f32 %v5450_v31, %v3761_v53  ;;  %v1165_v23 = vsub.f32 %v5450_v31, %v3990_v32  ;;  %v647_v58 = vsel %vm129_vm4, %v573_v30, 0.0  ;;  %5456 = vst [vmem:[#allocation14_spill] sm:$0xff] %v4109_v12 }
 0x338   :  { %v1685_v57 = vadd.f32 %v1684_v46, %v1683_v25  ;;  %v1893_v17 = vadd.f32 %v1892_v13, %v1891_v36  ;;  %v2100_v19 = vrot.slane %v2099_v33, 1  ;;  %v4000_v42 = vsel %vm129_vm4, %v781_v43, 0.0 }
 0x339   :  { %v3997_v61 = vsel %vm5398_vm5, %v1477_v60, %v3928_v59  ;;  %v989_v24 = vmul.f32 %v957_v27, %v957_v27  ;;  %v1197_v47 = vmul.f32 %v1165_v23, %v1165_v23  ;;  %v1373_v54 = vsub.f32 %v5450_v31, %v3796_v50 }
 0x33a   :  { %v2101_v34 = vadd.f32 %v2100_v19, %v2099_v33  ;;  %v4004_v10 = vsel %vm5398_vm5, %v1685_v57, %v3932_v18  ;;  %v4008_v0 = vsel %vm5398_vm5, %v1893_v17, %v3936_v63  ;;  %v1581_v15 = vsub.f32 %v5450_v31, %v3803_v48 }
 0x33b   :  { %v1063_v59 = vsel %vm129_vm4, %v989_v24, 0.0  ;;  %v1271_v8 = vsel %vm129_vm4, %v1197_v47, 0.0  ;;  %v1789_v18 = vsub.f32 %v5450_v31, %v4019_v16  ;;  %v1405_v35 = vmul.f32 %v1373_v54, %v1373_v54 }
 0x33c   :  { %v4025_v63 = vsel %vm5398_vm5, %v2101_v34, %v3940_v49  ;;  %v1997_v37 = vsub.f32 %v5450_v31, %v4030_v38  ;;  %v543_v44 = vsub.f32 %v5452_v28, %v3747_v62  ;;  %v1613_v2 = vmul.f32 %v1581_v15, %v1581_v15  ;;  %v5454_v34 = vld [vmem:[#allocation18_spill] sm:$0xff] }
 0x33d   :  { %v1821_v39 = vmul.f32 %v1789_v18, %v1789_v18  ;;  %v751_v26 = vsub.f32 %v5452_v28, %v3754_v20  ;;  %v959_v49 = vsub.f32 %v5452_v28, %v3761_v53  ;;  %v1479_v41 = vsel %vm129_vm4, %v1405_v35, 0.0 }
 0x33e   :  { %v2029_v25 = vmul.f32 %v1997_v37, %v1997_v37  ;;  %v575_v36 = vmul.f32 %v543_v44, %v543_v44  ;;  %v1167_v31 = vsub.f32 %v5452_v28, %v3990_v32  ;;  %v1687_v14 = vsel %vm129_vm4, %v1613_v2, 0.0  ;;  %v4078_v44 = vpop.f32.mrb[11].mxu1 }
 0x33f   :  { %v4047_v56 = vsel %vm129_vm4, %v1821_v39, 0.0  ;;  %v783_v46 = vmul.f32 %v751_v26, %v751_v26  ;;  %v991_v13 = vmul.f32 %v959_v49, %v959_v49  ;;  %v1375_v43 = vsub.f32 %v5452_v28, %v3796_v50  ;;  %5455 = vst [vmem:[#allocation13_spill] sm:$0xff] %v4078_v44 }
 0x340   :  { %v4050_v33 = vsel %vm129_vm4, %v2029_v25, 0.0  ;;  %v4053_v30 = vsel %vm129_vm4, %v575_v36, 0.0  ;;  %v1199_v60 = vmul.f32 %v1167_v31, %v1167_v31  ;;  %v1583_v57 = vsub.f32 %v5452_v28, %v3803_v48 }
 0x341   :  { %v4058_v27 = vsel %vm129_vm4, %v783_v46, 0.0  ;;  %v4061_v23 = vsel %vm129_vm4, %v991_v13, 0.0  ;;  %v1791_v17 = vsub.f32 %v5452_v28, %v4019_v16  ;;  %v1407_v24 = vmul.f32 %v1375_v43, %v1375_v43 }
 0x342   :  { %v4068_v19 = vsel %vm129_vm4, %v1199_v60, 0.0  ;;  %v1999_v47 = vsub.f32 %v5452_v28, %v4030_v38  ;;  %v540_v54 = vsub.f32 %v5454_v34, %v3814_v51  ;;  %v1615_v15 = vmul.f32 %v1583_v57, %v1583_v57 }
 0x343   :  { %v1823_v18 = vmul.f32 %v1791_v17, %v1791_v17  ;;  %v748_v35 = vsub.f32 %v5454_v34, %v3821_v7  ;;  %v956_v37 = vsub.f32 %v5454_v34, %v3828_v21  ;;  %v4081_v2 = vsel %vm129_vm4, %v1407_v24, 0.0 }
 0x344   :  { %v2031_v39 = vmul.f32 %v1999_v47, %v1999_v47  ;;  %v572_v26 = vmul.f32 %v540_v54, %v540_v54  ;;  %v1164_v28 = vsub.f32 %v5454_v34, %v3835_v11  ;;  %v4086_v49 = vsel %vm129_vm4, %v1615_v15, 0.0 }
 0x345   :  { %v4089_v25 = vsel %vm129_vm4, %v1823_v18, 0.0  ;;  %v780_v36 = vmul.f32 %v748_v35, %v748_v35  ;;  %v988_v31 = vmul.f32 %v956_v37, %v956_v37  ;;  %v1372_v43 = vsub.f32 %v5454_v34, %v3864_v3 }
 0x346   :  { %v4092_v46 = vsel %vm129_vm4, %v2031_v39, 0.0  ;;  %v646_v13 = vsel %vm129_vm4, %v572_v26, 0.0  ;;  %v1196_v60 = vmul.f32 %v1164_v28, %v1164_v28  ;;  %v1580_v47 = vsub.f32 %v5454_v34, %v3871_v5 }
 0x347   :  { %v648_v57 = vadd.f32 %v647_v58, %v646_v13  ;;  %v854_v17 = vsel %vm129_vm4, %v780_v36, 0.0  ;;  %v1062_v24 = vsel %vm129_vm4, %v988_v31, 0.0  ;;  %v1404_v35 = vmul.f32 %v1372_v43, %v1372_v43 }
 0x348   :  { %v856_v54 = vadd.f32 %v4000_v42, %v854_v17  ;;  %v1064_v15 = vadd.f32 %v1063_v59, %v1062_v24  ;;  %v1270_v18 = vsel %vm129_vm4, %v1196_v60, 0.0  ;;  %v1612_v26 = vmul.f32 %v1580_v47, %v1580_v47 }
 0x349   :  { %v649_v37 = vrot.slane %v648_v57, 4  ;;  %v1272_v39 = vadd.f32 %v1271_v8, %v1270_v18  ;;  %v1788_v28 = vsub.f32 %v5454_v34, %v3878_v4  ;;  %v1478_v36 = vsel %vm129_vm4, %v1404_v35, 0.0 }
 0x34a   :  { %v857_v58 = vrot.slane %v856_v54, 4  ;;  %v1065_v13 = vrot.slane %v1064_v15, 4  ;;  %v1996_v31 = vsub.f32 %v5454_v34, %v3885_v40  ;;  %v1480_v42 = vadd.f32 %v1479_v41, %v1478_v36 }
 0x34b   :  { %v650_v44 = vadd.f32 %v649_v37, %v648_v57  ;;  %v1273_v6 = vrot.slane %v1272_v39, 4  ;;  %v1686_v59 = vsel %vm129_vm4, %v1612_v26, 0.0  ;;  %v1820_v8 = vmul.f32 %v1788_v28, %v1788_v28 }
 0x34c   :  { %v858_v60 = vadd.f32 %v857_v58, %v856_v54  ;;  %v1066_v43 = vadd.f32 %v1065_v13, %v1064_v15  ;;  %v1688_v17 = vadd.f32 %v1687_v14, %v1686_v59  ;;  %v1481_v18 = vrot.slane %v1480_v42, 4 }
 0x34d   :  { %v651_v24 = vrot.slane %v650_v44, 2  ;;  %v1274_v47 = vadd.f32 %v1273_v6, %v1272_v39  ;;  %v2028_v1 = vmul.f32 %v1996_v31, %v1996_v31  ;;  %v1894_v34 = vsel %vm129_vm4, %v1820_v8, 0.0 }
 0x34e   :  { %v859_v29 = vrot.slane %v858_v60, 2  ;;  %v1067_v35 = vrot.slane %v1066_v43, 2  ;;  %v1689_v38 = vrot.slane %v1688_v17, 4  ;;  %v1482_v41 = vadd.f32 %v1481_v18, %v1480_v42 }
 0x34f   :  { %v652_v57 = vadd.f32 %v651_v24, %v650_v44  ;;  %v1275_v37 = vrot.slane %v1274_v47, 2  ;;  %v1896_v26 = vadd.f32 %v4047_v56, %v1894_v34  ;;  %v2102_v28 = vsel %vm129_vm4, %v2028_v1, 0.0 }
 0x350   :  { %v860_v54 = vadd.f32 %v859_v29, %v858_v60  ;;  %v1068_v15 = vadd.f32 %v1067_v35, %v1066_v43  ;;  %v1690_v14 = vadd.f32 %v1689_v38, %v1688_v17  ;;  %v1483_v58 = vrot.slane %v1482_v41, 2 }
 0x351   :  { %v653_v6 = vrot.slane %v652_v57, 1  ;;  %v1276_v39 = vadd.f32 %v1275_v37, %v1274_v47  ;;  %v1897_v13 = vrot.slane %v1896_v26, 4  ;;  %v2104_v12 = vadd.f32 %v4050_v33, %v2102_v28 }
 0x352   :  { %v861_v36 = vrot.slane %v860_v54, 1  ;;  %v1069_v31 = vrot.slane %v1068_v15, 1  ;;  %v1691_v59 = vrot.slane %v1690_v14, 2  ;;  %v1484_v24 = vadd.f32 %v1483_v58, %v1482_v41 }
 0x353   :  { %v654_v8 = vadd.f32 %v653_v6, %v652_v57  ;;  %v1277_v44 = vrot.slane %v1276_v39, 1  ;;  %v1898_v42 = vadd.f32 %v1897_v13, %v1896_v26  ;;  %v2105_v60 = vrot.slane %v2104_v12, 4 }
 0x354   :  { %v862_v18 = vadd.f32 %v861_v36, %v860_v54  ;;  %v1070_v56 = vadd.f32 %v1069_v31, %v1068_v15  ;;  %v1692_v29 = vadd.f32 %v1691_v59, %v1690_v14  ;;  %v1485_v43 = vrot.slane %v1484_v24, 1  ;;  %v5457_v54 = vld [vmem:[#allocation19_spill] sm:$0xff] }
 0x355   :  { %v1278_v38 = vadd.f32 %v1277_v44, %v1276_v39  ;;  %v1899_v1 = vrot.slane %v1898_v42, 2  ;;  %v2106_v47 = vadd.f32 %v2105_v60, %v2104_v12  ;;  %v4117_v35 = vsel %vm5397_vm6, %v654_v8, %v3971_v45 }
 0x356   :  { %v1693_v17 = vrot.slane %v1692_v29, 1  ;;  %v4121_v33 = vsel %vm5397_vm6, %v862_v18, %v3975_v9  ;;  %v1486_v34 = vadd.f32 %v1485_v43, %v1484_v24  ;;  %v4125_v37 = vsel %vm5397_vm6, %v1070_v56, %v3979_v52 }
 0x357   :  { %v1900_v57 = vadd.f32 %v1899_v1, %v1898_v42  ;;  %v4129_v41 = vsel %vm5397_vm6, %v1278_v38, %v3983_v22  ;;  %v2107_v12 = vrot.slane %v2106_v47, 2  ;;  %v542_v45 = vsub.f32 %v5457_v54, %v3814_v51 }
 0x358   :  { %v1694_v26 = vadd.f32 %v1693_v17, %v1692_v29  ;;  %v750_v15 = vsub.f32 %v5457_v54, %v3821_v7  ;;  %v4137_v14 = vsel %vm5397_vm6, %v1486_v34, %v3997_v61  ;;  %v958_v52 = vsub.f32 %v5457_v54, %v3828_v21 }
 0x359   :  { %v1901_v9 = vrot.slane %v1900_v57, 1  ;;  %v1166_v22 = vsub.f32 %v5457_v54, %v3835_v11  ;;  %v2108_v28 = vadd.f32 %v2107_v12, %v2106_v47  ;;  %v574_v51 = vmul.f32 %v542_v45, %v542_v45 }
 0x35a   :  { %v4145_v6 = vsel %vm5397_vm6, %v1694_v26, %v4004_v10  ;;  %v782_v39 = vmul.f32 %v750_v15, %v750_v15  ;;  %v990_v7 = vmul.f32 %v958_v52, %v958_v52  ;;  %v1374_v61 = vsub.f32 %v5457_v54, %v3864_v3 }
 0x35b   :  { %v1902_v58 = vadd.f32 %v1901_v9, %v1900_v57  ;;  %v1198_v13 = vmul.f32 %v1166_v22, %v1166_v22  ;;  %v2109_v36 = vrot.slane %v2108_v28, 1  ;;  %v655_v31 = vsel %vm129_vm4, %v574_v51, 0.0 }
 0x35c   :  { %v863_v21 = vsel %vm129_vm4, %v782_v39, 0.0  ;;  %v1582_v11 = vsub.f32 %v5457_v54, %v3871_v5  ;;  %v657_v59 = vadd.f32 %v4053_v30, %v655_v31  ;;  %v1071_v44 = vsel %vm129_vm4, %v990_v7, 0.0  ;;  %v4178_v31 = vpop.f32.mrb[12].mxu1 }
 0x35d   :  { %v4155_v10 = vsel %vm5397_vm6, %v1902_v58, %v4008_v0  ;;  %v865_v8 = vadd.f32 %v4058_v27, %v863_v21  ;;  %v2110_v24 = vadd.f32 %v2109_v36, %v2108_v28  ;;  %v1073_v3 = vadd.f32 %v4061_v23, %v1071_v44 }
 0x35e   :  { %v1279_v42 = vsel %vm129_vm4, %v1198_v13, 0.0  ;;  %v1406_v18 = vmul.f32 %v1374_v61, %v1374_v61  ;;  %v658_v56 = vrot.slane %v657_v59, 4  ;;  %v1614_v60 = vmul.f32 %v1582_v11, %v1582_v11 }
 0x35f   :  { %v866_v29 = vrot.slane %v865_v8, 4  ;;  %v1281_v5 = vadd.f32 %v4068_v19, %v1279_v42  ;;  %v4165_v0 = vsel %vm5397_vm6, %v2110_v24, %v4025_v63  ;;  %v1074_v30 = vrot.slane %v1073_v3, 4 }
 0x360   :  { %v1487_v27 = vsel %vm129_vm4, %v1406_v18, 0.0  ;;  %v1790_v38 = vsub.f32 %v5457_v54, %v3878_v4  ;;  %v659_v43 = vadd.f32 %v658_v56, %v657_v59  ;;  %v1695_v34 = vsel %vm129_vm4, %v1614_v60, 0.0 }
 0x361   :  { %v867_v23 = vadd.f32 %v866_v29, %v865_v8  ;;  %v1282_v1 = vrot.slane %v1281_v5, 4  ;;  %v1489_v17 = vadd.f32 %v4081_v2, %v1487_v27  ;;  %v1075_v47 = vadd.f32 %v1074_v30, %v1073_v3 }
 0x362   :  { %v1822_v19 = vmul.f32 %v1790_v38, %v1790_v38  ;;  %v1998_v57 = vsub.f32 %v5457_v54, %v3885_v40  ;;  %v660_v63 = vrot.slane %v659_v43, 2  ;;  %v1697_v9 = vadd.f32 %v4086_v49, %v1695_v34 }
 0x363   :  { %v868_v26 = vrot.slane %v867_v23, 2  ;;  %v1283_v12 = vadd.f32 %v1282_v1, %v1281_v5  ;;  %v1490_v45 = vrot.slane %v1489_v17, 4  ;;  %v1076_v15 = vrot.slane %v1075_v47, 2 }
 0x364   :  { %v1903_v4 = vsel %vm129_vm4, %v1822_v19, 0.0  ;;  %v2030_v52 = vmul.f32 %v1998_v57, %v1998_v57  ;;  %v661_v22 = vadd.f32 %v660_v63, %v659_v43  ;;  %v1698_v58 = vrot.slane %v1697_v9, 4 }
 0x365   :  { %v869_v28 = vadd.f32 %v868_v26, %v867_v23  ;;  %v1284_v2 = vrot.slane %v1283_v12, 2  ;;  %v1491_v51 = vadd.f32 %v1490_v45, %v1489_v17  ;;  %v1077_v39 = vadd.f32 %v1076_v15, %v1075_v47 }
 0x366   :  { %v1905_v7 = vadd.f32 %v4089_v25, %v1903_v4  ;;  %v2111_v40 = vsel %vm129_vm4, %v2030_v52, 0.0  ;;  %v662_v54 = vrot.slane %v661_v22, 1  ;;  %v1699_v21 = vadd.f32 %v1698_v58, %v1697_v9 }
 0x367   :  { %v870_v13 = vrot.slane %v869_v28, 1  ;;  %v1285_v61 = vadd.f32 %v1284_v2, %v1283_v12  ;;  %v1492_v36 = vrot.slane %v1491_v51, 2  ;;  %v1078_v49 = vrot.slane %v1077_v39, 1 }
 0x368   :  { %v1906_v11 = vrot.slane %v1905_v7, 4  ;;  %v2113_v59 = vadd.f32 %v4092_v46, %v2111_v40  ;;  %v663_v8 = vadd.f32 %v662_v54, %v661_v22  ;;  %v1700_v18 = vrot.slane %v1699_v21, 2  ;;  %v4210_v22 = vpop.f32.mrb[14].mxu0 }
 0x369   :  { %v871_v44 = vadd.f32 %v870_v13, %v869_v28  ;;  %v1286_v24 = vrot.slane %v1285_v61, 1  ;;  %v1493_v3 = vadd.f32 %v1492_v36, %v1491_v51  ;;  %v1079_v42 = vadd.f32 %v1078_v49, %v1077_v39  ;;  %5458 = vst [vmem:[#allocation15_spill] sm:$0xff] %v4210_v22  ;;  %v4236_v39 = vpop.f32.mrb[13].mxu1 }
 0x36a   :  { %v1907_v25 = vadd.f32 %v1906_v11, %v1905_v7  ;;  %v2114_v56 = vrot.slane %v2113_v59, 4  ;;  %v1701_v60 = vadd.f32 %v1700_v18, %v1699_v21  ;;  %v2221_v38 = vsel %vm5396_vm7, %v663_v8, %v4117_v35  ;;  %5460 = vst [vmem:[#allocation17_spill] sm:$0xff] %v4236_v39 }
 0x36b   :  { %v1287_v29 = vadd.f32 %v1286_v24, %v1285_v61  ;;  %v1494_v5 = vrot.slane %v1493_v3, 1  ;;  %v2253_v46 = vsel %vm5396_vm7, %v871_v44, %v4121_v33  ;;  %v2285_v23 = vsel %vm5396_vm7, %v1079_v42, %v4125_v37 }
 0x36c   :  { %v1908_v30 = vrot.slane %v1907_v25, 2  ;;  %v2115_v27 = vadd.f32 %v2114_v56, %v2113_v59  ;;  %v1702_v17 = vrot.slane %v1701_v60, 1  ;;  %v4189_v19 = vmax.f32 %v2221_v38, 1e-12 }
 0x36d   :  { %v1495_v43 = vadd.f32 %v1494_v5, %v1493_v3  ;;  %v2317_v1 = vsel %vm5396_vm7, %v1287_v29, %v4129_v41  ;;  %v4193_v63 = vmax.f32 %v2253_v46, 1e-12  ;;  %v4195_v33 = vmax.f32 %v2285_v23, 1e-12 }
 0x36e   :  { %v1909_v47 = vadd.f32 %v1908_v30, %v1907_v25  ;;  %v2116_v34 = vrot.slane %v2115_v27, 2  ;;  %v1703_v35 = vadd.f32 %v1702_v17, %v1701_v60  ;;  %v4197_v45 = vmax.f32 %v2317_v1, 1e-12 }
 0x36f   :  { %v2349_v57 = vsel %vm5396_vm7, %v1495_v43, %v4137_v14  ;;  %3014 = vrsqrt.f32 %v4189_v19  ;;  %v545_v2 = vsub.f32 %v3634_v55, %v3747_v62  ;;  %vm2473_vm8 = vcmp.eq.f32.partialorder %v4189_v19, inf }
 0x370   :  { %v1910_v26 = vrot.slane %v1909_v47, 1  ;;  %v2117_v12 = vadd.f32 %v2116_v34, %v2115_v27  ;;  %v2381_v15 = vsel %vm5396_vm7, %v1703_v35, %v4145_v6  ;;  %3016 = vrsqrt.f32 %v4193_v63 }
 0x371   :  { %v4203_v9 = vmax.f32 %v2349_v57, 1e-12  ;;  %v4207_v52 = vmax.f32 %v2381_v15, 1e-12  ;;  %3018 = vrsqrt.f32 %v4195_v33  ;;  %vm2475_vm9 = vcmp.eq.f32.partialorder %v4189_v19, 0.0 }
 0x372   :  { %v1911_v37 = vadd.f32 %v1910_v26, %v1909_v47  ;;  %v2118_v41 = vrot.slane %v2117_v12, 1  ;;  %3020 = vrsqrt.f32 %v4197_v45  ;;  %vm2487_vm10 = vcmp.eq.f32.partialorder %v4193_v63, inf }
 0x373   :  { %3022 = vrsqrt.f32 %v4203_v9  ;;  %vm2489_vm11 = vcmp.eq.f32.partialorder %v4193_v63, 0.0  ;;  %vm2501_vm12 = vcmp.eq.f32.partialorder %v4195_v33, inf  ;;  %vm2503_vm13 = vcmp.eq.f32.partialorder %v4195_v33, 0.0 }
 0x374   :  { %v2119_v14 = vadd.f32 %v2118_v41, %v2117_v12  ;;  %v2413_v4 = vsel %vm5396_vm7, %v1911_v37, %v4155_v10  ;;  %v2476_v10 = vand.u32 2147483648, %v4189_v19  ;;  %3024 = vrsqrt.f32 %v4207_v52 }
 0x375   :  { %v4212_v28 = vmax.f32 %v2413_v4, 1e-12  ;;  %v2504_v62 = vand.u32 2147483648, %v4195_v33  ;;  %vm2515_vm14 = vcmp.eq.f32.partialorder %v4197_v45, inf  ;;  %vm2517_vm15 = vcmp.eq.f32.partialorder %v4197_v45, 0.0 }
 0x376   :  { %v2445_v6 = vsel %vm5396_vm7, %v2119_v14, %v4165_v0  ;;  %v2490_v0 = vand.u32 2147483648, %v4193_v63  ;;  %v2518_v7 = vand.u32 2147483648, %v4197_v45  ;;  %vm2529_vm7 = vcmp.eq.f32.partialorder %v4203_v9, inf  ;;  %v4296_v14 = vpop.f32.mrb[15].mxu0 }
 0x377   :  { %v4219_v51 = vmax.f32 %v2445_v6, 1e-12  ;;  %3026 = vrsqrt.f32 %v4212_v28  ;;  %v2532_v40 = vand.u32 2147483648, %v4203_v9  ;;  %v577_v54 = vmul.f32 %v545_v2, %v545_v2  ;;  %5461 = vst [vmem:[#allocation18_spill] sm:$0xff] %v4296_v14 }
 0x378   :  { %vm2531_vm6 = vcmp.eq.f32.partialorder %v4203_v9, 0.0  ;;  %vm2543_vm5 = vcmp.eq.f32.partialorder %v4207_v52, inf  ;;  %v2546_v36 = vand.u32 2147483648, %v4207_v52  ;;  %v753_v49 = vsub.f32 %v3634_v55, %v3754_v20 }
 0x379   :  { %5459 = vst [vmem:[#allocation16_spill] sm:$0xff] %v4219_v51  ;;  %3028 = vrsqrt.f32 %v4219_v51  ;;  %v3015_v58 = vpop.eup %3014  ;;  %v961_v21 = vsub.f32 %v3634_v55, %v3761_v53  ;;  %vm2557_vm3 = vcmp.eq.f32.partialorder %v4212_v28, inf  ;;  %v1169_v59 = vsub.f32 %v3634_v55, %v3990_v32  ;;  %v4488_v53 = vpop.f32.mrb[14].mxu1 }
 0x37a   :  { %v3017_v13 = vpop.eup %3016  ;;  %v2472_v61 = vmul.f32 %v3015_v58, %v4189_v19  ;;  %v1377_v8 = vsub.f32 %v3634_v55, %v3796_v50  ;;  %vm2545_vm2 = vcmp.eq.f32.partialorder %v4207_v52, 0.0  ;;  %v2560_v20 = vand.u32 2147483648, %v4212_v28  ;;  %5474 = vst [vmem:[#allocation25_spill] sm:$0xff] %v4488_v53 }
 0x37b   :  { %v2486_v11 = vmul.f32 %v3017_v13, %v4193_v63  ;;  %v3019_v44 = vpop.eup %3018  ;;  %v1585_v3 = vsub.f32 %v3634_v55, %v3803_v48  ;;  %v4270_v56 = vsel %vm129_vm4, %v577_v54, 0.0  ;;  %vm2571_vm1 = vcmp.eq.f32.partialorder %v4219_v51, inf  ;;  %v5462_v54 = vld [vmem:[#allocation10_spill] sm:$0xff] }
 0x37c   :  { %v2474_v24 = vsel %vm2473_vm8, %v4189_v19, %v2472_v61  ;;  %v3021_v42 = vpop.eup %3020  ;;  %v2500_v25 = vmul.f32 %v3019_v44, %v4195_v33  ;;  %vm2559_vm8 = vcmp.eq.f32.partialorder %v4212_v28, 0.0  ;;  %v785_v48 = vmul.f32 %v753_v49, %v753_v49  ;;  %v4337_v49 = vld [vmem:[%s5367_s3 + $0x8] sm:$0xff] }
 0x37d   :  { %v2477_v18 = vsel %vm2475_vm9, %v2476_v10, %v2474_v24  ;;  %v2488_v50 = vsel %vm2487_vm10, %v4193_v63, %v2486_v11  ;;  %v2514_v5 = vmul.f32 %v3021_v42, %v4197_v45  ;;  %v993_v60 = vmul.f32 %v961_v21, %v961_v21  ;;  %v3023_v30 = vpop.eup %3022  ;;  %v5465_v21 = vld [vmem:[#allocation12_spill] sm:$0xff]  ;;  %v4353_v44 = vld [vmem:[%s5367_s3 + $0x28] sm:$0xff] }
 0x37e   :  { %v2491_v29 = vsel %vm2489_vm11, %v2490_v0, %v2488_v50  ;;  %v2502_v27 = vsel %vm2501_vm12, %v4195_v33, %v2500_v25  ;;  %v2583_v38 = vmul.f32 0.5, %v2477_v18  ;;  %v1201_v43 = vmul.f32 %v1169_v59, %v1169_v59  ;;  %v3025_v23 = vpop.eup %3024 }
 0x37f   :  { %v1409_v46 = vmul.f32 %v1377_v8, %v1377_v8  ;;  %v2505_v1 = vsel %vm2503_vm13, %v2504_v62, %v2502_v27  ;;  %v2516_v17 = vsel %vm2515_vm14, %v4197_v45, %v2514_v5  ;;  %v2528_v47 = vmul.f32 %v3023_v30, %v4203_v9 }
 0x380   :  { %v2585_v34 = vmul.f32 0.5, %v2491_v29  ;;  %v2519_v57 = vsel %vm2517_vm15, %v2518_v7, %v2516_v17  ;;  %v2542_v63 = vmul.f32 %v3025_v23, %v4207_v52  ;;  %v2587_v35 = vmul.f32 0.5, %v2505_v1  ;;  %v4368_v29 = vld [vmem:[%s5367_s3 + $0x48] sm:$0xff] }
 0x381   :  { %v3027_v19 = vpop.eup %3026  ;;  %v1617_v26 = vmul.f32 %v1585_v3, %v1585_v3  ;;  %v2530_v33 = vsel %vm2529_vm7, %v4203_v9, %v2528_v47  ;;  %v2589_v41 = vmul.f32 0.5, %v2519_v57  ;;  %v4294_v15 = vsel %vm129_vm4, %v785_v48, 0.0 }
 0x382   :  { %v2556_v37 = vmul.f32 %v3027_v19, %v4212_v28  ;;  %v2533_v45 = vsel %vm2531_vm6, %v2532_v40, %v2530_v33  ;;  %v2544_v4 = vsel %vm2543_vm5, %v4207_v52, %v2542_v63  ;;  %3030 = vtanh.f32 %v2583_v38  ;;  %v5469_v19 = vld [vmem:[#allocation7_spill] sm:$0xff] }
 0x383   :  { %v3029_v12 = vpop.eup %3028  ;;  %3032 = vtanh.f32 %v2585_v34  ;;  %v4308_v10 = vsel %vm129_vm4, %v993_v60, 0.0  ;;  %v4311_v0 = vsel %vm129_vm4, %v1201_v43, 0.0  ;;  %v2547_v9 = vsel %vm2545_vm2, %v2546_v36, %v2544_v4 }
 0x384   :  { %v2570_v6 = vmul.f32 %v3029_v12, %v4219_v51  ;;  %v2558_v2 = vsel %vm2557_vm3, %v4212_v28, %v2556_v37  ;;  %v2591_v62 = vmul.f32 0.5, %v2533_v45  ;;  %3034 = vtanh.f32 %v2587_v35  ;;  %v4346_v28 = vld [vmem:[%s5367_s3 + $0x18] sm:$0xff]  ;;  %v4412_v12 = vld [vmem:[%s5367_s3 + $0x10] sm:$0xff]  ;;  %v4419_v37 = vld [vmem:[%s5367_s3 + $0x20] sm:$0xff] }
 0x385   :  { %v1793_v58 = vsub.f32 %v3634_v55, %v4019_v16  ;;  %3036 = vtanh.f32 %v2589_v41  ;;  %v4318_v7 = vsel %vm129_vm4, %v1409_v46, 0.0  ;;  %v4321_v40 = vsel %vm129_vm4, %v1617_v26, 0.0 }
 0x386   :  { %v2001_v13 = vsub.f32 %v3634_v55, %v5462_v54  ;;  %v4327_v61 = vsel %vm2559_vm8, %v2560_v20, %v2558_v2  ;;  %v4332_v52 = vsel %vm2571_vm1, %v4219_v51, %v2570_v6  ;;  %v547_v11 = vsub.f32 %v5465_v21, %v4337_v49 }
 0x387   :  { %5463 = vst [vmem:[#allocation19_spill] sm:$0xff] %v4327_v61  ;;  %5464 = vst [vmem:[#allocation10_spill] sm:$0xff] %v4332_v52  ;;  %v1825_v36 = vmul.f32 %v1793_v58, %v1793_v58  ;;  %v4341_v59 = vmul.f32 0.5, %v2547_v9  ;;  %v755_v8 = vsub.f32 %v5465_v21, %v4346_v28  ;;  %v963_v24 = vsub.f32 %v5465_v21, %v4353_v44  ;;  %v4434_v9 = vld [vmem:[%s5367_s3 + $0x30] sm:$0xff] }
 0x388   :  { %v2033_v55 = vmul.f32 %v2001_v13, %v2001_v13  ;;  %3038 = vtanh.f32 %v2591_v62  ;;  %v579_v3 = vmul.f32 %v547_v11, %v547_v11  ;;  %v1171_v42 = vsub.f32 %v5465_v21, %v3990_v32  ;;  %v4378_v32 = vld [vmem:[%s5367_s3 + $0x58] sm:$0xff] }
 0x389   :  { %5466 = vst [vmem:[#allocation12_spill] sm:$0xff] %v4341_v59  ;;  %v4358_v20 = vsel %vm129_vm4, %v1825_v36, 0.0  ;;  %v787_v50 = vmul.f32 %v755_v8, %v755_v8  ;;  %v995_v25 = vmul.f32 %v963_v24, %v963_v24  ;;  %v1379_v5 = vsub.f32 %v5465_v21, %v4368_v29  ;;  %5467 = vst [vmem:[#allocation20_spill] sm:$0xff] %v4378_v32  ;;  %v4454_v24 = vld [vmem:[%s5367_s3 + $0x50] sm:$0xff] }
 0x38a   :  { %v4363_v18 = vsel %vm129_vm4, %v2033_v55, 0.0  ;;  %v4373_v48 = vsel %vm129_vm4, %v579_v3, 0.0  ;;  %v1203_v60 = vmul.f32 %v1171_v42, %v1171_v42  ;;  %v1587_v30 = vsub.f32 %v5465_v21, %v4378_v32  ;;  %v4461_v42 = vld [vmem:[%s5367_s3 + $0x60] sm:$0xff] }
 0x38b   :  { %v1795_v27 = vsub.f32 %v5465_v21, %v4019_v16  ;;  %v4385_v38 = vsel %vm129_vm4, %v787_v50, 0.0  ;;  %v4388_v43 = vsel %vm129_vm4, %v995_v25, 0.0  ;;  %v1411_v46 = vmul.f32 %v1379_v5, %v1379_v5  ;;  %v4400_v16 = vld [vmem:[%s5367_s3] sm:$0xff] }
 0x38c   :  { %v2003_v23 = vsub.f32 %v5465_v21, %v5462_v54  ;;  %v4392_v1 = vpop.eup %3030  ;;  %v4395_v17 = vsel %vm129_vm4, %v1203_v60, 0.0  ;;  %v1619_v47 = vmul.f32 %v1587_v30, %v1587_v30  ;;  %v544_v57 = vsub.f32 %v5469_v19, %v4400_v16  ;;  %v4446_v21 = vld [vmem:[%s5367_s3 + $0x40] sm:$0xff] }
 0x38d   :  { %5468 = vst [vmem:[#allocation21_spill] sm:$0xff] %v4392_v1  ;;  %v1827_v34 = vmul.f32 %v1795_v27, %v1795_v27  ;;  %v4404_v63 = vpop.eup %3032  ;;  %v4407_v35 = vsel %vm129_vm4, %v1411_v46, 0.0  ;;  %v752_v33 = vsub.f32 %v5469_v19, %v4412_v12  ;;  %v960_v41 = vsub.f32 %v5469_v19, %v4419_v37 }
 0x38e   :  { %5470 = vst [vmem:[#allocation7_spill] sm:$0xff] %v4404_v63  ;;  %v2035_v26 = vmul.f32 %v2003_v23, %v2003_v23  ;;  %v4423_v45 = vpop.eup %3034  ;;  %v4426_v4 = vsel %vm129_vm4, %v1619_v47, 0.0  ;;  %v576_v2 = vmul.f32 %v544_v57, %v544_v57  ;;  %v1168_v62 = vsub.f32 %v5469_v19, %v4434_v9 }
 0x38f   :  { %5471 = vst [vmem:[#allocation22_spill] sm:$0xff] %v4423_v45  ;;  %v4429_v6 = vsel %vm129_vm4, %v1827_v34, 0.0  ;;  %v4438_v58 = vpop.eup %3036  ;;  %v784_v13 = vmul.f32 %v752_v33, %v752_v33  ;;  %v992_v36 = vmul.f32 %v960_v41, %v960_v41  ;;  %v1376_v11 = vsub.f32 %v5469_v19, %v4446_v21 }
 0x390   :  { %5472 = vst [vmem:[#allocation23_spill] sm:$0xff] %v4438_v58  ;;  %v4441_v54 = vsel %vm129_vm4, %v2035_v26, 0.0  ;;  %v664_v55 = vsel %vm129_vm4, %v576_v2, 0.0  ;;  %v1200_v8 = vmul.f32 %v1168_v62, %v1168_v62  ;;  %v1584_v3 = vsub.f32 %v5469_v19, %v4454_v24 }
 0x391   :  { %v1792_v50 = vsub.f32 %v5469_v19, %v4461_v42  ;;  %v666_v25 = vadd.f32 %v4270_v56, %v664_v55  ;;  %v872_v5 = vsel %vm129_vm4, %v784_v13, 0.0  ;;  %v1080_v60 = vsel %vm129_vm4, %v992_v36, 0.0 }
 0x392   :  { %v1408_v30 = vmul.f32 %v1376_v11, %v1376_v11  ;;  %v4468_v27 = vpop.eup %3038  ;;  %v874_v46 = vadd.f32 %v4294_v15, %v872_v5  ;;  %v1082_v23 = vadd.f32 %v4308_v10, %v1080_v60  ;;  %v1288_v47 = vsel %vm129_vm4, %v1200_v8, 0.0 }
 0x393   :  { %5473 = vst [vmem:[#allocation24_spill] sm:$0xff] %v4468_v27  ;;  %v1616_v34 = vmul.f32 %v1584_v3, %v1584_v3  ;;  %v667_v57 = vrot.slane %v666_v25, 4  ;;  %v1290_v26 = vadd.f32 %v4311_v0, %v1288_v47  ;;  %v1824_v56 = vmul.f32 %v1792_v50, %v1792_v50 }
 0x394   :  { %v1496_v33 = vsel %vm129_vm4, %v1408_v30, 0.0  ;;  %v875_v41 = vrot.slane %v874_v46, 4  ;;  %v1083_v2 = vrot.slane %v1082_v23, 4  ;;  %vm5493_vm10 = vcmask 1043459  }
 0x395   :  { %v1498_v62 = vadd.f32 %v4318_v7, %v1496_v33  ;;  %v1704_v13 = vsel %vm129_vm4, %v1616_v34, 0.0  ;;  %v668_v36 = vadd.f32 %v667_v57, %v666_v25  ;;  %v1291_v11 = vrot.slane %v1290_v26, 4  ;;  %v4483_v7 = vld [vmem:[%s5367_s3 + $0x70] sm:$0xff]  ;;  %vm5494_vm11 = vmmov %vm5493_vm10 }
 0x396   :  { %v1706_v15 = vadd.f32 %v4321_v40, %v1704_v13  ;;  %v1912_v10 = vsel %vm129_vm4, %v1824_v56, 0.0  ;;  %v876_v55 = vadd.f32 %v875_v41, %v874_v46  ;;  %v1084_v8 = vadd.f32 %v1083_v2, %v1082_v23  ;;  %vm5495_vm12 = vmmov %vm5493_vm10 }
 0x397   :  { %v1499_v3 = vrot.slane %v1498_v62, 4  ;;  %v1914_v0 = vadd.f32 %v4358_v20, %v1912_v10  ;;  %v669_v5 = vrot.slane %v668_v36, 2  ;;  %v1292_v60 = vadd.f32 %v1291_v11, %v1290_v26  ;;  %vm5496_vm13 = vmmov %vm5493_vm10 }
 0x398   :  { %v1707_v50 = vrot.slane %v1706_v15, 4  ;;  %v2000_v25 = vsub.f32 %v5469_v19, %v4483_v7  ;;  %v877_v30 = vrot.slane %v876_v55, 2  ;;  %v1085_v40 = vrot.slane %v1084_v8, 2  ;;  %vm5497_vm14 = vmmov %vm5493_vm10 }
 0x399   :  { %v1500_v47 = vadd.f32 %v1499_v3, %v1498_v62  ;;  %v1915_v34 = vrot.slane %v1914_v0, 4  ;;  %v670_v46 = vadd.f32 %v669_v5, %v668_v36  ;;  %v1293_v23 = vrot.slane %v1292_v60, 2  ;;  %vm5498_vm15 = vmmov %vm5493_vm10 }
 0x39a   :  { %v1708_v57 = vadd.f32 %v1707_v50, %v1706_v15  ;;  %v2032_v33 = vmul.f32 %v2000_v25, %v2000_v25  ;;  %v878_v20 = vadd.f32 %v877_v30, %v876_v55  ;;  %v1086_v56 = vadd.f32 %v1085_v40, %v1084_v8  ;;  %v5475_v40 = vld [vmem:[#allocation8_spill] sm:$0xff]  ;;  %vm5502_vm8 = vmmov %vm5493_vm10 }
 0x39b   :  { %v1501_v26 = vrot.slane %v1500_v47, 2  ;;  %v1916_v41 = vadd.f32 %v1915_v34, %v1914_v0  ;;  %v671_v2 = vrot.slane %v670_v46, 1  ;;  %v1294_v13 = vadd.f32 %v1293_v23, %v1292_v60 }
 0x39c   :  { %v1709_v11 = vrot.slane %v1708_v57, 2  ;;  %v2120_v10 = vsel %vm129_vm4, %v2032_v33, 0.0  ;;  %v879_v19 = vrot.slane %v878_v20, 1  ;;  %v1087_v27 = vrot.slane %v1086_v56, 1 }
 0x39d   :  { %v1502_v58 = vadd.f32 %v1501_v26, %v1500_v47  ;;  %v1917_v62 = vrot.slane %v1916_v41, 2  ;;  %v4490_v3 = vadd.f32 %v671_v2, %v670_v46  ;;  %v1295_v36 = vrot.slane %v1294_v13, 1 }
 0x39e   :  { %v1710_v15 = vadd.f32 %v1709_v11, %v1708_v57  ;;  %v2122_v55 = vadd.f32 %v4363_v18, %v2120_v10  ;;  %v4493_v8 = vadd.f32 %v879_v19, %v878_v20  ;;  %v4495_v0 = vadd.f32 %v1087_v27, %v1086_v56 }
 0x39f   :  { %v1503_v5 = vrot.slane %v1502_v58, 1  ;;  %v1918_v60 = vadd.f32 %v1917_v62, %v1916_v41  ;;  %v4497_v50 = vadd.f32 %v1295_v36, %v1294_v13  ;;  %v546_v47 = vsub.f32 %v5475_v40, %v4400_v16 }
 0x3a0   :  { %v1711_v25 = vrot.slane %v1710_v15, 1  ;;  %v2123_v30 = vrot.slane %v2122_v55, 4  ;;  %v754_v23 = vsub.f32 %v5475_v40, %v4412_v12  ;;  %v962_v18 = vsub.f32 %v5475_v40, %v4419_v37 }
 0x3a1   :  { %v4501_v34 = vadd.f32 %v1503_v5, %v1502_v58  ;;  %v1919_v46 = vrot.slane %v1918_v60, 1  ;;  %v578_v33 = vmul.f32 %v546_v47, %v546_v47  ;;  %v1170_v20 = vsub.f32 %v5475_v40, %v4434_v9 }
 0x3a2   :  { %v4507_v27 = vadd.f32 %v1711_v25, %v1710_v15  ;;  %v2124_v57 = vadd.f32 %v2123_v30, %v2122_v55  ;;  %v786_v26 = vmul.f32 %v754_v23, %v754_v23  ;;  %v994_v41 = vmul.f32 %v962_v18, %v962_v18  ;;  %v4526_v18 = vpop.f32.mrb[16].mxu0 }
 0x3a3   :  { %v4511_v56 = vadd.f32 %v1919_v46, %v1918_v60  ;;  %v1378_v58 = vsub.f32 %v5475_v40, %v4446_v21  ;;  %v673_v13 = vsel %vm129_vm4, %v578_v33, 0.0  ;;  %v1202_v11 = vmul.f32 %v1170_v20, %v1170_v20  ;;  %5476 = vst [vmem:[#allocation8_spill] sm:$0xff] %v4526_v18 }
 0x3a4   :  { %v2125_v2 = vrot.slane %v2124_v57, 2  ;;  %v1586_v10 = vsub.f32 %v5475_v40, %v4454_v24  ;;  %v675_v19 = vadd.f32 %v4373_v48, %v673_v13  ;;  %v881_v62 = vsel %vm129_vm4, %v786_v26, 0.0 }
 0x3a5   :  { %v1089_v36 = vsel %vm129_vm4, %v994_v41, 0.0  ;;  %v1410_v15 = vmul.f32 %v1378_v58, %v1378_v58  ;;  %v883_v5 = vadd.f32 %v4385_v38, %v881_v62  ;;  %v1297_v25 = vsel %vm129_vm4, %v1202_v11, 0.0 }
 0x3a6   :  { %v2126_v55 = vadd.f32 %v2125_v2, %v2124_v57  ;;  %v1091_v60 = vadd.f32 %v4388_v43, %v1089_v36  ;;  %v676_v30 = vrot.slane %v675_v19, 4  ;;  %v1299_v47 = vadd.f32 %v4395_v17, %v1297_v25 }
 0x3a7   :  { %v1505_v46 = vsel %vm129_vm4, %v1410_v15, 0.0  ;;  %v1618_v23 = vmul.f32 %v1586_v10, %v1586_v10  ;;  %v884_v33 = vrot.slane %v883_v5, 4  ;;  %v1794_v43 = vsub.f32 %v5475_v40, %v4461_v42 }
 0x3a8   :  { %v2127_v48 = vrot.slane %v2126_v55, 1  ;;  %v1092_v20 = vrot.slane %v1091_v60, 4  ;;  %v1507_v26 = vadd.f32 %v4407_v35, %v1505_v46  ;;  %v677_v57 = vadd.f32 %v676_v30, %v675_v19  ;;  %v4537_v30 = vpop.f32.mrb[15].mxu1 }
 0x3a9   :  { %v1300_v41 = vrot.slane %v1299_v47, 4  ;;  %v1713_v38 = vsel %vm129_vm4, %v1618_v23, 0.0  ;;  %v885_v17 = vadd.f32 %v884_v33, %v883_v5  ;;  %v1826_v36 = vmul.f32 %v1794_v43, %v1794_v43  ;;  %5477 = vst [vmem:[#allocation26_spill] sm:$0xff] %v4537_v30 }
 0x3aa   :  { %v4532_v58 = vadd.f32 %v2127_v48, %v2126_v55  ;;  %v1093_v2 = vadd.f32 %v1092_v20, %v1091_v60  ;;  %v1508_v13 = vrot.slane %v1507_v26, 4  ;;  %v678_v11 = vrot.slane %v677_v57, 2 }
 0x3ab   :  { %v1301_v10 = vadd.f32 %v1300_v41, %v1299_v47  ;;  %v1715_v62 = vadd.f32 %v4426_v4, %v1713_v38  ;;  %v886_v15 = vrot.slane %v885_v17, 2  ;;  %v2002_v19 = vsub.f32 %v5475_v40, %v4483_v7 }
 0x3ac   :  { %v1094_v25 = vrot.slane %v1093_v2, 2  ;;  %v1509_v35 = vadd.f32 %v1508_v13, %v1507_v26  ;;  %v679_v46 = vadd.f32 %v678_v11, %v677_v57  ;;  %v1921_v5 = vsel %vm129_vm4, %v1826_v36, 0.0 }
 0x3ad   :  { %v1302_v23 = vrot.slane %v1301_v10, 2  ;;  %v1716_v55 = vrot.slane %v1715_v62, 4  ;;  %v887_v60 = vadd.f32 %v886_v15, %v885_v17  ;;  %v1923_v47 = vadd.f32 %v4429_v6, %v1921_v5 }
 0x3ae   :  { %v1095_v48 = vadd.f32 %v1094_v25, %v1093_v2  ;;  %v1510_v33 = vrot.slane %v1509_v35, 2  ;;  %v680_v4 = vrot.slane %v679_v46, 1  ;;  %v2034_v38 = vmul.f32 %v2002_v19, %v2002_v19 }
 0x3af   :  { %v1303_v20 = vadd.f32 %v1302_v23, %v1301_v10  ;;  %v1717_v41 = vadd.f32 %v1716_v55, %v1715_v62  ;;  %v888_v26 = vrot.slane %v887_v60, 1  ;;  %v1924_v40 = vrot.slane %v1923_v47, 4 }
 0x3b0   :  { %v1096_v43 = vrot.slane %v1095_v48, 1  ;;  %v1511_v13 = vadd.f32 %v1510_v33, %v1509_v35  ;;  %v681_v45 = vadd.f32 %v680_v4, %v679_v46  ;;  %v2129_v11 = vsel %vm129_vm4, %v2034_v38, 0.0 }
 0x3b1   :  { %v1304_v63 = vrot.slane %v1303_v20, 1  ;;  %v1718_v57 = vrot.slane %v1717_v41, 2  ;;  %v889_v1 = vadd.f32 %v888_v26, %v887_v60  ;;  %v1925_v2 = vadd.f32 %v1924_v40, %v1923_v47 }
 0x3b2   :  { %v1097_v36 = vadd.f32 %v1096_v43, %v1095_v48  ;;  %v1512_v17 = vrot.slane %v1511_v13, 1  ;;  %v2131_v6 = vadd.f32 %v4441_v54, %v2129_v11  ;;  %v4545_v10 = vsel %vm2208_vm0, %v681_v45, %v4490_v3  ;;  %v5478_v54 = vld [vmem:[#allocation9_spill] sm:$0xff] }
 0x3b3   :  { %v1305_v15 = vadd.f32 %v1304_v63, %v1303_v20  ;;  %v1719_v25 = vadd.f32 %v1718_v57, %v1717_v41  ;;  %v1926_v35 = vrot.slane %v1925_v2, 2  ;;  %v4549_v19 = vsel %vm2208_vm0, %v889_v1, %v4493_v8 }
 0x3b4   :  { %v1513_v62 = vadd.f32 %v1512_v17, %v1511_v13  ;;  %v4553_v46 = vsel %vm2208_vm0, %v1097_v36, %v4495_v0  ;;  %v2132_v55 = vrot.slane %v2131_v6, 4  ;;  %v549_v45 = vsub.f32 %v5478_v54, %v4337_v49 }
 0x3b5   :  { %v1720_v23 = vrot.slane %v1719_v25, 1  ;;  %v4557_v63 = vsel %vm2208_vm0, %v1305_v15, %v4497_v50  ;;  %v1927_v3 = vadd.f32 %v1926_v35, %v1925_v2  ;;  %v757_v1 = vsub.f32 %v5478_v54, %v4346_v28  ;;  %v4572_v50 = vld [vmem:[%s5367_s3 + $0x38] sm:$0xff] }
 0x3b6   :  { %v4563_v5 = vsel %vm2208_vm0, %v1513_v62, %v4501_v34  ;;  %v965_v8 = vsub.f32 %v5478_v54, %v4353_v44  ;;  %v2133_v60 = vadd.f32 %v2132_v55, %v2131_v6  ;;  %v581_v48 = vmul.f32 %v549_v45, %v549_v45  ;;  %v4605_v62 = vld [vmem:[%s5367_s3 + $0x78] sm:$0xff]  ;;  %v4611_v45 = vpop.f32.mrb[17].mxu0 }
 0x3b7   :  { %v1721_v0 = vadd.f32 %v1720_v23, %v1719_v25  ;;  %v1173_v33 = vsub.f32 %v5478_v54, %v4572_v50  ;;  %v1928_v47 = vrot.slane %v1927_v3, 1  ;;  %v789_v34 = vmul.f32 %v757_v1, %v757_v1  ;;  %5480 = vst [vmem:[#allocation27_spill] sm:$0xff] %v4605_v62  ;;  %v5481_v23 = vld [vmem:[#allocation11_spill] sm:$0xff] }
 0x3b8   :  { %v997_v4 = vmul.f32 %v965_v8, %v965_v8  ;;  %v1381_v20 = vsub.f32 %v5478_v54, %v4368_v29  ;;  %v2134_v41 = vrot.slane %v2133_v60, 2  ;;  %v683_v26 = vsel %vm129_vm4, %v581_v48, 0.0  ;;  %5482 = vst [vmem:[#allocation11_spill] sm:$0xff] %v4611_v45 }
 0x3b9   :  { %v4580_v38 = vsel %vm2208_vm0, %v1721_v0, %v4507_v27  ;;  %v1205_v43 = vmul.f32 %v1173_v33, %v1173_v33  ;;  %v1929_v13 = vadd.f32 %v1928_v47, %v1927_v3  ;;  %v891_v40 = vsel %vm129_vm4, %v789_v34, 0.0  ;;  %v4591_v27 = vld [vmem:[%s5367_s3 + $0x68] sm:$0xff] }
 0x3ba   :  { %v1099_v57 = vsel %vm129_vm4, %v997_v4, 0.0  ;;  %v1413_v11 = vmul.f32 %v1381_v20, %v1381_v20  ;;  %v2135_v36 = vadd.f32 %v2134_v41, %v2133_v60  ;;  %v1589_v2 = vsub.f32 %v5478_v54, %v4378_v32  ;;  %5479 = vst [vmem:[#allocation9_spill] sm:$0xff] %v4591_v27 }
 0x3bb   :  { %v1307_v17 = vsel %vm129_vm4, %v1205_v43, 0.0  ;;  %v1797_v15 = vsub.f32 %v5478_v54, %v4591_v27  ;;  %v4597_v25 = vsel %vm2208_vm0, %v1929_v13, %v4511_v56  ;;  %v2005_v35 = vsub.f32 %v5478_v54, %v4605_v62 }
 0x3bc   :  { %v4600_v6 = vsel %vm129_vm4, %v1413_v11, 0.0  ;;  %v551_v55 = vsub.f32 %v5481_v23, %v4337_v49  ;;  %v2136_v3 = vrot.slane %v2135_v36, 1  ;;  %v1621_v1 = vmul.f32 %v1589_v2, %v1589_v2 }
 0x3bd   :  { %v1829_v56 = vmul.f32 %v1797_v15, %v1797_v15  ;;  %v759_v8 = vsub.f32 %v5481_v23, %v4346_v28  ;;  %v2037_v0 = vmul.f32 %v2005_v35, %v2005_v35  ;;  %v967_v48 = vsub.f32 %v5481_v23, %v4353_v44 }
 0x3be   :  { %v583_v60 = vmul.f32 %v551_v55, %v551_v55  ;;  %v1175_v33 = vsub.f32 %v5481_v23, %v4572_v50  ;;  %v2137_v54 = vadd.f32 %v2136_v3, %v2135_v36  ;;  %v1723_v47 = vsel %vm129_vm4, %v1621_v1, 0.0 }
 0x3bf   :  { %v4621_v34 = vsel %vm129_vm4, %v1829_v56, 0.0  ;;  %v791_v4 = vmul.f32 %v759_v8, %v759_v8  ;;  %v4624_v20 = vsel %vm129_vm4, %v2037_v0, 0.0  ;;  %v999_v43 = vmul.f32 %v967_v48, %v967_v48  ;;  %v5483_v8 = vld [vmem:[#allocation13_spill] sm:$0xff] }
 0x3c0   :  { %v4627_v41 = vsel %vm129_vm4, %v583_v60, 0.0  ;;  %v1207_v13 = vmul.f32 %v1175_v33, %v1175_v33  ;;  %v4631_v11 = vsel %vm2208_vm0, %v2137_v54, %v4532_v58  ;;  %v1383_v2 = vsub.f32 %v5481_v23, %v4368_v29 }
 0x3c1   :  { %v4634_v36 = vsel %vm129_vm4, %v791_v4, 0.0  ;;  %v1591_v15 = vsub.f32 %v5481_v23, %v4378_v32  ;;  %v4641_v35 = vsel %vm129_vm4, %v999_v43, 0.0  ;;  %v1799_v3 = vsub.f32 %v5481_v23, %v4591_v27 }
 0x3c2   :  { %v4644_v55 = vsel %vm129_vm4, %v1207_v13, 0.0  ;;  %v2007_v58 = vsub.f32 %v5481_v23, %v4605_v62  ;;  %v1415_v1 = vmul.f32 %v1383_v2, %v1383_v2  ;;  %v548_v0 = vsub.f32 %v5483_v8, %v4400_v16 }
 0x3c3   :  { %v1623_v56 = vmul.f32 %v1591_v15, %v1591_v15  ;;  %v756_v60 = vsub.f32 %v5483_v8, %v4412_v12  ;;  %v1831_v48 = vmul.f32 %v1799_v3, %v1799_v3  ;;  %v964_v54 = vsub.f32 %v5483_v8, %v4419_v37 }
 0x3c4   :  { %v2039_v33 = vmul.f32 %v2007_v58, %v2007_v58  ;;  %v1172_v4 = vsub.f32 %v5483_v8, %v4434_v9  ;;  %v4659_v43 = vsel %vm129_vm4, %v1415_v1, 0.0  ;;  %v580_v13 = vmul.f32 %v548_v0, %v548_v0 }
 0x3c5   :  { %v4662_v23 = vsel %vm129_vm4, %v1623_v56, 0.0  ;;  %v788_v2 = vmul.f32 %v756_v60, %v756_v60  ;;  %v4665_v15 = vsel %vm129_vm4, %v1831_v48, 0.0  ;;  %v996_v58 = vmul.f32 %v964_v54, %v964_v54 }
 0x3c6   :  { %v4668_v3 = vsel %vm129_vm4, %v2039_v33, 0.0  ;;  %v1204_v59 = vmul.f32 %v1172_v4, %v1172_v4  ;;  %v682_v61 = vsel %vm129_vm4, %v580_v13, 0.0  ;;  %v1380_v1 = vsub.f32 %v5483_v8, %v4446_v21 }
 0x3c7   :  { %v890_v52 = vsel %vm129_vm4, %v788_v2, 0.0  ;;  %v1588_v56 = vsub.f32 %v5483_v8, %v4454_v24  ;;  %v684_v0 = vadd.f32 %v683_v26, %v682_v61  ;;  %v1098_v48 = vsel %vm129_vm4, %v996_v58, 0.0 }
 0x3c8   :  { %v892_v60 = vadd.f32 %v891_v40, %v890_v52  ;;  %v1306_v51 = vsel %vm129_vm4, %v1204_v59, 0.0  ;;  %v1100_v33 = vadd.f32 %v1099_v57, %v1098_v48  ;;  %v1412_v54 = vmul.f32 %v1380_v1, %v1380_v1 }
 0x3c9   :  { %v1308_v45 = vadd.f32 %v1307_v17, %v1306_v51  ;;  %v1620_v4 = vmul.f32 %v1588_v56, %v1588_v56  ;;  %v685_v30 = vrot.slane %v684_v0, 4  ;;  %v1796_v2 = vsub.f32 %v5483_v8, %v4461_v42 }
 0x3ca   :  { %v893_v13 = vrot.slane %v892_v60, 4  ;;  %v2004_v18 = vsub.f32 %v5483_v8, %v4483_v7  ;;  %v1101_v53 = vrot.slane %v1100_v33, 4  ;;  %v1514_v61 = vsel %vm129_vm4, %v1412_v54, 0.0 }
 0x3cb   :  { %v1309_v14 = vrot.slane %v1308_v45, 4  ;;  %v1722_v52 = vsel %vm129_vm4, %v1620_v4, 0.0  ;;  %v686_v26 = vadd.f32 %v685_v30, %v684_v0  ;;  %v1516_v51 = vadd.f32 %v4600_v6, %v1514_v61 }
 0x3cc   :  { %v894_v59 = vadd.f32 %v893_v13, %v892_v60  ;;  %v1724_v40 = vadd.f32 %v1723_v47, %v1722_v52  ;;  %v1102_v57 = vadd.f32 %v1101_v53, %v1100_v33  ;;  %v1828_v58 = vmul.f32 %v1796_v2, %v1796_v2 }
 0x3cd   :  { %v1310_v17 = vadd.f32 %v1309_v14, %v1308_v45  ;;  %v2036_v1 = vmul.f32 %v2004_v18, %v2004_v18  ;;  %v687_v56 = vrot.slane %v686_v26, 2  ;;  %v1517_v39 = vrot.slane %v1516_v51, 4 }
 0x3ce   :  { %v895_v48 = vrot.slane %v894_v59, 2  ;;  %v1725_v22 = vrot.slane %v1724_v40, 4  ;;  %v1103_v8 = vrot.slane %v1102_v57, 2  ;;  %v1930_v27 = vsel %vm129_vm4, %v1828_v58, 0.0 }
 0x3cf   :  { %v1311_v62 = vrot.slane %v1310_v17, 2  ;;  %v2138_v54 = vsel %vm129_vm4, %v2036_v1, 0.0  ;;  %v688_v4 = vadd.f32 %v687_v56, %v686_v26  ;;  %v1518_v0 = vadd.f32 %v1517_v39, %v1516_v51 }
 0x3d0   :  { %v896_v30 = vadd.f32 %v895_v48, %v894_v59  ;;  %v1726_v60 = vadd.f32 %v1725_v22, %v1724_v40  ;;  %v1104_v6 = vadd.f32 %v1103_v8, %v1102_v57  ;;  %v1932_v53 = vadd.f32 %v4621_v34, %v1930_v27 }
 0x3d1   :  { %v1312_v47 = vadd.f32 %v1311_v62, %v1310_v17  ;;  %v2140_v14 = vadd.f32 %v4624_v20, %v2138_v54  ;;  %v689_v18 = vrot.slane %v688_v4, 1  ;;  %v1519_v33 = vrot.slane %v1518_v0, 2 }
 0x3d2   :  { %v897_v45 = vrot.slane %v896_v30, 1  ;;  %v1727_v13 = vrot.slane %v1726_v60, 2  ;;  %v1105_v2 = vrot.slane %v1104_v6, 1  ;;  %v1933_v52 = vrot.slane %v1932_v53, 4 }
 0x3d3   :  { %v1313_v61 = vrot.slane %v1312_v47, 1  ;;  %v2141_v58 = vrot.slane %v2140_v14, 4  ;;  %v690_v32 = vadd.f32 %v689_v18, %v688_v4  ;;  %v1520_v26 = vadd.f32 %v1519_v33, %v1518_v0  ;;  %v5488_v4 = vld [vmem:[#allocation14_spill] sm:$0xff] }
 0x3d4   :  { %v898_v1 = vadd.f32 %v897_v45, %v896_v30  ;;  %v1728_v59 = vadd.f32 %v1727_v13, %v1726_v60  ;;  %v1106_v39 = vadd.f32 %v1105_v2, %v1104_v6  ;;  %v1934_v51 = vadd.f32 %v1933_v52, %v1932_v53 }
 0x3d5   :  { %v1314_v22 = vadd.f32 %v1313_v61, %v1312_v47  ;;  %v2142_v62 = vadd.f32 %v2141_v58, %v2140_v14  ;;  %v1521_v40 = vrot.slane %v1520_v26, 1  ;;  %vm5484_vm0 = vcmask 1042434  }
 0x3d6   :  { %v1729_v27 = vrot.slane %v1728_v59, 1  ;;  %v4691_v34 = vsel %vm5484_vm0, %v690_v32, %v4545_v10  ;;  %vm5485_vm1 = vmmov %vm5484_vm0  ;;  %v1935_v57 = vrot.slane %v1934_v51, 2  ;;  %v550_v32 = vsub.f32 %v5488_v4, %v4400_v16 }
 0x3d7   :  { %v4695_v20 = vsel %vm5485_vm1, %v898_v1, %v4549_v19  ;;  %v2143_v17 = vrot.slane %v2142_v62, 2  ;;  %vm5486_vm2 = vmmov %vm5484_vm0  ;;  %v1522_v8 = vadd.f32 %v1521_v40, %v1520_v26  ;;  %v758_v10 = vsub.f32 %v5488_v4, %v4412_v12 }
 0x3d8   :  { %v4699_v56 = vsel %vm5486_vm2, %v1106_v39, %v4553_v46  ;;  %vm5487_vm3 = vmmov %vm5484_vm0  ;;  %v1730_v54 = vadd.f32 %v1729_v27, %v1728_v59  ;;  %v1936_v19 = vadd.f32 %v1935_v57, %v1934_v51  ;;  %v966_v0 = vsub.f32 %v5488_v4, %v4419_v37 }
 0x3d9   :  { %v4703_v48 = vsel %vm5487_vm3, %v1314_v22, %v4557_v63  ;;  %v2144_v30 = vadd.f32 %v2143_v17, %v2142_v62  ;;  %v1174_v46 = vsub.f32 %v5488_v4, %v4434_v9  ;;  %vm5489_vm5 = vmmov %vm5484_vm0  ;;  %v582_v6 = vmul.f32 %v550_v32, %v550_v32 }
 0x3da   :  { %v4715_v63 = vsel %vm5489_vm5, %v1522_v8, %v4563_v5  ;;  %vm5490_vm6 = vmmov %vm5484_vm0  ;;  %v790_v47 = vmul.f32 %v758_v10, %v758_v10  ;;  %v1937_v53 = vrot.slane %v1936_v19, 1  ;;  %v998_v18 = vmul.f32 %v966_v0, %v966_v0 }
 0x3db   :  { %v4719_v60 = vsel %vm5490_vm6, %v1730_v54, %v4580_v38  ;;  %v2145_v14 = vrot.slane %v2144_v30, 1  ;;  %v1206_v45 = vmul.f32 %v1174_v46, %v1174_v46  ;;  %v691_v33 = vsel %vm129_vm4, %v582_v6, 0.0  ;;  %vm5491_vm7 = vmmov %vm5484_vm0 }
 0x3dc   :  { %v899_v13 = vsel %vm129_vm4, %v790_v47, 0.0  ;;  %v1382_v2 = vsub.f32 %v5488_v4, %v4446_v21  ;;  %v1590_v5 = vsub.f32 %v5488_v4, %v4454_v24  ;;  %v1938_v61 = vadd.f32 %v1937_v53, %v1936_v19  ;;  %vm5492_vm9 = vmmov %vm5484_vm0 }
 0x3dd   :  { %v2146_v52 = vadd.f32 %v2145_v14, %v2144_v30  ;;  %v693_v38 = vadd.f32 %v4627_v41, %v691_v33  ;;  %v901_v58 = vadd.f32 %v4634_v36, %v899_v13  ;;  %v1107_v1 = vsel %vm129_vm4, %v998_v18, 0.0  ;;  %vm5503_vm0 = vmmov %vm5502_vm8 }
 0x3de   :  { %v1315_v26 = vsel %vm129_vm4, %v1206_v45, 0.0  ;;  %v1414_v59 = vmul.f32 %v1382_v2, %v1382_v2  ;;  %v1622_v39 = vmul.f32 %v1590_v5, %v1590_v5  ;;  %v4733_v22 = vsel %vm5491_vm7, %v1938_v61, %v4597_v25 }
 0x3df   :  { %v4737_v51 = vsel %vm5492_vm9, %v2146_v52, %v4631_v11  ;;  %v694_v62 = vrot.slane %v693_v38, 4  ;;  %v902_v40 = vrot.slane %v901_v58, 4  ;;  %v1109_v41 = vadd.f32 %v4641_v35, %v1107_v1 }
 0x3e0   :  { %v1317_v36 = vadd.f32 %v4644_v55, %v1315_v26  ;;  %v1523_v27 = vsel %vm129_vm4, %v1414_v59, 0.0  ;;  %v1731_v57 = vsel %vm129_vm4, %v1622_v39, 0.0  ;;  %v1798_v11 = vsub.f32 %v5488_v4, %v4461_v42 }
 0x3e1   :  { %v695_v17 = vadd.f32 %v694_v62, %v693_v38  ;;  %v903_v8 = vadd.f32 %v902_v40, %v901_v58  ;;  %v1525_v54 = vadd.f32 %v4659_v43, %v1523_v27  ;;  %v1733_v25 = vadd.f32 %v4662_v23, %v1731_v57 }
 0x3e2   :  { %v1110_v32 = vrot.slane %v1109_v41, 4  ;;  %v1318_v10 = vrot.slane %v1317_v36, 4  ;;  %v2006_v35 = vsub.f32 %v5488_v4, %v4483_v7  ;;  %v1830_v47 = vmul.f32 %v1798_v11, %v1798_v11 }
 0x3e3   :  { %v696_v19 = vrot.slane %v695_v17, 2  ;;  %v904_v55 = vrot.slane %v903_v8, 2  ;;  %v1526_v30 = vrot.slane %v1525_v54, 4  ;;  %v1734_v0 = vrot.slane %v1733_v25, 4 }
 0x3e4   :  { %v1111_v46 = vadd.f32 %v1110_v32, %v1109_v41  ;;  %v1319_v6 = vadd.f32 %v1318_v10, %v1317_v36  ;;  %v2038_v53 = vmul.f32 %v2006_v35, %v2006_v35  ;;  %v1939_v13 = vsel %vm129_vm4, %v1830_v47, 0.0 }
 0x3e5   :  { %v697_v14 = vadd.f32 %v696_v19, %v695_v17  ;;  %v905_v43 = vadd.f32 %v904_v55, %v903_v8  ;;  %v1527_v18 = vadd.f32 %v1526_v30, %v1525_v54  ;;  %v1735_v23 = vadd.f32 %v1734_v0, %v1733_v25 }
 0x3e6   :  { %v1112_v45 = vrot.slane %v1111_v46, 2  ;;  %v1320_v33 = vrot.slane %v1319_v6, 2  ;;  %v2147_v2 = vsel %vm129_vm4, %v2038_v53, 0.0  ;;  %v1941_v1 = vadd.f32 %v4665_v15, %v1939_v13 }
 0x3e7   :  { %v698_v5 = vrot.slane %v697_v14, 1  ;;  %v906_v4 = vrot.slane %v905_v43, 1  ;;  %v1528_v61 = vrot.slane %v1527_v18, 2  ;;  %v1736_v52 = vrot.slane %v1735_v23, 2 }
 0x3e8   :  { %v1113_v38 = vadd.f32 %v1112_v45, %v1111_v46  ;;  %v1321_v58 = vadd.f32 %v1320_v33, %v1319_v6  ;;  %v2149_v26 = vadd.f32 %v4668_v3, %v2147_v2  ;;  %v1942_v27 = vrot.slane %v1941_v1, 4 }
 0x3e9   :  { %v699_v59 = vadd.f32 %v698_v5, %v697_v14  ;;  %v907_v39 = vadd.f32 %v906_v4, %v905_v43  ;;  %v1529_v62 = vadd.f32 %v1528_v61, %v1527_v18  ;;  %v1737_v40 = vadd.f32 %v1736_v52, %v1735_v23  ;;  %v5499_v23 = vld [vmem:[#allocation20_spill] sm:$0xff]  ;;  %v5500_v52 = vld [vmem:[#allocation9_spill] sm:$0xff] }
 0x3ea   :  { %v1114_v41 = vrot.slane %v1113_v38, 1  ;;  %v1322_v36 = vrot.slane %v1321_v58, 1  ;;  %v2150_v57 = vrot.slane %v2149_v26, 4  ;;  %v1943_v32 = vadd.f32 %v1942_v27, %v1941_v1 }
 0x3eb   :  { %v1530_v17 = vrot.slane %v1529_v62, 1  ;;  %v1738_v8 = vrot.slane %v1737_v40, 1  ;;  %v4755_v54 = vsel %vm5493_vm10, %v699_v59, %v4691_v34  ;;  %v4759_v25 = vsel %vm5494_vm11, %v907_v39, %v4695_v20 }
 0x3ec   :  { %v1115_v15 = vadd.f32 %v1114_v41, %v1113_v38  ;;  %v1323_v3 = vadd.f32 %v1322_v36, %v1321_v58  ;;  %v2151_v10 = vadd.f32 %v2150_v57, %v2149_v26  ;;  %v553_v19 = vsub.f32 %v4178_v31, %v4337_v49  ;;  %v5501_v58 = vld [vmem:[#allocation27_spill] sm:$0xff] }
 0x3ed   :  { %v1531_v11 = vadd.f32 %v1530_v17, %v1529_v62  ;;  %v1739_v35 = vadd.f32 %v1738_v8, %v1737_v40  ;;  %v761_v55 = vsub.f32 %v4178_v31, %v4346_v28  ;;  %v1944_v30 = vrot.slane %v1943_v32, 2 }
 0x3ee   :  { %v2152_v0 = vrot.slane %v2151_v10, 2  ;;  %v4767_v34 = vsel %vm5495_vm12, %v1115_v15, %v4699_v56  ;;  %v4771_v20 = vsel %vm5496_vm13, %v1323_v3, %v4703_v48  ;;  %v585_v47 = vmul.f32 %v553_v19, %v553_v19 }
 0x3ef   :  { %v4775_v46 = vsel %vm5497_vm14, %v1531_v11, %v4715_v63  ;;  %v4779_v6 = vsel %vm5498_vm15, %v1739_v35, %v4719_v60  ;;  %v793_v53 = vmul.f32 %v761_v55, %v761_v55  ;;  %v1945_v14 = vadd.f32 %v1944_v30, %v1943_v32 }
 0x3f0   :  { %v2153_v43 = vadd.f32 %v2152_v0, %v2151_v10  ;;  %v969_v56 = vsub.f32 %v4178_v31, %v4353_v44  ;;  %v1177_v18 = vsub.f32 %v4178_v31, %v4572_v50  ;;  %v4786_v48 = vsel %vm129_vm4, %v585_v47, 0.0 }
 0x3f1   :  { %v4789_v63 = vsel %vm129_vm4, %v793_v53, 0.0  ;;  %v1385_v60 = vsub.f32 %v4178_v31, %v4368_v29  ;;  %v1593_v45 = vsub.f32 %v4178_v31, %v5499_v23  ;;  %v1946_v33 = vrot.slane %v1945_v14, 1 }
 0x3f2   :  { %v2154_v13 = vrot.slane %v2153_v43, 1  ;;  %v1001_v2 = vmul.f32 %v969_v56, %v969_v56  ;;  %v1209_v5 = vmul.f32 %v1177_v18, %v1177_v18  ;;  %v1801_v38 = vsub.f32 %v4178_v31, %v5500_v52 }
 0x3f3   :  { %v1417_v4 = vmul.f32 %v1385_v60, %v1385_v60  ;;  %v1625_v61 = vmul.f32 %v1593_v45, %v1593_v45  ;;  %v2009_v1 = vsub.f32 %v4178_v31, %v5501_v58  ;;  %v1947_v26 = vadd.f32 %v1946_v33, %v1945_v14  ;;  %v5504_v31 = vld [vmem:[#allocation15_spill] sm:$0xff] }
 0x3f4   :  { %v2155_v59 = vadd.f32 %v2154_v13, %v2153_v43  ;;  %v1117_v39 = vsel %vm129_vm4, %v1001_v2, 0.0  ;;  %v1325_v62 = vsel %vm129_vm4, %v1209_v5, 0.0  ;;  %v1833_v36 = vmul.f32 %v1801_v38, %v1801_v38 }
 0x3f5   :  { %v1533_v40 = vsel %vm129_vm4, %v1417_v4, 0.0  ;;  %v1741_v41 = vsel %vm129_vm4, %v1625_v61, 0.0  ;;  %v2041_v27 = vmul.f32 %v2009_v1, %v2009_v1  ;;  %v4805_v57 = vsel %vm5502_vm8, %v1947_v26, %v4733_v22 }
 0x3f6   :  { %v4809_v17 = vsel %vm5503_vm0, %v2155_v59, %v4737_v51  ;;  %v555_v8 = vsub.f32 %v5504_v31, %v4337_v49  ;;  %v763_v15 = vsub.f32 %v5504_v31, %v4346_v28  ;;  %v4816_v3 = vsel %vm129_vm4, %v1833_v36, 0.0 }
 0x3f7   :  { %v4819_v32 = vsel %vm129_vm4, %v2041_v27, 0.0  ;;  %v971_v22 = vsub.f32 %v5504_v31, %v4353_v44  ;;  %v1179_v10 = vsub.f32 %v5504_v31, %v4572_v50  ;;  %v1387_v49 = vsub.f32 %v5504_v31, %v4368_v29 }
 0x3f8   :  { %v587_v51 = vmul.f32 %v555_v8, %v555_v8  ;;  %v795_v11 = vmul.f32 %v763_v15, %v763_v15  ;;  %v1595_v28 = vsub.f32 %v5504_v31, %v5499_v23  ;;  %v1803_v55 = vsub.f32 %v5504_v31, %v5500_v52  ;;  %v5505_v23 = vld [vmem:[#allocation17_spill] sm:$0xff] }
 0x3f9   :  { %v1003_v35 = vmul.f32 %v971_v22, %v971_v22  ;;  %v1211_v19 = vmul.f32 %v1179_v10, %v1179_v10  ;;  %v2011_v30 = vsub.f32 %v5504_v31, %v5501_v58  ;;  %v1419_v47 = vmul.f32 %v1387_v49, %v1387_v49 }
 0x3fa   :  { %v4834_v44 = vsel %vm129_vm4, %v587_v51, 0.0  ;;  %v4837_v0 = vsel %vm129_vm4, %v795_v11, 0.0  ;;  %v1627_v53 = vmul.f32 %v1595_v28, %v1595_v28  ;;  %v1835_v43 = vmul.f32 %v1803_v55, %v1803_v55 }
 0x3fb   :  { %v4840_v29 = vsel %vm129_vm4, %v1003_v35, 0.0  ;;  %v4843_v14 = vsel %vm129_vm4, %v1211_v19, 0.0  ;;  %v2043_v56 = vmul.f32 %v2011_v30, %v2011_v30  ;;  %v4846_v18 = vsel %vm129_vm4, %v1419_v47, 0.0 }
 0x3fc   :  { %v4849_v60 = vsel %vm129_vm4, %v1627_v53, 0.0  ;;  %v552_v45 = vsub.f32 %v5505_v23, %v4400_v16  ;;  %v760_v33 = vsub.f32 %v5505_v23, %v4412_v12  ;;  %v4856_v13 = vsel %vm129_vm4, %v1835_v43, 0.0 }
 0x3fd   :  { %v4859_v2 = vsel %vm129_vm4, %v2043_v56, 0.0  ;;  %v968_v5 = vsub.f32 %v5505_v23, %v4419_v37  ;;  %v1176_v4 = vsub.f32 %v5505_v23, %v4434_v9  ;;  %v1384_v16 = vsub.f32 %v5505_v23, %v4446_v21 }
 0x3fe   :  { %v584_v61 = vmul.f32 %v552_v45, %v552_v45  ;;  %v792_v38 = vmul.f32 %v760_v33, %v760_v33  ;;  %v1592_v12 = vsub.f32 %v5505_v23, %v4454_v24  ;;  %v1800_v59 = vsub.f32 %v5505_v23, %v4461_v42 }
 0x3ff   :  { %v1000_v1 = vmul.f32 %v968_v5, %v968_v5  ;;  %v1208_v26 = vmul.f32 %v1176_v4, %v1176_v4  ;;  %v2008_v36 = vsub.f32 %v5505_v23, %v4483_v7  ;;  %v1416_v27 = vmul.f32 %v1384_v16, %v1384_v16 }
 0x400   :  { %v700_v37 = vsel %vm129_vm4, %v584_v61, 0.0  ;;  %v908_v9 = vsel %vm129_vm4, %v792_v38, 0.0  ;;  %v1624_v31 = vmul.f32 %v1592_v12, %v1592_v12  ;;  %v1832_v55 = vmul.f32 %v1800_v59, %v1800_v59 }
 0x401   :  { %v702_v8 = vadd.f32 %v4786_v48, %v700_v37  ;;  %v910_v21 = vadd.f32 %v4789_v63, %v908_v9  ;;  %v1116_v24 = vsel %vm129_vm4, %v1000_v1, 0.0  ;;  %v1324_v15 = vsel %vm129_vm4, %v1208_v26, 0.0 }
 0x402   :  { %v1118_v22 = vadd.f32 %v1117_v39, %v1116_v24  ;;  %v1326_v10 = vadd.f32 %v1325_v62, %v1324_v15  ;;  %v1532_v42 = vsel %vm129_vm4, %v1416_v27, 0.0  ;;  %v1740_v7 = vsel %vm129_vm4, %v1624_v31, 0.0 }
 0x403   :  { %v703_v51 = vrot.slane %v702_v8, 4  ;;  %v911_v11 = vrot.slane %v910_v21, 4  ;;  %v1534_v49 = vadd.f32 %v1533_v40, %v1532_v42  ;;  %v1742_v28 = vadd.f32 %v1741_v41, %v1740_v7 }
 0x404   :  { %v1119_v35 = vrot.slane %v1118_v22, 4  ;;  %v1327_v19 = vrot.slane %v1326_v10, 4  ;;  %v2040_v48 = vmul.f32 %v2008_v36, %v2008_v36  ;;  %v1948_v39 = vsel %vm129_vm4, %v1832_v55, 0.0 }
 0x405   :  { %v704_v30 = vadd.f32 %v703_v51, %v702_v8  ;;  %v912_v63 = vadd.f32 %v911_v11, %v910_v21  ;;  %v1535_v47 = vrot.slane %v1534_v49, 4  ;;  %v1743_v53 = vrot.slane %v1742_v28, 4 }
 0x406   :  { %v1120_v43 = vadd.f32 %v1119_v35, %v1118_v22  ;;  %v1328_v56 = vadd.f32 %v1327_v19, %v1326_v10  ;;  %v2156_v62 = vsel %vm129_vm4, %v2040_v48, 0.0  ;;  %v1950_v4 = vadd.f32 %v4816_v3, %v1948_v39 }
 0x407   :  { %v705_v23 = vrot.slane %v704_v30, 2  ;;  %v913_v45 = vrot.slane %v912_v63, 2  ;;  %v1536_v33 = vadd.f32 %v1535_v47, %v1534_v49  ;;  %v1744_v5 = vadd.f32 %v1743_v53, %v1742_v28 }
 0x408   :  { %v1121_v40 = vrot.slane %v1120_v43, 2  ;;  %v1329_v41 = vrot.slane %v1328_v56, 2  ;;  %v2158_v61 = vadd.f32 %v4819_v32, %v2156_v62  ;;  %v1951_v36 = vrot.slane %v1950_v4, 4 }
 0x409   :  { %v706_v38 = vadd.f32 %v705_v23, %v704_v30  ;;  %v914_v16 = vadd.f32 %v913_v45, %v912_v63  ;;  %v1537_v12 = vrot.slane %v1536_v33, 2  ;;  %v1745_v1 = vrot.slane %v1744_v5, 2  ;;  %v4933_v23 = vld [vmem:[%s5367_s3 + $0x30] sm:$0xff] }
 0x40a   :  { %v1122_v26 = vadd.f32 %v1121_v40, %v1120_v43  ;;  %v1330_v59 = vadd.f32 %v1329_v41, %v1328_v56  ;;  %v2159_v37 = vrot.slane %v2158_v61, 4  ;;  %v1952_v15 = vadd.f32 %v1951_v36, %v1950_v4  ;;  %v4940_v40 = vld [vmem:[%s5367_s3 + $0x40] sm:$0xff]  ;;  %v4947_v4 = vld [vmem:[%s5367_s3 + $0x50] sm:$0xff] }
 0x40b   :  { %v707_v9 = vrot.slane %v706_v38, 1  ;;  %v915_v27 = vrot.slane %v914_v16, 1  ;;  %v1538_v31 = vadd.f32 %v1537_v12, %v1536_v33  ;;  %v1746_v8 = vadd.f32 %v1745_v1, %v1744_v5 }
 0x40c   :  { %v1123_v21 = vrot.slane %v1122_v26, 1  ;;  %v1331_v24 = vrot.slane %v1330_v59, 1  ;;  %v2160_v22 = vadd.f32 %v2159_v37, %v2158_v61  ;;  %v1953_v11 = vrot.slane %v1952_v15, 2 }
 0x40d   :  { %v708_v10 = vadd.f32 %v707_v9, %v706_v38  ;;  %v916_v3 = vadd.f32 %v915_v27, %v914_v16  ;;  %v1539_v42 = vrot.slane %v1538_v31, 1  ;;  %v1747_v32 = vrot.slane %v1746_v8, 1 }
 0x40e   :  { %v1124_v7 = vadd.f32 %v1123_v21, %v1122_v26  ;;  %v1332_v51 = vadd.f32 %v1331_v24, %v1330_v59  ;;  %v2161_v49 = vrot.slane %v2160_v22, 2  ;;  %vm5506_vm1 = vcmask 1044484  }
 0x40f   :  { %v1540_v28 = vadd.f32 %v1539_v42, %v1538_v31  ;;  %v1748_v35 = vadd.f32 %v1747_v32, %v1746_v8  ;;  %v4887_v19 = vsel %vm5506_vm1, %v708_v10, %v4755_v54  ;;  %vm5507_vm2 = vmmov %vm5506_vm1  ;;  %v1954_v48 = vadd.f32 %v1953_v11, %v1952_v15 }
 0x410   :  { %v4891_v55 = vsel %vm5507_vm2, %v916_v3, %v4759_v25  ;;  %v2162_v30 = vadd.f32 %v2161_v49, %v2160_v22  ;;  %vm5508_vm3 = vmmov %vm5506_vm1  ;;  %v4912_v25 = vld [vmem:[%s5367_s3] sm:$0xff]  ;;  %vm5519_vm11 = vcmask 1045509   ;;  %vm5521_vm13 = vcmask 1046534  }
 0x411   :  { %v4895_v63 = vsel %vm5508_vm3, %v1124_v7, %v4767_v34  ;;  %vm5509_vm5 = vmmov %vm5506_vm1  ;;  %v5512_v34 = vld [vmem:[#allocation18_spill] sm:$0xff]  ;;  %v1955_v56 = vrot.slane %v1954_v48, 1 }
 0x412   :  { %v4899_v47 = vsel %vm5509_vm5, %v1332_v51, %v4771_v20  ;;  %vm5510_vm6 = vmmov %vm5506_vm1  ;;  %v554_v43 = vsub.f32 %v5512_v34, %v4912_v25  ;;  %v4919_v20 = vld [vmem:[%s5367_s3 + $0x10] sm:$0xff]  ;;  %v2163_v39 = vrot.slane %v2162_v30, 1  ;;  %v1178_v45 = vsub.f32 %v5512_v34, %v4933_v23 }
 0x413   :  { %v4903_v53 = vsel %vm5510_vm6, %v1540_v28, %v4775_v46  ;;  %vm5511_vm7 = vmmov %vm5506_vm1  ;;  %v762_v46 = vsub.f32 %v5512_v34, %v4919_v20  ;;  %v1386_v41 = vsub.f32 %v5512_v34, %v4940_v40  ;;  %v1594_v61 = vsub.f32 %v5512_v34, %v4947_v4  ;;  %v4981_v7 = vld [vmem:[%s5367_s3 + $0x70] sm:$0xff] }
 0x414   :  { %v4907_v54 = vsel %vm5511_vm7, %v1748_v35, %v4779_v6  ;;  %v4926_v6 = vld [vmem:[%s5367_s3 + $0x20] sm:$0xff]  ;;  %v586_v33 = vmul.f32 %v554_v43, %v554_v43  ;;  %v1956_v38 = vadd.f32 %v1955_v56, %v1954_v48  ;;  %v2164_v16 = vadd.f32 %v2163_v39, %v2162_v30  ;;  %vm5513_vm9 = vmmov %vm5506_vm1 }
 0x415   :  { %v970_v62 = vsub.f32 %v5512_v34, %v4926_v6  ;;  %v794_v5 = vmul.f32 %v762_v46, %v762_v46  ;;  %v1210_v1 = vmul.f32 %v1178_v45, %v1178_v45  ;;  %v1418_v36 = vmul.f32 %v1386_v41, %v1386_v41  ;;  %vm5514_vm10 = vmmov %vm5506_vm1 }
 0x416   :  { %v709_v26 = vsel %vm129_vm4, %v586_v33, 0.0  ;;  %v1626_v37 = vmul.f32 %v1594_v61, %v1594_v61  ;;  %v4955_v9 = vsel %vm5513_vm9, %v1956_v38, %v4805_v57  ;;  %v4959_v27 = vsel %vm5514_vm10, %v2164_v16, %v4809_v17  ;;  %vm5520_vm12 = vmmov %vm5519_vm11 }
 0x417   :  { %v1002_v12 = vmul.f32 %v970_v62, %v970_v62  ;;  %v917_v59 = vsel %vm129_vm4, %v794_v5, 0.0  ;;  %v711_v31 = vadd.f32 %v4834_v44, %v709_v26  ;;  %v1333_v24 = vsel %vm129_vm4, %v1210_v1, 0.0  ;;  %vm5522_vm14 = vmmov %vm5521_vm13 }
 0x418   :  { %v919_v8 = vadd.f32 %v4837_v0, %v917_v59  ;;  %v1541_v15 = vsel %vm129_vm4, %v1418_v36, 0.0  ;;  %v1749_v22 = vsel %vm129_vm4, %v1626_v37, 0.0  ;;  %v1335_v42 = vadd.f32 %v4843_v14, %v1333_v24  ;;  %v4974_v0 = vld [vmem:[%s5367_s3 + $0x60] sm:$0xff]  ;;  %vm5523_vm15 = vmmov %vm5519_vm11 }
 0x419   :  { %v1125_v21 = vsel %vm129_vm4, %v1002_v12, 0.0  ;;  %v712_v10 = vrot.slane %v711_v31, 4  ;;  %v1543_v17 = vadd.f32 %v4846_v18, %v1541_v15  ;;  %v1751_v44 = vadd.f32 %v4849_v60, %v1749_v22  ;;  %vm5524_vm8 = vmmov %vm5519_vm11 }
 0x41a   :  { %v920_v3 = vrot.slane %v919_v8, 4  ;;  %v1127_v57 = vadd.f32 %v4840_v29, %v1125_v21  ;;  %v1802_v32 = vsub.f32 %v5512_v34, %v4974_v0  ;;  %v2010_v29 = vsub.f32 %v5512_v34, %v4981_v7  ;;  %vm5525_vm0 = vmmov %vm5524_vm8 }
 0x41b   :  { %v713_v14 = vadd.f32 %v712_v10, %v711_v31  ;;  %v1336_v60 = vrot.slane %v1335_v42, 4  ;;  %v1544_v11 = vrot.slane %v1543_v17, 4  ;;  %v1752_v49 = vrot.slane %v1751_v44, 4  ;;  %vm5526_vm1 = vmmov %vm5521_vm13 }
 0x41c   :  { %v921_v18 = vadd.f32 %v920_v3, %v919_v8  ;;  %v1128_v51 = vrot.slane %v1127_v57, 4  ;;  %v1834_v28 = vmul.f32 %v1802_v32, %v1802_v32  ;;  %v2042_v35 = vmul.f32 %v2010_v29, %v2010_v29  ;;  %v5515_v32 = vld [vmem:[#allocation25_spill] sm:$0xff]  ;;  %vm5527_vm2 = vmmov %vm5526_vm1 }
 0x41d   :  { %v714_v48 = vrot.slane %v713_v14, 2  ;;  %v1337_v46 = vadd.f32 %v1336_v60, %v1335_v42  ;;  %v1545_v56 = vadd.f32 %v1544_v11, %v1543_v17  ;;  %v1753_v39 = vadd.f32 %v1752_v49, %v1751_v44  ;;  %v3118_v44 = vld [vmem:[%s5367_s3 + $0x8] sm:$0xff]  ;;  %vm5528_vm3 = vmmov %vm5526_vm1 }
 0x41e   :  { %v922_v30 = vrot.slane %v921_v18, 2  ;;  %v1129_v43 = vadd.f32 %v1128_v51, %v1127_v57  ;;  %v1957_v62 = vsel %vm129_vm4, %v1834_v28, 0.0  ;;  %v2165_v45 = vsel %vm129_vm4, %v2042_v35, 0.0  ;;  %vm5529_vm5 = vmmov %vm5525_vm0 }
 0x41f   :  { %v715_v33 = vadd.f32 %v714_v48, %v713_v14  ;;  %v1338_v41 = vrot.slane %v1337_v46, 2  ;;  %v1546_v61 = vrot.slane %v1545_v56, 2  ;;  %v1754_v38 = vrot.slane %v1753_v39, 2  ;;  %v3119_v14 = vld [vmem:[%s5367_s3 + $0x18] sm:$0xff]  ;;  %v3120_v48 = vld [vmem:[%s5367_s3 + $0x28] sm:$0xff]  ;;  %vm5530_vm6 = vmmov %vm5525_vm0 }
 0x420   :  { %v923_v34 = vadd.f32 %v922_v30, %v921_v18  ;;  %v1130_v5 = vrot.slane %v1129_v43, 2  ;;  %v1959_v16 = vadd.f32 %v4856_v13, %v1957_v62  ;;  %v2167_v12 = vadd.f32 %v4859_v2, %v2165_v45  ;;  %v3122_v45 = vld [vmem:[%s5367_s3 + $0x58] sm:$0xff]  ;;  %vm5531_vm7 = vmmov %vm5525_vm0 }
 0x421   :  { %v716_v1 = vrot.slane %v715_v33, 1  ;;  %v1339_v36 = vadd.f32 %v1338_v41, %v1337_v46  ;;  %v1547_v37 = vadd.f32 %v1546_v61, %v1545_v56  ;;  %v1755_v31 = vadd.f32 %v1754_v38, %v1753_v39  ;;  %v3121_v39 = vld [vmem:[%s5367_s3 + $0x48] sm:$0xff]  ;;  %vm5532_vm9 = vmmov %vm5526_vm1  ;;  %s3152_s3 = smov [#allocation2]  }
 0x422   :  { %v924_v26 = vrot.slane %v923_v34, 1  ;;  %v1131_v59 = vadd.f32 %v1130_v5, %v1129_v43  ;;  %v1960_v8 = vrot.slane %v1959_v16, 4  ;;  %v2168_v21 = vrot.slane %v2167_v12, 4  ;;  %vm5534_vm10 = vmmov %vm5526_vm1  ;;  %s2861_s24 = sshll.u32 %s3152_s3, 4  ;;  %s2862_s24 = int_to_ptr.vmem [resolvable:$true] %s2861_s24 }
 0x423   :  { %v4989_v24 = vadd.f32 %v716_v1, %v715_v33  ;;  %v1340_v10 = vrot.slane %v1339_v36, 1  ;;  %v1548_v3 = vrot.slane %v1547_v37, 1  ;;  %v1756_v57 = vrot.slane %v1755_v31, 1  ;;  %s3123_s25 = scalar_lea.vmem %s2862_s24, 32  ;;  %p3128_p1 = scmp.lt.s32.totalorder %s2862_s24, %s2862_s24 }
 0x424   :  { %v4991_v15 = vadd.f32 %v924_v26, %v923_v34  ;;  %v1132_v22 = vrot.slane %v1131_v59, 1  ;;  %v1961_v42 = vadd.f32 %v1960_v8, %v1959_v16  ;;  %v2169_v13 = vadd.f32 %v2168_v21, %v2167_v12  ;;  %p3124_p0 = scmp.ne.s32.totalorder %s2862_s24, %s3123_s25  ;;  %p3129_p2 = scmp.lt.s32.totalorder %s3123_s25, %s3123_s25 }
 0x425   :  { %v4995_v2 = vadd.f32 %v1340_v10, %v1339_v36  ;;  %v557_v29 = vsub.f32 %v5515_v32, %v3118_v44  ;;  %v765_v18 = vsub.f32 %v5515_v32, %v3119_v14  ;;  %v5005_v51 = vadd.f32 %v1548_v3, %v1547_v37  ;;  %v5516_v36 = vld [vmem:[#allocation8_spill] sm:$0xff] }
 0x426   :  { %v4993_v17 = vadd.f32 %v1132_v22, %v1131_v59  ;;  %v5007_v60 = vadd.f32 %v1756_v57, %v1755_v31  ;;  %v1962_v11 = vrot.slane %v1961_v42, 2  ;;  %v2170_v49 = vrot.slane %v2169_v13, 2  ;;  %p3130_p3 = por %p3129_p2, %p3128_p1 }
 0x427   :  { %v589_v28 = vmul.f32 %v557_v29, %v557_v29  ;;  %v797_v35 = vmul.f32 %v765_v18, %v765_v18  ;;  %v973_v30 = vsub.f32 %v5515_v32, %v3120_v48  ;;  %v1181_v43 = vsub.f32 %v5515_v32, %v4572_v50 }
 0x428   :  { %v1963_v46 = vadd.f32 %v1962_v11, %v1961_v42  ;;  %v2171_v56 = vadd.f32 %v2170_v49, %v2169_v13  ;;  %v1389_v62 = vsub.f32 %v5515_v32, %v3121_v39  ;;  %v1597_v33 = vsub.f32 %v5515_v32, %v3122_v45  ;;  %v5517_v11 = vld [vmem:[#allocation26_spill] sm:$0xff]  ;;  %p3131_p4 = pnand %p3130_p3, %p3124_p0 }
 0x429   :  { %v1005_v34 = vmul.f32 %v973_v30, %v973_v30  ;;  %v1213_v5 = vmul.f32 %v1181_v43, %v1181_v43  ;;  %v1805_v41 = vsub.f32 %v5515_v32, %v5500_v52  ;;  %v2013_v61 = vsub.f32 %v5515_v32, %v5501_v58 }
 0x42a   :  { %v1964_v38 = vrot.slane %v1963_v46, 1  ;;  %v2172_v16 = vrot.slane %v2171_v56, 1  ;;  %v1421_v12 = vmul.f32 %v1389_v62, %v1389_v62  ;;  %v1629_v1 = vmul.f32 %v1597_v33, %v1597_v33 }
 0x42b   :  { %v1837_v26 = vmul.f32 %v1805_v41, %v1805_v41  ;;  %v5027_v59 = vmul.f32 %v2013_v61, %v2013_v61  ;;  %v559_v37 = vsub.f32 %v5516_v36, %v3118_v44  ;;  %v767_v31 = vsub.f32 %v5516_v36, %v3119_v14 }
 0x42c   :  { %v5031_v8 = vadd.f32 %v1964_v38, %v1963_v46  ;;  %v5033_v21 = vadd.f32 %v2172_v16, %v2171_v56  ;;  %v975_v22 = vsub.f32 %v5516_v36, %v3120_v48  ;;  %v1183_v10 = vsub.f32 %v5516_v36, %v4572_v50 }
 0x42d   :  { %v5038_v3 = vmul.f32 %v559_v37, %v559_v37  ;;  %v5040_v57 = vmul.f32 %v767_v31, %v767_v31  ;;  %v1391_v42 = vsub.f32 %v5516_v36, %v3121_v39  ;;  %v1599_v13 = vsub.f32 %v5516_v36, %v3122_v45 }
 0x42e   :  { %v5044_v44 = vmul.f32 %v975_v22, %v975_v22  ;;  %v5046_v32 = vmul.f32 %v1183_v10, %v1183_v10  ;;  %v1807_v29 = vsub.f32 %v5516_v36, %v5500_v52  ;;  %v2015_v14 = vsub.f32 %v5516_v36, %v5501_v58 }
 0x42f   :  { %v5052_v18 = vmul.f32 %v1391_v42, %v1391_v42  ;;  %v5054_v50 = vmul.f32 %v1599_v13, %v1599_v13  ;;  %v556_v49 = vsub.f32 %v5517_v11, %v4912_v25  ;;  %v719_v48 = vsel %vm129_vm4, %v589_v28, 0.0 }
 0x430   :  { %v5059_v30 = vmul.f32 %v1807_v29, %v1807_v29  ;;  %v5061_v43 = vmul.f32 %v2015_v14, %v2015_v14  ;;  %v764_v46 = vsub.f32 %v5517_v11, %v4919_v20  ;;  %v927_v52 = vsel %vm129_vm4, %v797_v35, 0.0 }
 0x431   :  { %v588_v56 = vmul.f32 %v556_v49, %v556_v49  ;;  %v972_v58 = vsub.f32 %v5517_v11, %v4926_v6  ;;  %v1135_v39 = vsel %vm129_vm4, %v1005_v34, 0.0  ;;  %v1180_v62 = vsub.f32 %v5517_v11, %v4933_v23 }
 0x432   :  { %5518 = vst [vmem:[#allocation13_spill] sm:$0xff] %v5061_v43  ;;  %v796_v45 = vmul.f32 %v764_v46, %v764_v46  ;;  %v1343_v28 = vsel %vm129_vm4, %v1213_v5, 0.0  ;;  %v1388_v33 = vsub.f32 %v5517_v11, %v4940_v40  ;;  %v1551_v41 = vsel %vm129_vm4, %v1421_v12, 0.0 }
 0x433   :  { %v718_v61 = vsel %vm129_vm4, %v588_v56, 0.0  ;;  %v1004_v35 = vmul.f32 %v972_v58, %v972_v58  ;;  %v1212_v38 = vmul.f32 %v1180_v62, %v1180_v62  ;;  %v1596_v16 = vsub.f32 %v5517_v11, %v4947_v4 }
 0x434   :  { %v720_v36 = vadd.f32 %v719_v48, %v718_v61  ;;  %v926_v34 = vsel %vm129_vm4, %v796_v45, 0.0  ;;  %v1420_v37 = vmul.f32 %v1388_v33, %v1388_v33  ;;  %v1759_v31 = vsel %vm129_vm4, %v1629_v1, 0.0 }
 0x435   :  { %v928_v22 = vadd.f32 %v927_v52, %v926_v34  ;;  %v1134_v5 = vsel %vm129_vm4, %v1004_v35, 0.0  ;;  %v1342_v10 = vsel %vm129_vm4, %v1212_v38, 0.0  ;;  %v1628_v42 = vmul.f32 %v1596_v16, %v1596_v16 }
 0x436   :  { %v721_v12 = vrot.slane %v720_v36, 4  ;;  %v1136_v13 = vadd.f32 %v1135_v39, %v1134_v5  ;;  %v1344_v29 = vadd.f32 %v1343_v28, %v1342_v10  ;;  %v1550_v14 = vsel %vm129_vm4, %v1420_v37, 0.0 }
 0x437   :  { %v929_v49 = vrot.slane %v928_v22, 4  ;;  %v1552_v46 = vadd.f32 %v1551_v41, %v1550_v14  ;;  %v1758_v48 = vsel %vm129_vm4, %v1628_v42, 0.0  ;;  %v1804_v56 = vsub.f32 %v5517_v11, %v4974_v0 }
 0x438   :  { %v722_v58 = vadd.f32 %v721_v12, %v720_v36  ;;  %v1137_v1 = vrot.slane %v1136_v13, 4  ;;  %v1345_v52 = vrot.slane %v1344_v29, 4  ;;  %v1760_v62 = vadd.f32 %v1759_v31, %v1758_v48 }
 0x439   :  { %v930_v45 = vadd.f32 %v929_v49, %v928_v22  ;;  %v1553_v33 = vrot.slane %v1552_v46, 4  ;;  %v1836_v61 = vmul.f32 %v1804_v56, %v1804_v56  ;;  %v1967_v35 = vsel %vm129_vm4, %v1837_v26, 0.0 }
 0x43a   :  { %v723_v39 = vrot.slane %v722_v58, 2  ;;  %v1138_v28 = vadd.f32 %v1137_v1, %v1136_v13  ;;  %v1346_v38 = vadd.f32 %v1345_v52, %v1344_v29  ;;  %v1761_v16 = vrot.slane %v1760_v62, 4 }
 0x43b   :  { %v931_v34 = vrot.slane %v930_v45, 2  ;;  %v1554_v41 = vadd.f32 %v1553_v33, %v1552_v46  ;;  %v1966_v37 = vsel %vm129_vm4, %v1836_v61, 0.0  ;;  %v2012_v5 = vsub.f32 %v5517_v11, %v4981_v7 }
 0x43c   :  { %v724_v36 = vadd.f32 %v723_v39, %v722_v58  ;;  %v1139_v10 = vrot.slane %v1138_v28, 2  ;;  %v1347_v42 = vrot.slane %v1346_v38, 2  ;;  %v1762_v31 = vadd.f32 %v1761_v16, %v1760_v62 }
 0x43d   :  { %v932_v22 = vadd.f32 %v931_v34, %v930_v45  ;;  %v1555_v12 = vrot.slane %v1554_v41, 2  ;;  %v1968_v14 = vadd.f32 %v1967_v35, %v1966_v37  ;;  %v2044_v49 = vmul.f32 %v2012_v5, %v2012_v5 }
 0x43e   :  { %v725_v26 = vrot.slane %v724_v36, 1  ;;  %v1140_v48 = vadd.f32 %v1139_v10, %v1138_v28  ;;  %v1348_v13 = vadd.f32 %v1347_v42, %v1346_v38  ;;  %v1763_v29 = vrot.slane %v1762_v31, 2 }
 0x43f   :  { %v933_v56 = vrot.slane %v932_v22, 1  ;;  %v1556_v1 = vadd.f32 %v1555_v12, %v1554_v41  ;;  %v1969_v46 = vrot.slane %v1968_v14, 4  ;;  %v2174_v52 = vsel %vm129_vm4, %v2044_v49, 0.0 }
 0x440   :  { %v726_v33 = vadd.f32 %v725_v26, %v724_v36  ;;  %v1141_v61 = vrot.slane %v1140_v48, 1  ;;  %v1349_v11 = vrot.slane %v1348_v13, 1  ;;  %v1764_v58 = vadd.f32 %v1763_v29, %v1762_v31 }
 0x441   :  { %v934_v39 = vadd.f32 %v933_v56, %v932_v22  ;;  %v1557_v43 = vrot.slane %v1556_v1, 1  ;;  %v1970_v62 = vadd.f32 %v1969_v46, %v1968_v14  ;;  %v2175_v45 = vsel %vm129_vm4, %v5027_v59, 0.0 }
 0x442   :  { %v1142_v35 = vadd.f32 %v1141_v61, %v1140_v48  ;;  %v1350_v16 = vadd.f32 %v1349_v11, %v1348_v13  ;;  %v1765_v28 = vrot.slane %v1764_v58, 1  ;;  %v2176_v38 = vadd.f32 %v2175_v45, %v2174_v52 }
 0x443   :  { %v1558_v34 = vadd.f32 %v1557_v43, %v1556_v1  ;;  %v1971_v37 = vrot.slane %v1970_v62, 2  ;;  %v2226_v41 = vsel %vm5519_vm11, %v4989_v24, %v4887_v19  ;;  %v2258_v5 = vsel %vm5520_vm12, %v4991_v15, %v4891_v55  ;;  %vm5535_vm11 = vmmov %vm5526_vm1 }
 0x444   :  { %v1766_v36 = vadd.f32 %v1765_v28, %v1764_v58  ;;  %v2177_v10 = vrot.slane %v2176_v38, 4  ;;  %v5100_v42 = vsel %vm5521_vm13, %v726_v33, %v2226_v41  ;;  %v5103_v59 = vsel %vm5522_vm14, %v934_v39, %v2258_v5 }
 0x445   :  { %v1972_v31 = vadd.f32 %v1971_v37, %v1970_v62  ;;  %v2290_v43 = vsel %vm5523_vm15, %v4993_v17, %v4895_v63  ;;  %v2322_v19 = vsel %vm5524_vm8, %v4995_v2, %v4899_v47  ;;  %v2354_v55 = vsel %vm5525_vm0, %v5005_v51, %v4903_v53  ;;  %v5533_v51 = vld [vmem:[#allocation11_spill] sm:$0xff] }
 0x446   :  { %v2178_v24 = vadd.f32 %v2177_v10, %v2176_v38  ;;  %v5115_v15 = vsel %vm5526_vm1, %v1142_v35, %v2290_v43  ;;  %v5118_v22 = vsel %vm5527_vm2, %v1350_v16, %v2322_v19  ;;  %v5121_v12 = vsel %vm5528_vm3, %v1558_v34, %v2354_v55 }
 0x447   :  { %v1973_v14 = vrot.slane %v1972_v31, 1  ;;  %v2386_v63 = vsel %vm5529_vm5, %v5007_v60, %v4907_v54  ;;  %v2418_v47 = vsel %vm5530_vm6, %v5031_v8, %v4955_v9  ;;  %v2450_v53 = vsel %vm5531_vm7, %v5033_v21, %v4959_v27 }
 0x448   :  { %v2179_v17 = vrot.slane %v2178_v24, 2  ;;  %v5133_v2 = vsel %vm5532_vm9, %v1766_v36, %v2386_v63  ;;  %v558_v49 = vsub.f32 %v5533_v51, %v4912_v25  ;;  %v728_v26 = vsel %vm129_vm4, %v5038_v3, 0.0 }
 0x449   :  { %v1974_v48 = vadd.f32 %v1973_v14, %v1972_v31  ;;  %v766_v54 = vsub.f32 %v5533_v51, %v4919_v20  ;;  %v936_v9 = vsel %vm129_vm4, %v5040_v57, 0.0  ;;  %v974_v27 = vsub.f32 %v5533_v51, %v4926_v6 }
 0x44a   :  { %v2180_v60 = vadd.f32 %v2179_v17, %v2178_v24  ;;  %v590_v8 = vmul.f32 %v558_v49, %v558_v49  ;;  %v1144_v21 = vsel %vm129_vm4, %v5044_v44, 0.0  ;;  %v1182_v25 = vsub.f32 %v5533_v51, %v4933_v23  ;;  %v5536_v49 = vld [vmem:[#allocation16_spill] sm:$0xff] }
 0x44b   :  { %v5150_v3 = vsel %vm5534_vm10, %v1974_v48, %v2418_v47  ;;  %v798_v13 = vmul.f32 %v766_v54, %v766_v54  ;;  %v1006_v29 = vmul.f32 %v974_v27, %v974_v27  ;;  %v1352_v20 = vsel %vm129_vm4, %v5046_v32, 0.0 }
 0x44c   :  { %v2181_v57 = vrot.slane %v2180_v60, 1  ;;  %v727_v56 = vsel %vm129_vm4, %v590_v8, 0.0  ;;  %v1214_v6 = vmul.f32 %v1182_v25, %v1182_v25  ;;  %v1390_v1 = vsub.f32 %v5533_v51, %v4940_v40 }
 0x44d   :  { %v729_v46 = vadd.f32 %v728_v26, %v727_v56  ;;  %v935_v44 = vsel %vm129_vm4, %v798_v13, 0.0  ;;  %v1143_v23 = vsel %vm129_vm4, %v1006_v29, 0.0  ;;  %v1560_v52 = vsel %vm129_vm4, %v5052_v18, 0.0 }
 0x44e   :  { %v2182_v33 = vadd.f32 %v2181_v57, %v2180_v60  ;;  %v937_v61 = vadd.f32 %v936_v9, %v935_v44  ;;  %v1145_v11 = vadd.f32 %v1144_v21, %v1143_v23  ;;  %v1351_v32 = vsel %vm129_vm4, %v1214_v6, 0.0  ;;  %v5537_v23 = vld [vmem:[#allocation13_spill] sm:$0xff] }
 0x44f   :  { %v730_v58 = vrot.slane %v729_v46, 4  ;;  %v1353_v39 = vadd.f32 %v1352_v20, %v1351_v32  ;;  %v1422_v62 = vmul.f32 %v1390_v1, %v1390_v1  ;;  %v1598_v45 = vsub.f32 %v5533_v51, %v4947_v4 }
 0x450   :  { %v5165_v40 = vsel %vm5535_vm11, %v2182_v33, %v2450_v53  ;;  %v938_v35 = vrot.slane %v937_v61, 4  ;;  %v1146_v16 = vrot.slane %v1145_v11, 4  ;;  %v1768_v28 = vsel %vm129_vm4, %v5054_v50, 0.0 }
 0x451   :  { %v731_v18 = vadd.f32 %v730_v58, %v729_v46  ;;  %v1354_v38 = vrot.slane %v1353_v39, 4  ;;  %v1559_v34 = vsel %vm129_vm4, %v1422_v62, 0.0  ;;  %v1630_v37 = vmul.f32 %v1598_v45, %v1598_v45 }
 0x452   :  { %v939_v41 = vadd.f32 %v938_v35, %v937_v61  ;;  %v1147_v5 = vadd.f32 %v1146_v16, %v1145_v11  ;;  %v1561_v36 = vadd.f32 %v1560_v52, %v1559_v34  ;;  %v1806_v10 = vsub.f32 %v5533_v51, %v4974_v0 }
 0x453   :  { %v732_v4 = vrot.slane %v731_v18, 2  ;;  %v1355_v31 = vadd.f32 %v1354_v38, %v1353_v39  ;;  %v1767_v43 = vsel %vm129_vm4, %v1630_v37, 0.0  ;;  %v1976_v19 = vsel %vm129_vm4, %v5059_v30, 0.0 }
 0x454   :  { %v940_v55 = vrot.slane %v939_v41, 2  ;;  %v1148_v50 = vrot.slane %v1147_v5, 2  ;;  %v1562_v24 = vrot.slane %v1561_v36, 4  ;;  %v1769_v14 = vadd.f32 %v1768_v28, %v1767_v43 }
 0x455   :  { %v733_v63 = vadd.f32 %v732_v4, %v731_v18  ;;  %v1356_v47 = vrot.slane %v1355_v31, 2  ;;  %v1838_v53 = vmul.f32 %v1806_v10, %v1806_v10  ;;  %v2014_v17 = vsub.f32 %v5533_v51, %v4981_v7  ;;  %v5546_v4 = vld [vmem:[#allocation12_spill] sm:$0xff] }
 0x456   :  { %vm2573_vm12 = vcmp.eq.f32.partialorder %v5536_v49, 0.0  ;;  %v941_v0 = vadd.f32 %v940_v55, %v939_v41  ;;  %v1149_v26 = vadd.f32 %v1148_v50, %v1147_v5  ;;  %v1563_v48 = vadd.f32 %v1562_v24, %v1561_v36 }
 0x457   :  { %v1770_v54 = vrot.slane %v1769_v14, 4  ;;  %v734_v9 = vrot.slane %v733_v63, 1  ;;  %v1357_v27 = vadd.f32 %v1356_v47, %v1355_v31  ;;  %v1975_v30 = vsel %vm129_vm4, %v1838_v53, 0.0 }
 0x458   :  { %v2046_v60 = vmul.f32 %v2014_v17, %v2014_v17  ;;  %v942_v8 = vrot.slane %v941_v0, 1  ;;  %v1150_v21 = vrot.slane %v1149_v26, 1  ;;  %v1564_v25 = vrot.slane %v1563_v48, 2 }
 0x459   :  { %v1771_v13 = vadd.f32 %v1770_v54, %v1769_v14  ;;  %v735_v29 = vadd.f32 %v734_v9, %v733_v63  ;;  %v1358_v20 = vrot.slane %v1357_v27, 1  ;;  %v1977_v57 = vadd.f32 %v1976_v19, %v1975_v30 }
 0x45a   :  { %v2183_v7 = vsel %vm129_vm4, %v2046_v60, 0.0  ;;  %v943_v51 = vadd.f32 %v942_v8, %v941_v0  ;;  %v1151_v56 = vadd.f32 %v1150_v21, %v1149_v26  ;;  %v1565_v6 = vadd.f32 %v1564_v25, %v1563_v48  ;;  %v5549_v48 = vld [vmem:[#allocation21_spill] sm:$0xff] }
 0x45b   :  { %v1772_v1 = vrot.slane %v1771_v13, 2  ;;  %v1359_v46 = vadd.f32 %v1358_v20, %v1357_v27  ;;  %v1978_v44 = vrot.slane %v1977_v57, 4  ;;  %v2184_v52 = vsel %vm129_vm4, %v5537_v23, 0.0 }
 0x45c   :  { %vm5538_vm13 = vcmask 1047559   ;;  %v1566_v61 = vrot.slane %v1565_v6, 1  ;;  %v2185_v32 = vadd.f32 %v2184_v52, %v2183_v7  ;;  %v5543_v34 = vand.u32 2147483648, %v5536_v49 }
 0x45d   :  { %v2228_v33 = vsel %vm5538_vm13, %v735_v29, %v5100_v42  ;;  %v1773_v11 = vadd.f32 %v1772_v1, %v1771_v13  ;;  %vm5539_vm14 = vmmov %vm5538_vm13  ;;  %v1979_v39 = vadd.f32 %v1978_v44, %v1977_v57  ;;  %v5542_v42 = vld [vmem:[#allocation10_spill] sm:$0xff]  ;;  %v2616_v54 = vrot.slane %v5549_v48, 2  ;;  %v5551_v13 = vld [vmem:[#allocation7_spill] sm:$0xff] }
 0x45e   :  { %v2260_v58 = vsel %vm5539_vm14, %v943_v51, %v5103_v59  ;;  %vm5540_vm15 = vmmov %vm5538_vm13  ;;  %v2456_v35 = vmax.f32 %v2228_v33, 1e-12  ;;  %v1567_v16 = vadd.f32 %v1566_v61, %v1565_v6  ;;  %v2186_v18 = vrot.slane %v2185_v32, 4  ;;  %v5544_v59 = vld [vmem:[#allocation19_spill] sm:$0xff] }
 0x45f   :  { %v2292_v62 = vsel %vm5540_vm15, %v1151_v56, %v5115_v15  ;;  %vm5541_vm8 = vmmov %vm5538_vm13  ;;  %v1774_v28 = vrot.slane %v1773_v11, 1  ;;  %v5190_v38 = vmax.f32 %v2260_v58, 1e-12  ;;  %v2575_v37 = vsel %vm2573_vm12, %v5543_v34, %v5542_v42  ;;  %v5552_v42 = vld [vmem:[#allocation22_spill] sm:$0xff] }
 0x460   :  { %v2324_v45 = vsel %vm5541_vm8, %v1359_v46, %v5118_v22  ;;  %v2595_v41 = vmul.f32 0.5, %v5544_v59  ;;  %v1980_v5 = vrot.slane %v1979_v39, 2  ;;  %3040 = vrsqrt.f32 %v2456_v35  ;;  %vm5545_vm4 = vmmov %vm5541_vm8 }
 0x461   :  { %v1775_v15 = vadd.f32 %v1774_v28, %v1773_v11  ;;  %v2187_v36 = vadd.f32 %v2186_v18, %v2185_v32  ;;  %v2356_v22 = vsel %vm5545_vm4, %v1567_v16, %v5121_v12  ;;  %v5200_v10 = vmax.f32 %v2292_v62, 1e-12  ;;  %vm5547_vm0 = vmmov %vm5545_vm4 }
 0x462   :  { %3042 = vtanh.f32 %v5546_v4  ;;  %v1981_v31 = vadd.f32 %v1980_v5, %v1979_v39  ;;  %v5203_v43 = vmax.f32 %v2324_v45, 1e-12  ;;  %v5207_v50 = vmax.f32 %v2356_v22, 1e-12  ;;  %vm5548_vm1 = vmmov %vm5547_vm0 }
 0x463   :  { %v2188_v19 = vrot.slane %v2187_v36, 2  ;;  %v2388_v55 = vsel %vm5547_vm0, %v1775_v15, %v5133_v2  ;;  %3044 = vrsqrt.f32 %v5190_v38  ;;  %v2597_v24 = vmul.f32 0.5, %v2575_v37  ;;  %vm5550_vm7 = vmmov %vm5547_vm0 }
 0x464   :  { %3046 = vtanh.f32 %v2595_v41  ;;  %v1982_v14 = vrot.slane %v1981_v31, 1  ;;  %v5210_v12 = vmax.f32 %v2388_v55, 1e-12  ;;  %vm2480_vm2 = vcmp.eq.f32.partialorder %v2456_v35, inf }
 0x465   :  { %v2189_v63 = vadd.f32 %v2188_v19, %v2187_v36  ;;  %3048 = vrsqrt.f32 %v5200_v10  ;;  %vm2482_vm3 = vcmp.eq.f32.partialorder %v2456_v35, 0.0  ;;  %v2483_v26 = vand.u32 2147483648, %v2456_v35 }
 0x466   :  { %v1983_v47 = vadd.f32 %v1982_v14, %v1981_v31  ;;  %3050 = vrsqrt.f32 %v5203_v43  ;;  %vm2494_vm5 = vcmp.eq.f32.partialorder %v5190_v38, inf  ;;  %vm2496_vm6 = vcmp.eq.f32.partialorder %v5190_v38, 0.0 }
 0x467   :  { %v2190_v53 = vrot.slane %v2189_v63, 1  ;;  %3052 = vrsqrt.f32 %v5207_v50  ;;  %vm2508_vm9 = vcmp.eq.f32.partialorder %v5200_v10, inf  ;;  %vm2510_vm10 = vcmp.eq.f32.partialorder %v5200_v10, 0.0 }
 0x468   :  { %3054 = vtanh.f32 %v2597_v24  ;;  %v2420_v2 = vsel %vm5548_vm1, %v1983_v47, %v5150_v3  ;;  %v2497_v3 = vand.u32 2147483648, %v5190_v38  ;;  %v2618_v8 = vadd.f32 %v5549_v48, %v2616_v54 }
 0x469   :  { %v2191_v17 = vadd.f32 %v2190_v53, %v2189_v63  ;;  %v5217_v49 = vmax.f32 %v2420_v2, 1e-12  ;;  %3056 = vrsqrt.f32 %v5210_v12  ;;  %vm2522_vm11 = vcmp.eq.f32.partialorder %v5203_v43, inf }
 0x46a   :  { %v3041_v0 = vpop.eup %3040  ;;  %v2636_v29 = vadd.f32 %v5551_v13, %v5549_v48  ;;  %vm2524_vm12 = vcmp.eq.f32.partialorder %v5203_v43, 0.0  ;;  %v2525_v51 = vand.u32 2147483648, %v5203_v43  ;;  %vm2536_vm13 = vcmp.eq.f32.partialorder %v5207_v50, inf }
 0x46b   :  { %v2452_v9 = vsel %vm5550_vm7, %v2191_v17, %v5165_v40  ;;  %v2479_v27 = vmul.f32 %v3041_v0, %v2456_v35  ;;  %3058 = vrsqrt.f32 %v5217_v49  ;;  %v2511_v40 = vand.u32 2147483648, %v5200_v10 }
 0x46c   :  { %v5227_v30 = vpop.eup %3042  ;;  %v5229_v60 = vmax.f32 %v2452_v9, 1e-12  ;;  %vm2538_vm14 = vcmp.eq.f32.partialorder %v5207_v50, 0.0  ;;  %v2639_v1 = vrot.slane %v5551_v13, 2  ;;  %v2637_v52 = vmin.f32 %v2618_v8, %v2636_v29 }
 0x46d   :  { %v3045_v21 = vpop.eup %3044  ;;  %v2481_v25 = vsel %vm2480_vm2, %v2456_v35, %v2479_v27  ;;  %v2619_v32 = vrot.slane %v5549_v48, 4  ;;  %v2539_v18 = vand.u32 2147483648, %v5207_v50  ;;  %v2665_v34 = vadd.f32 %v5552_v42, %v2636_v29 }
 0x46e   :  { %v5239_v20 = vpop.eup %3046  ;;  %v2484_v57 = vsel %vm2482_vm3, %v2483_v26, %v2481_v25  ;;  %v2493_v7 = vmul.f32 %v3045_v21, %v5190_v38  ;;  %3060 = vrsqrt.f32 %v5229_v60  ;;  %v2641_v35 = vadd.f32 %v2639_v1, %v2637_v52 }
 0x46f   :  { %v3049_v56 = vpop.eup %3048  ;;  %v2584_v6 = vmul.f32 0.5, %v2484_v57  ;;  %v2622_v41 = vrot.slane %v5549_v48, 6  ;;  %v2643_v5 = vrot.slane %v5551_v13, 4  ;;  %vm2550_vm15 = vcmp.eq.f32.partialorder %v5210_v12, inf }
 0x470   :  { %v3051_v46 = vpop.eup %3050  ;;  %v2495_v44 = vsel %vm2494_vm5, %v5190_v38, %v2493_v7  ;;  %v2507_v23 = vmul.f32 %v3049_v56, %v5200_v10  ;;  %v2621_v38 = vadd.f32 %v2619_v32, %v2618_v8  ;;  %vm2552_vm8 = vcmp.eq.f32.partialorder %v5210_v12, 0.0 }
 0x471   :  { %v3053_v33 = vpop.eup %3052  ;;  %v2498_v61 = vsel %vm2496_vm6, %v2497_v3, %v2495_v44  ;;  %v2521_v11 = vmul.f32 %v3051_v46, %v5203_v43  ;;  %3062 = vtanh.f32 %v2584_v6  ;;  %v2666_v24 = vmin.f32 %v2641_v35, %v2665_v34  ;;  %v5553_v3 = vld [vmem:[#allocation23_spill] sm:$0xff] }
 0x472   :  { %v5257_v58 = vpop.eup %3054  ;;  %v2509_v39 = vsel %vm2508_vm9, %v5200_v10, %v2507_v23  ;;  %v2535_v62 = vmul.f32 %v3053_v33, %v5207_v50  ;;  %v2586_v45 = vmul.f32 0.5, %v2498_v61  ;;  %v2642_v4 = vmin.f32 %v2621_v38, %v2641_v35  ;;  %v5554_v23 = vld [vmem:[#allocation24_spill] sm:$0xff] }
 0x473   :  { %v3057_v16 = vpop.eup %3056  ;;  %v2523_v28 = vsel %vm2522_vm11, %v5203_v43, %v2521_v11  ;;  %v2512_v37 = vsel %vm2510_vm10, %v2511_v40, %v2509_v39  ;;  %v2553_v10 = vand.u32 2147483648, %v5210_v12  ;;  %v2624_v19 = vadd.f32 %v2622_v41, %v2621_v38 }
 0x474   :  { %v2526_v59 = vsel %vm2524_vm12, %v2525_v51, %v2523_v28  ;;  %v2537_v36 = vsel %vm2536_vm13, %v5207_v50, %v2535_v62  ;;  %v2549_v22 = vmul.f32 %v3057_v16, %v5210_v12  ;;  %3064 = vtanh.f32 %v2586_v45 }
 0x475   :  { %v3059_v15 = vpop.eup %3058  ;;  %v2588_v43 = vmul.f32 0.5, %v2512_v37  ;;  %v2645_v55 = vadd.f32 %v2643_v5, %v2642_v4  ;;  %v2540_v14 = vsel %vm2538_vm14, %v2539_v18, %v2537_v36  ;;  %vm2564_vm4 = vcmp.eq.f32.partialorder %v5217_v49, inf }
 0x476   :  { %v2563_v31 = vmul.f32 %v3059_v15, %v5217_v49  ;;  %v2590_v63 = vmul.f32 0.5, %v2526_v59  ;;  %v2668_v47 = vrot.slane %v5552_v42, 2  ;;  %v2551_v53 = vsel %vm2550_vm15, %v5210_v12, %v2549_v22 }
 0x477   :  { %vm2566_vm0 = vcmp.eq.f32.partialorder %v5217_v49, 0.0  ;;  %v2646_v2 = vmin.f32 %v2624_v19, %v2645_v55  ;;  %v2647_v17 = vrot.slane %v5551_v13, 6  ;;  %v2567_v48 = vand.u32 2147483648, %v5217_v49 }
 0x478   :  { %v3061_v0 = vpop.eup %3060  ;;  %v2565_v26 = vsel %vm2564_vm4, %v5217_v49, %v2563_v31  ;;  %vm2578_vm1 = vcmp.eq.f32.partialorder %v5229_v60, inf  ;;  %v2670_v50 = vadd.f32 %v2668_v47, %v2666_v24  ;;  %v2592_v9 = vmul.f32 0.5, %v2540_v14 }
 0x479   :  { %3066 = vtanh.f32 %v2588_v43  ;;  %v2649_v27 = vadd.f32 %v2647_v17, %v2646_v2  ;;  %v2694_v8 = vadd.f32 %v5553_v3, %v2665_v34  ;;  %v2554_v21 = vsel %vm2552_vm8, %v2553_v10, %v2551_v53 }
 0x47a   :  { %vm2580_vm2 = vcmp.eq.f32.partialorder %v5229_v60, 0.0  ;;  %3068 = vtanh.f32 %v2590_v63  ;;  %v2568_v13 = vsel %vm2566_vm0, %v2567_v48, %v2565_v26  ;;  %v2577_v29 = vmul.f32 %v3061_v0, %v5229_v60 }
 0x47b   :  { %v3063_v54 = vpop.eup %3062  ;;  %v2671_v57 = vmin.f32 %v2645_v55, %v2670_v50  ;;  %v2672_v7 = vrot.slane %v5552_v42, 4  ;;  %v2695_v1 = vmin.f32 %v2670_v50, %v2694_v8  ;;  %v2594_v12 = vmul.f32 0.5, %v2554_v21 }
 0x47c   :  { %v2625_v25 = vadd.f32 %v3063_v54, %v2624_v19  ;;  %v2627_v40 = vrot.slane %v3063_v54, 2  ;;  %v2630_v56 = vrot.slane %v3063_v54, 4  ;;  %3070 = vtanh.f32 %v2592_v9 }
 0x47d   :  { %v2674_v44 = vadd.f32 %v2672_v7, %v2671_v57  ;;  %v2723_v52 = vadd.f32 %v5554_v23, %v2694_v8  ;;  %v2633_v61 = vrot.slane %v3063_v54, 6  ;;  %v2697_v49 = vrot.slane %v5553_v3, 2 }
 0x47e   :  { %v2629_v51 = vadd.f32 %v2627_v40, %v2625_v25  ;;  %v2650_v6 = vmin.f32 %v2625_v25, %v2649_v27  ;;  %v3065_v46 = vpop.eup %3064  ;;  %v2579_v32 = vsel %vm2578_vm1, %v5229_v60, %v2577_v29  ;;  %v2596_v39 = vmul.f32 0.5, %v2568_v13 }
 0x47f   :  { %v2675_v62 = vmin.f32 %v2649_v27, %v2674_v44  ;;  %v2676_v45 = vrot.slane %v5552_v42, 6  ;;  %v2654_v28 = vrot.slane %v3065_v46, 2  ;;  %v2699_v18 = vadd.f32 %v2697_v49, %v2695_v1 }
 0x480   :  { %v2632_v33 = vadd.f32 %v2630_v56, %v2629_v51  ;;  %v2651_v11 = vadd.f32 %v3065_v46, %v2650_v6  ;;  %v2581_v38 = vand.u32 2147483648, %v5229_v60  ;;  %3072 = vtanh.f32 %v2594_v12 }
 0x481   :  { %v2678_v34 = vadd.f32 %v2676_v45, %v2675_v62  ;;  %v2701_v37 = vrot.slane %v5553_v3, 4  ;;  %v2700_v41 = vmin.f32 %v2674_v44, %v2699_v18  ;;  %v2724_v5 = vmin.f32 %v2699_v18, %v2723_v52 }
 0x482   :  { %v2635_v35 = vadd.f32 %v2633_v61, %v2632_v33  ;;  %v2652_v16 = vmin.f32 %v2629_v51, %v2651_v11  ;;  %v2726_v15 = vrot.slane %v5554_v23, 2  ;;  %v2582_v22 = vsel %vm2580_vm2, %v2581_v38, %v2579_v32 }
 0x483   :  { %v3067_v36 = vpop.eup %3066  ;;  %3074 = vtanh.f32 %v2596_v39  ;;  %v2679_v42 = vmin.f32 %v2651_v11, %v2678_v34  ;;  %v2658_v31 = vrot.slane %v3065_v46, 4  ;;  %v2703_v43 = vadd.f32 %v2701_v37, %v2700_v41 }
 0x484   :  { %v2656_v59 = vadd.f32 %v2654_v28, %v2652_v16  ;;  %v5311_v4 = vpop.eup %3068  ;;  %v2728_v19 = vadd.f32 %v2726_v15, %v2724_v5  ;;  %v2662_v55 = vrot.slane %v3065_v46, 6  ;;  %v2705_v14 = vrot.slane %v5553_v3, 6 }
 0x485   :  { %v2680_v24 = vadd.f32 %v3067_v36, %v2679_v42  ;;  %v2752_v63 = vadd.f32 %v5227_v30, %v2723_v52  ;;  %v2704_v53 = vmin.f32 %v2678_v34, %v2703_v43  ;;  %v2730_v60 = vrot.slane %v5554_v23, 4 }
 0x486   :  { %v2657_v10 = vmin.f32 %v2632_v33, %v2656_v59  ;;  %v2729_v2 = vmin.f32 %v2703_v43, %v2728_v19  ;;  %v5316_v17 = vpop.eup %3070  ;;  %v2683_v26 = vrot.slane %v3067_v36, 2  ;;  %v2755_v50 = vrot.slane %v5227_v30, 2 }
 0x487   :  { %v2681_v0 = vmin.f32 %v2656_v59, %v2680_v24  ;;  %v2753_v48 = vmin.f32 %v2728_v19, %v2752_v63  ;;  %v2687_v9 = vrot.slane %v3067_v36, 4  ;;  %v2707_v27 = vadd.f32 %v2705_v14, %v2704_v53 }
 0x488   :  { %v2660_v47 = vadd.f32 %v2658_v31, %v2657_v10  ;;  %v2732_v8 = vadd.f32 %v2730_v60, %v2729_v2  ;;  %v2734_v3 = vrot.slane %v5554_v23, 6  ;;  %v2781_v40 = vadd.f32 %v5239_v20, %v2752_v63 }
 0x489   :  { %v2685_v21 = vadd.f32 %v2683_v26, %v2681_v0  ;;  %v2757_v25 = vadd.f32 %v2755_v50, %v2753_v48  ;;  %v2708_v29 = vmin.f32 %v2680_v24, %v2707_v27  ;;  %v2759_v7 = vrot.slane %v5227_v30, 4 }
 0x48a   :  { %v2661_v54 = vmin.f32 %v2635_v35, %v2660_v47  ;;  %v2733_v57 = vmin.f32 %v2707_v27, %v2732_v8  ;;  %v5322_v51 = vpop.eup %3072  ;;  %v2784_v46 = vrot.slane %v5239_v20, 2  ;;  %v2598_v12 = vmul.f32 0.5, %v2582_v22 }
 0x48b   :  { %v2686_v56 = vmin.f32 %v2660_v47, %v2685_v21  ;;  %v2758_v6 = vmin.f32 %v2732_v8, %v2757_v25  ;;  %v2782_v1 = vmin.f32 %v2757_v25, %v2781_v40  ;;  %v2691_v44 = vrot.slane %v3067_v36, 6 }
 0x48c   :  { %v2664_v13 = vadd.f32 %v2662_v55, %v2661_v54  ;;  %v2709_v52 = vadd.f32 %v5311_v4, %v2708_v29  ;;  %v2736_v23 = vadd.f32 %v2734_v3, %v2733_v57  ;;  %v2712_v11 = vrot.slane %v5311_v4, 2 }
 0x48d   :  { %v5326_v33 = vpop.eup %3074  ;;  %v2689_v61 = vadd.f32 %v2687_v9, %v2686_v56  ;;  %v2761_v49 = vadd.f32 %v2759_v7, %v2758_v6  ;;  %v2786_v32 = vadd.f32 %v2784_v46, %v2782_v1  ;;  %v2763_v45 = vrot.slane %v5227_v30, 6 }
 0x48e   :  { %v2710_v39 = vmin.f32 %v2685_v21, %v2709_v52  ;;  %v2737_v62 = vmin.f32 %v2709_v52, %v2736_v23  ;;  %v2810_v35 = vadd.f32 %v5257_v58, %v2781_v40  ;;  %v2788_v38 = vrot.slane %v5239_v20, 4 }
 0x48f   :  { %v2690_v16 = vmin.f32 %v2664_v13, %v2689_v61  ;;  %v2762_v28 = vmin.f32 %v2736_v23, %v2761_v49  ;;  %v2787_v18 = vmin.f32 %v2761_v49, %v2786_v32  ;;  %v2813_v41 = vrot.slane %v5257_v58, 2 }
 0x490   :  { %v2714_v34 = vadd.f32 %v2712_v11, %v2710_v39  ;;  %v2738_v37 = vadd.f32 %v5316_v17, %v2737_v62  ;;  %v2811_v59 = vmin.f32 %v2786_v32, %v2810_v35  ;;  %v2716_v15 = vrot.slane %v5311_v4, 4 }
 0x491   :  { %v2693_v5 = vadd.f32 %v2691_v44, %v2690_v16  ;;  %v2765_v36 = vadd.f32 %v2763_v45, %v2762_v28  ;;  %v2790_v22 = vadd.f32 %v2788_v38, %v2787_v18  ;;  %v2741_v10 = vrot.slane %v5316_v17, 2 }
 0x492   :  { %v2715_v42 = vmin.f32 %v2689_v61, %v2714_v34  ;;  %v2739_v30 = vmin.f32 %v2714_v34, %v2738_v37  ;;  %v2815_v31 = vadd.f32 %v2813_v41, %v2811_v59  ;;  %3076 = vtanh.f32 %v2598_v12 }
 0x493   :  { %v2766_v43 = vmin.f32 %v2738_v37, %v2765_v36  ;;  %v2791_v19 = vmin.f32 %v2765_v36, %v2790_v22  ;;  %v2792_v55 = vrot.slane %v5239_v20, 6  ;;  %v2817_v47 = vrot.slane %v5257_v58, 4 }
 0x494   :  { %v2718_v24 = vadd.f32 %v2716_v15, %v2715_v42  ;;  %v2743_v14 = vadd.f32 %v2741_v10, %v2739_v30  ;;  %v2816_v63 = vmin.f32 %v2790_v22, %v2815_v31  ;;  %v2720_v53 = vrot.slane %v5311_v4, 6 }
 0x495   :  { %v2767_v2 = vadd.f32 %v5322_v51, %v2766_v43  ;;  %v2794_v60 = vadd.f32 %v2792_v55, %v2791_v19  ;;  %v2745_v48 = vrot.slane %v5316_v17, 4  ;;  %v2770_v9 = vrot.slane %v5322_v51, 2 }
 0x496   :  { %v2719_v0 = vmin.f32 %v2693_v5, %v2718_v24  ;;  %v2744_v26 = vmin.f32 %v2718_v24, %v2743_v14  ;;  %v2819_v50 = vadd.f32 %v2817_v47, %v2816_v63  ;;  %v2821_v3 = vrot.slane %v5257_v58, 6  ;;  %v5555_v5 = vld [vmem:[#allocation6_spill] sm:$0xff] }
 0x497   :  { %v2768_v54 = vmin.f32 %v2743_v14, %v2767_v2  ;;  %v2795_v27 = vmin.f32 %v2767_v2, %v2794_v60  ;;  %v2749_v13 = vrot.slane %v5316_v17, 6  ;;  %v2774_v7 = vrot.slane %v5322_v51, 4 }
 0x498   :  { %v2722_v20 = vadd.f32 %v2720_v53, %v2719_v0  ;;  %v2747_v8 = vadd.f32 %v2745_v48, %v2744_v26  ;;  %v2820_v21 = vmin.f32 %v2794_v60, %v2819_v50  ;;  %v2799_v6 = vrot.slane %v5326_v33, 2 }
 0x499   :  { %v2772_v25 = vadd.f32 %v2770_v9, %v2768_v54  ;;  %v2796_v4 = vadd.f32 %v5326_v33, %v2795_v27  ;;  %v2778_v61 = vrot.slane %v5322_v51, 6  ;;  %v2803_v49 = vrot.slane %v5326_v33, 4  ;;  %v5556_v51 = vld [vmem:[#allocation5_spill] sm:$0xff] }
 0x49a   :  { %v2748_v40 = vmin.f32 %v2722_v20, %v2747_v8  ;;  %v2823_v29 = vadd.f32 %v2821_v3, %v2820_v21  ;;  %v2807_v16 = vrot.slane %v5326_v33, 6  ;;  %v2839_v15 = vsub.f32 %v5556_v51, %v5555_v5 }
 0x49b   :  { %v2773_v57 = vmin.f32 %v2747_v8, %v2772_v25  ;;  %v2797_v56 = vmin.f32 %v2772_v25, %v2796_v4  ;;  %vm2851_vm3 = vcmask 1040384   ;;  %vm2853_vm5 = vcmask 58368  }
 0x49c   :  { %v2751_v1 = vadd.f32 %v2749_v13, %v2748_v40  ;;  %v2824_v46 = vmin.f32 %v2796_v4, %v2823_v29  ;;  %v3077_v12 = vpop.eup %3076  ;;  %v2840_v42 = vadd.f32 0.3, %v2839_v15 }
 0x49d   :  { %v2776_v44 = vadd.f32 %v2774_v7, %v2773_v57  ;;  %v2801_v52 = vadd.f32 %v2799_v6, %v2797_v56  ;;  %v2828_v32 = vrot.slane %v3077_v12, 2  ;;  %v2832_v18 = vrot.slane %v3077_v12, 4 }
 0x49e   :  { %v2825_v23 = vadd.f32 %v3077_v12, %v2824_v46  ;;  %v2836_v59 = vrot.slane %v3077_v12, 6  ;;  %v2841_v31 = vmax.f32 %v2840_v42, 0.0 }
 0x49f   :  { %v2777_v58 = vmin.f32 %v2751_v1, %v2776_v44  ;;  %v2802_v11 = vmin.f32 %v2776_v44, %v2801_v52 }
 0x4a0   :  { %v2826_v17 = vmin.f32 %v2801_v52, %v2825_v23 }
 0x4a1   :  { %v2780_v39 = vadd.f32 %v2778_v61, %v2777_v58  ;;  %v2805_v62 = vadd.f32 %v2803_v49, %v2802_v11 }
 0x4a2   :  { %v2830_v45 = vadd.f32 %v2828_v32, %v2826_v17 }
 0x4a3   :  { %v2806_v35 = vmin.f32 %v2780_v39, %v2805_v62 }
 0x4a4   :  { %v2831_v28 = vmin.f32 %v2805_v62, %v2830_v45 }
 0x4a5   :  { %v2809_v38 = vadd.f32 %v2807_v16, %v2806_v35 }
 0x4a6   :  { %v2834_v34 = vadd.f32 %v2832_v18, %v2831_v28 }
 0x4a8   :  { %v2835_v37 = vmin.f32 %v2809_v38, %v2834_v34 }
 0x4aa   :  { %v2838_v41 = vadd.f32 %v2836_v59, %v2835_v37 }
 0x4ac   :  { %v2843_v36 = vrot.slane %v2838_v41, 1 }
 0x4ae   :  { %v2845_v22 = vsub.f32 %v2838_v41, %v2843_v36 }
 0x4b0   :  { %v2846_v30 = vadd.f32 0.3, %v2845_v22 }
 0x4b2   :  { %v2847_v10 = vmax.f32 %v2846_v30, 0.0 }
 0x4b4   :  { %v2849_v33 = vrot.slane %v2847_v10, 7 }
 0x4b6   :  { %v2852_v43 = vsel %vm2851_vm3, %v2841_v31, %v2849_v33 }
 0x4b7   :  { %2854 = vst.msk [vmem:[#allocation2] sm:$0x3] %vm2853_vm5, %v2852_v43 }
 0x4b8   :  { %3134 = shalt.err (!%p3131_p4)
}
 0x4b9   :  { %s3135_s28 = scalar_lea.hbm %s5368_s4, 32 }
 0x4ba   :  { %p3136_p5 = scmp.ne.s32.totalorder %s5368_s4, %s3135_s28  ;;  %p3139_p6 = scmp.lt.u32.totalorder %s3135_s28, %s5368_s4 }
 0x4bc   :  { %p3141_p7 = pnand %p3139_p6, %p3136_p5 }
 0x4be   :  { %3144 = shalt.err (!%p3141_p7)
}
 0x4bf   :  { %2864 = dma.vmem_to_hbm [thread:$0]  %s2862_s24, 32, %s5368_s4, [#allocation3]  }
 0x4c0   :  { %3145 = dma.done.wait [#allocation3], 32  }
 0x4c1   :  { %3146 = vsyncadd [#allocation3], 4294967264 }
 0x4c2   :  { %2868 = vsyncpa [#allocation3], 1 }

</bundles_post_ra>
